<compile_context>
chip_gen: v7x
topology: tpu7x:2x2x1
jax: 0.10.0
libtpu: 0.0.40
codegen_flags: <defaults>
</compile_context>

<pallas_src>
import functools
import math

import jax
import jax.numpy as jnp
from jax.experimental import pallas as pl
from jax.experimental.pallas import tpu as pltpu


# ---------------------------------------------------------------------------
# Fused Pallas kernel: 3x (conv3x3 + ReLU) + last_fc, B samples per grid step
# ---------------------------------------------------------------------------
def _make_fused_encoder_kernel(n_conv, cmax, wp, hwp, bblk, compute_dtype):
    q = bblk * hwp                     # lane-stacked plane width
    guard = wp + 1                     # covers all 9 tap offsets
    # 3x3 / stride-1 / pad-1 tap offsets in the flattened padded plane
    offsets = [(dy - 1) * wp + (dx - 1) for dy in range(3) for dx in range(3)]

    def kernel(x_ref, mask_ref, wconv_ref, bconv_ref, wfc_ref, bfc_ref, o_ref):
        mask = mask_ref[...]                                   # (1, B*HWp) f32
        gz = jnp.zeros((cmax, guard), jnp.float32)             # tap guard cols

        # Lane-stack the B samples of this step: (B, Cmax, HWp) -> (Cmax, B*HWp)
        # (per-sample slices are 128-aligned since HWp % 128 == 0).
        plane = jnp.concatenate(
            [x_ref[b].astype(jnp.float32) for b in range(bblk)], axis=1)

        for i in range(n_conv):
            # 9 shifted taps of the padded plane concatenated along K so the
            # whole conv layer over the whole sample block is ONE MXU matmul
            # (K = 9*Cmax, N = B*HWp).  Each sample's own zero ring + zero lane
            # tail guarantees taps never leak across sample boundaries.
            ext = jnp.concatenate([gz, plane, gz], axis=1)
            taps = [ext[:, guard + o: guard + o + q] for o in offsets]
            xcat = jnp.concatenate(taps, axis=0)               # (9*Cmax, B*HWp)
            acc = jnp.dot(wconv_ref[i], xcat.astype(compute_dtype),
                          preferred_element_type=jnp.float32)  # (Cmax, B*HWp)
            # bias + ReLU + re-zero padding ring / lane tail in one pass
            plane = jnp.maximum(acc + bconv_ref[i], 0.0) * mask

        # last_fc: gather the B per-sample planes as rows -> ONE matmul
        # (B, Cmax*HWp) @ (Cmax*HWp, latent).  wfc was zero-scattered into this
        # exact (channel-major, padded-plane) K ordering at prep time, folding
        # torch's NCHW flatten and the padding ring.
        a_fc = jnp.concatenate(
            [plane[:, b * hwp:(b + 1) * hwp].reshape(1, cmax * hwp)
             for b in range(bblk)], axis=0)                    # (B, Cmax*HWp)
        out = jnp.dot(a_fc.astype(compute_dtype), wfc_ref[...],
                      preferred_element_type=jnp.float32) + bfc_ref[...]
        o_ref[0] = out.astype(o_ref.dtype)

    return kernel


# ---------------------------------------------------------------------------
# Forward wrapper: one pallas_call for the whole encoder
# ---------------------------------------------------------------------------
def custom_encoder_forward(x_nchw, kparams, *, block_b=4):
    N, C, H, W = x_nchw.shape
    wconv, bconv = kparams["wconv"], kparams["bconv"]
    wfc, bfc, mask = kparams["wfc"], kparams["bfc"], kparams["mask"]
    compute_dtype = wconv.dtype                     # weights pre-cast at prep

    n_conv, cmax = wconv.shape[0], wconv.shape[1]
    latent = bfc.shape[-1]
    hp, wp = H + 2, W + 2
    hw = hp * wp
    hwp = mask.shape[-1]                            # plane padded to 128-lane multiple

    bblk = max(1, min(block_b, N))                  # samples per grid step
    grid_n = -(-N // bblk)
    n_pad = grid_n * bblk

    # Light input prep (single pass): pad channels to Cmax, pad spatial by 1
    # (the conv's zero ring), flatten, pad the plane to HWp lanes.
    # TODO(synk): fold this pad/flatten into the kernel (DMA the raw (C,H,W)
    # block and scatter into a zeroed VMEM plane) to save one HBM round trip,
    # which matters most on v5e and at the real 128x128x16 config.
    xp = jnp.pad(x_nchw, ((0, n_pad - N), (0, cmax - C), (1, 1), (1, 1)))
    xplane = xp.reshape(n_pad, cmax, hw)
    xplane = jnp.pad(xplane, ((0, 0), (0, 0), (0, hwp - hw)))

    mask_q = jnp.tile(mask, (1, bblk))              # (1, B*HWp) interior mask

    kernel = _make_fused_encoder_kernel(n_conv, cmax, wp, hwp, bblk, compute_dtype)
    out = pl.pallas_call(
        kernel,
        out_shape=jax.ShapeDtypeStruct((grid_n, bblk, latent), x_nchw.dtype),
        grid=(grid_n,),
        in_specs=[
            pl.BlockSpec((bblk, cmax, hwp), lambda g: (g, 0, 0)),  # B sample planes
            pl.BlockSpec((1, bblk * hwp), lambda g: (0, 0)),       # interior mask
            pl.BlockSpec(wconv.shape, lambda g: (0, 0, 0)),        # conv weights (resident)
            pl.BlockSpec(bconv.shape, lambda g: (0, 0, 0)),        # conv biases
            pl.BlockSpec(wfc.shape, lambda g: (0, 0)),             # last_fc weight (resident)
            pl.BlockSpec(bfc.shape, lambda g: (0, 0)),             # last_fc bias
        ],
        out_specs=pl.BlockSpec((1, bblk, latent), lambda g: (g, 0, 0)),
        compiler_params=pltpu.CompilerParams(
            dimension_semantics=("parallel",)),                    # megacore on v7x
    )(xplane, mask_q, wconv, bconv, wfc, bfc)
    return out.reshape(n_pad, latent)[:N]


# ---------------------------------------------------------------------------
# One-time parameter re-layout + dtype cast (hoisted out of the forward path)
# ---------------------------------------------------------------------------
def prepare_params(raw, input_hw, dtype=jnp.float32):
    H = W = input_hw
    hp, wp = H + 2, W + 2
    hw = hp * wp
    hwp = ((hw + 127) // 128) * 128                 # lane-dense per-sample plane
    convs = raw["convs"]
    n_conv = len(convs)
    chans = [convs[0][0].shape[1]] + [w.shape[0] for w, _ in convs]
    cmax = ((max(chans) + 7) // 8) * 8

    # Conv weights: OIHW -> (Cmax, 9*Cmax) per layer, K ordered (tap, channel),
    # zero-padded to a uniform Cmax so the fused kernel's K is constant.
    wconv = jnp.zeros((n_conv, cmax, 3, 3, cmax), jnp.float32)
    bconv = jnp.zeros((n_conv, cmax, 1), jnp.float32)
    for i, (w, b) in enumerate(convs):
        co, ci = w.shape[0], w.shape[1]
        wk = jnp.transpose(w, (0, 2, 3, 1))                     # (Co, ky, kx, Ci)
        wconv = wconv.at[i, :co, :, :, :ci].set(wk.astype(jnp.float32))
        bconv = bconv.at[i, :co, 0].set(b.astype(jnp.float32))
    wconv = wconv.reshape(n_conv, cmax, 9 * cmax).astype(dtype)

    # last_fc weight (latent, C_last*H*W): fold torch's NCHW flatten, the conv
    # zero-padding ring and the lane-tail pad by zero-scattering into
    # (Cmax*HWp, latent) with K ordered channel-major over the padded plane.
    wl = raw["last_fc_w"]
    latent = wl.shape[0]
    c_last = convs[-1][0].shape[0]
    wl = wl.reshape(latent, c_last, H, W)
    wl = jnp.pad(wl, ((0, 0), (0, cmax - c_last), (1, 1), (1, 1)))
    wl = wl.reshape(latent, cmax, hw)
    wl = jnp.pad(wl, ((0, 0), (0, 0), (0, hwp - hw)))
    wfc = wl.reshape(latent, cmax * hwp).T.astype(dtype)        # (Cmax*HWp, latent)
    bfc = raw["last_fc_b"].reshape(1, latent).astype(jnp.float32)

    # Per-sample interior (non-padding) mask over the padded + lane-padded plane.
    qy, qx = jnp.meshgrid(jnp.arange(hp), jnp.arange(wp), indexing="ij")
    interior = (qy >= 1) & (qy <= hp - 2) & (qx >= 1) & (qx <= wp - 2)
    mask = jnp.zeros((1, hwp), jnp.float32).at[0, :hw].set(
        interior.reshape(hw).astype(jnp.float32))

    return {"wconv": wconv, "bconv": bconv, "wfc": wfc, "bfc": bfc, "mask": mask}


# ---------------------------------------------------------------------------
# Deterministic PyTorch-like parameter construction (mirrors __init__)
# ---------------------------------------------------------------------------
def make_params(key, input_channels, n_channels, latent_dim, conv_flat_size,
                init_w=1e-4, dtype=jnp.float32):
    params = {"convs": []}
    cin = input_channels
    for cout in n_channels:
        key, wk = jax.random.split(key)
        fan_in, fan_out = cin * 9, cout * 9
        bound = math.sqrt(6.0 / (fan_in + fan_out))             # xavier_uniform_
        w = jax.random.uniform(wk, (cout, cin, 3, 3), dtype, -bound, bound)
        b = jnp.zeros((cout,), dtype)                           # conv.bias.data.fill_(0)
        params["convs"].append((w, b))
        cin = cout
    key, wk, bk = jax.random.split(key, 3)
    params["last_fc_w"] = jax.random.uniform(
        wk, (latent_dim, conv_flat_size), dtype, -init_w, init_w)
    params["last_fc_b"] = jax.random.uniform(
        bk, (latent_dim,), dtype, -init_w, init_w)
    return params


# ---------------------------------------------------------------------------
# Pure-JAX reference (uses the raw PyTorch-layout parameters)
# ---------------------------------------------------------------------------
def reference_forward(x_nchw, raw):
    h = x_nchw
    for (w, b) in raw["convs"]:
        h = jax.lax.conv_general_dilated(
            h, w, window_strides=(1, 1), padding=((1, 1), (1, 1)),
            dimension_numbers=("NCHW", "OIHW", "NCHW"))
        h = jax.nn.relu(h + b[None, :, None, None])
    flat = h.reshape(h.shape[0], -1)
    return flat @ raw["last_fc_w"].T + raw["last_fc_b"][None, :]


if __name__ == "__main__":
    batch = 8
    input_channels = 3
    input_hw = 16
    n_channels = [8, 8, 8]
    latent_dim = 32
    conv_flat_size = n_channels[-1] * input_hw * input_hw   # stride-1/pad-1 keeps H,W

    key = jax.random.PRNGKey(0)
    key, xk = jax.random.split(key)
    x = jax.random.normal(xk, (batch, input_channels, input_hw, input_hw), jnp.float32)

    raw = make_params(key, input_channels, n_channels, latent_dim, conv_flat_size)
    ref = jax.block_until_ready(reference_forward(x, raw))

    fwd = jax.jit(functools.partial(custom_encoder_forward, block_b=4))

    # f32 weights / f32 MXU path (exactness check); 2 grid steps of 4 samples.
    kparams_f32 = prepare_params(raw, input_hw, dtype=jnp.float32)
    out = jax.block_until_ready(fwd(x, kparams_f32))
    assert out.shape == (batch, latent_dim), out.shape
    assert jnp.allclose(out, ref, rtol=1e-3, atol=1e-5), (
        float(jnp.max(jnp.abs(out - ref))))

    # bf16 weights, bf16-input / f32-accumulate MXU path (fast path on v6e/v7x);
    # loose check vs. the f32 reference.
    kparams_bf16 = prepare_params(raw, input_hw, dtype=jnp.bfloat16)
    out_bf16 = jax.block_until_ready(fwd(x, kparams_bf16))
    assert out_bf16.shape == (batch, latent_dim)
    assert bool(jnp.all(jnp.isfinite(out_bf16)))
    assert jnp.allclose(out_bf16, ref, rtol=5e-2, atol=5e-4), (
        float(jnp.max(jnp.abs(out_bf16 - ref))))

    print("KERNEL_OK")
</pallas_src>

<mosaic_0001>
module attributes {stable_mosaic.version = 11 : i64} {
  func.func @kernel(%arg0: i32, %arg1: memref<4x8x384xf32, #tpu.memory_space<vmem>>, %arg2: memref<1x1536xf32, #tpu.memory_space<vmem>>, %arg3: memref<3x8x72xf32, #tpu.memory_space<vmem>>, %arg4: memref<3x8x1xf32, #tpu.memory_space<vmem>>, %arg5: memref<3072x32xf32, #tpu.memory_space<vmem>>, %arg6: memref<1x32xf32, #tpu.memory_space<vmem>>, %arg7: memref<1x4x32xf32, #tpu.memory_space<vmem>>) attributes {dimension_semantics = [#tpu.dimension_semantics<parallel>], iteration_bounds = array<i64: 2>, scalar_prefetch = 0 : i64, scratch_operands = 0 : i64, tpu.core_type = #tpu.core_type<tc>, window_params = [{transform_indices = @transform_0, window_bounds = array<i64: 4, 8, 384>}, {pipeline_mode = #tpu.pipeline_mode<synchronous>, transform_indices = @transform_1, window_bounds = array<i64: 1, 1536>}, {pipeline_mode = #tpu.pipeline_mode<synchronous>, transform_indices = @transform_2, window_bounds = array<i64: 3, 8, 72>}, {pipeline_mode = #tpu.pipeline_mode<synchronous>, transform_indices = @transform_3, window_bounds = array<i64: 3, 8, 1>}, {pipeline_mode = #tpu.pipeline_mode<synchronous>, transform_indices = @transform_4, window_bounds = array<i64: 3072, 32>}, {pipeline_mode = #tpu.pipeline_mode<synchronous>, transform_indices = @transform_5, window_bounds = array<i64: 1, 32>}, {transform_indices = @transform_6, window_bounds = array<i64: 1, 4, 32>}]} {
    %c0 = arith.constant 0 : index
    %c0_0 = arith.constant 0 : index
    %0 = vector.load %arg2[%c0, %c0_0] : memref<1x1536xf32, #tpu.memory_space<vmem>>, vector<1x1536xf32>
    %cst = arith.constant 0.000000e+00 : f32
    %1 = vector.broadcast %cst : f32 to vector<8x19xf32>
    %c0_1 = arith.constant 0 : index
    %c0_2 = arith.constant 0 : index
    %c0_3 = arith.constant 0 : index
    %2 = vector.load %arg1[%c0_1, %c0_2, %c0_3] : memref<4x8x384xf32, #tpu.memory_space<vmem>>, vector<1x8x384xf32>
    %3 = vector.shape_cast %2 : vector<1x8x384xf32> to vector<8x384xf32>
    %c1 = arith.constant 1 : index
    %c0_4 = arith.constant 0 : index
    %c0_5 = arith.constant 0 : index
    %4 = vector.load %arg1[%c1, %c0_4, %c0_5] : memref<4x8x384xf32, #tpu.memory_space<vmem>>, vector<1x8x384xf32>
    %5 = vector.shape_cast %4 : vector<1x8x384xf32> to vector<8x384xf32>
    %c2 = arith.constant 2 : index
    %c0_6 = arith.constant 0 : index
    %c0_7 = arith.constant 0 : index
    %6 = vector.load %arg1[%c2, %c0_6, %c0_7] : memref<4x8x384xf32, #tpu.memory_space<vmem>>, vector<1x8x384xf32>
    %7 = vector.shape_cast %6 : vector<1x8x384xf32> to vector<8x384xf32>
    %c3 = arith.constant 3 : index
    %c0_8 = arith.constant 0 : index
    %c0_9 = arith.constant 0 : index
    %8 = vector.load %arg1[%c3, %c0_8, %c0_9] : memref<4x8x384xf32, #tpu.memory_space<vmem>>, vector<1x8x384xf32>
    %9 = vector.shape_cast %8 : vector<1x8x384xf32> to vector<8x384xf32>
    %10 = tpu.concatenate %3, %5, %7, %9 in 1 : vector<8x384xf32>, vector<8x384xf32>, vector<8x384xf32>, vector<8x384xf32> -> vector<8x1536xf32>
    %11 = tpu.concatenate %1, %10, %1 in 1 : vector<8x19xf32>, vector<8x1536xf32>, vector<8x19xf32> -> vector<8x1574xf32>
    %12 = vector.extract_strided_slice %11 {offsets = [0, 0], sizes = [8, 1536], strides = [1, 1]} : vector<8x1574xf32> to vector<8x1536xf32>
    %13 = vector.extract_strided_slice %11 {offsets = [0, 1], sizes = [8, 1536], strides = [1, 1]} : vector<8x1574xf32> to vector<8x1536xf32>
    %14 = vector.extract_strided_slice %11 {offsets = [0, 2], sizes = [8, 1536], strides = [1, 1]} : vector<8x1574xf32> to vector<8x1536xf32>
    %15 = vector.extract_strided_slice %11 {offsets = [0, 18], sizes = [8, 1536], strides = [1, 1]} : vector<8x1574xf32> to vector<8x1536xf32>
    %16 = vector.extract_strided_slice %11 {offsets = [0, 19], sizes = [8, 1536], strides = [1, 1]} : vector<8x1574xf32> to vector<8x1536xf32>
    %17 = vector.extract_strided_slice %11 {offsets = [0, 20], sizes = [8, 1536], strides = [1, 1]} : vector<8x1574xf32> to vector<8x1536xf32>
    %18 = vector.extract_strided_slice %11 {offsets = [0, 36], sizes = [8, 1536], strides = [1, 1]} : vector<8x1574xf32> to vector<8x1536xf32>
    %19 = vector.extract_strided_slice %11 {offsets = [0, 37], sizes = [8, 1536], strides = [1, 1]} : vector<8x1574xf32> to vector<8x1536xf32>
    %20 = vector.extract_strided_slice %11 {offsets = [0, 38], sizes = [8, 1536], strides = [1, 1]} : vector<8x1574xf32> to vector<8x1536xf32>
    %21 = tpu.concatenate %12, %13, %14, %15, %16, %17, %18, %19, %20 in 0 : vector<8x1536xf32>, vector<8x1536xf32>, vector<8x1536xf32>, vector<8x1536xf32>, vector<8x1536xf32>, vector<8x1536xf32>, vector<8x1536xf32>, vector<8x1536xf32>, vector<8x1536xf32> -> vector<72x1536xf32>
    %c0_10 = arith.constant 0 : index
    %c0_11 = arith.constant 0 : index
    %c0_12 = arith.constant 0 : index
    %22 = vector.load %arg3[%c0_10, %c0_11, %c0_12] : memref<3x8x72xf32, #tpu.memory_space<vmem>>, vector<1x8x72xf32>
    %23 = vector.shape_cast %22 : vector<1x8x72xf32> to vector<8x72xf32>
    %cst_13 = arith.constant dense<0.000000e+00> : vector<8x1536xf32>
    %24 = tpu.matmul %23, %21, %cst_13 {dimension_numbers = #tpu.dot_dimension_numbers<[1], [0], [0], [1], [0, 0, 1, 1], [], []>} : vector<8x72xf32>, vector<72x1536xf32>, vector<8x1536xf32> -> vector<8x1536xf32>
    %c0_14 = arith.constant 0 : index
    %c0_15 = arith.constant 0 : index
    %c0_16 = arith.constant 0 : index
    %25 = vector.load %arg4[%c0_14, %c0_15, %c0_16] : memref<3x8x1xf32, #tpu.memory_space<vmem>>, vector<1x8x1xf32>
    %26 = vector.shape_cast %25 : vector<1x8x1xf32> to vector<8x1xf32>
    %27 = vector.broadcast %26 : vector<8x1xf32> to vector<8x1536xf32>
    %28 = arith.addf %24, %27 : vector<8x1536xf32>
    %cst_17 = arith.constant 0.000000e+00 : f32
    %29 = vector.broadcast %cst_17 : f32 to vector<8x1536xf32>
    %30 = arith.maximumf %28, %29 : vector<8x1536xf32>
    %31 = vector.broadcast %0 : vector<1x1536xf32> to vector<8x1536xf32>
    %32 = arith.mulf %30, %31 : vector<8x1536xf32>
    %33 = tpu.concatenate %1, %32, %1 in 1 : vector<8x19xf32>, vector<8x1536xf32>, vector<8x19xf32> -> vector<8x1574xf32>
    %34 = vector.extract_strided_slice %33 {offsets = [0, 0], sizes = [8, 1536], strides = [1, 1]} : vector<8x1574xf32> to vector<8x1536xf32>
    %35 = vector.extract_strided_slice %33 {offsets = [0, 1], sizes = [8, 1536], strides = [1, 1]} : vector<8x1574xf32> to vector<8x1536xf32>
    %36 = vector.extract_strided_slice %33 {offsets = [0, 2], sizes = [8, 1536], strides = [1, 1]} : vector<8x1574xf32> to vector<8x1536xf32>
    %37 = vector.extract_strided_slice %33 {offsets = [0, 18], sizes = [8, 1536], strides = [1, 1]} : vector<8x1574xf32> to vector<8x1536xf32>
    %38 = vector.extract_strided_slice %33 {offsets = [0, 19], sizes = [8, 1536], strides = [1, 1]} : vector<8x1574xf32> to vector<8x1536xf32>
    %39 = vector.extract_strided_slice %33 {offsets = [0, 20], sizes = [8, 1536], strides = [1, 1]} : vector<8x1574xf32> to vector<8x1536xf32>
    %40 = vector.extract_strided_slice %33 {offsets = [0, 36], sizes = [8, 1536], strides = [1, 1]} : vector<8x1574xf32> to vector<8x1536xf32>
    %41 = vector.extract_strided_slice %33 {offsets = [0, 37], sizes = [8, 1536], strides = [1, 1]} : vector<8x1574xf32> to vector<8x1536xf32>
    %42 = vector.extract_strided_slice %33 {offsets = [0, 38], sizes = [8, 1536], strides = [1, 1]} : vector<8x1574xf32> to vector<8x1536xf32>
    %43 = tpu.concatenate %34, %35, %36, %37, %38, %39, %40, %41, %42 in 0 : vector<8x1536xf32>, vector<8x1536xf32>, vector<8x1536xf32>, vector<8x1536xf32>, vector<8x1536xf32>, vector<8x1536xf32>, vector<8x1536xf32>, vector<8x1536xf32>, vector<8x1536xf32> -> vector<72x1536xf32>
    %c1_18 = arith.constant 1 : index
    %c0_19 = arith.constant 0 : index
    %c0_20 = arith.constant 0 : index
    %44 = vector.load %arg3[%c1_18, %c0_19, %c0_20] : memref<3x8x72xf32, #tpu.memory_space<vmem>>, vector<1x8x72xf32>
    %45 = vector.shape_cast %44 : vector<1x8x72xf32> to vector<8x72xf32>
    %cst_21 = arith.constant dense<0.000000e+00> : vector<8x1536xf32>
    %46 = tpu.matmul %45, %43, %cst_21 {dimension_numbers = #tpu.dot_dimension_numbers<[1], [0], [0], [1], [0, 0, 1, 1], [], []>} : vector<8x72xf32>, vector<72x1536xf32>, vector<8x1536xf32> -> vector<8x1536xf32>
    %c1_22 = arith.constant 1 : index
    %c0_23 = arith.constant 0 : index
    %c0_24 = arith.constant 0 : index
    %47 = vector.load %arg4[%c1_22, %c0_23, %c0_24] : memref<3x8x1xf32, #tpu.memory_space<vmem>>, vector<1x8x1xf32>
    %48 = vector.shape_cast %47 : vector<1x8x1xf32> to vector<8x1xf32>
    %49 = vector.broadcast %48 : vector<8x1xf32> to vector<8x1536xf32>
    %50 = arith.addf %46, %49 : vector<8x1536xf32>
    %cst_25 = arith.constant 0.000000e+00 : f32
    %51 = vector.broadcast %cst_25 : f32 to vector<8x1536xf32>
    %52 = arith.maximumf %50, %51 : vector<8x1536xf32>
    %53 = vector.broadcast %0 : vector<1x1536xf32> to vector<8x1536xf32>
    %54 = arith.mulf %52, %53 : vector<8x1536xf32>
    %55 = tpu.concatenate %1, %54, %1 in 1 : vector<8x19xf32>, vector<8x1536xf32>, vector<8x19xf32> -> vector<8x1574xf32>
    %56 = vector.extract_strided_slice %55 {offsets = [0, 0], sizes = [8, 1536], strides = [1, 1]} : vector<8x1574xf32> to vector<8x1536xf32>
    %57 = vector.extract_strided_slice %55 {offsets = [0, 1], sizes = [8, 1536], strides = [1, 1]} : vector<8x1574xf32> to vector<8x1536xf32>
    %58 = vector.extract_strided_slice %55 {offsets = [0, 2], sizes = [8, 1536], strides = [1, 1]} : vector<8x1574xf32> to vector<8x1536xf32>
    %59 = vector.extract_strided_slice %55 {offsets = [0, 18], sizes = [8, 1536], strides = [1, 1]} : vector<8x1574xf32> to vector<8x1536xf32>
    %60 = vector.extract_strided_slice %55 {offsets = [0, 19], sizes = [8, 1536], strides = [1, 1]} : vector<8x1574xf32> to vector<8x1536xf32>
    %61 = vector.extract_strided_slice %55 {offsets = [0, 20], sizes = [8, 1536], strides = [1, 1]} : vector<8x1574xf32> to vector<8x1536xf32>
    %62 = vector.extract_strided_slice %55 {offsets = [0, 36], sizes = [8, 1536], strides = [1, 1]} : vector<8x1574xf32> to vector<8x1536xf32>
    %63 = vector.extract_strided_slice %55 {offsets = [0, 37], sizes = [8, 1536], strides = [1, 1]} : vector<8x1574xf32> to vector<8x1536xf32>
    %64 = vector.extract_strided_slice %55 {offsets = [0, 38], sizes = [8, 1536], strides = [1, 1]} : vector<8x1574xf32> to vector<8x1536xf32>
    %65 = tpu.concatenate %56, %57, %58, %59, %60, %61, %62, %63, %64 in 0 : vector<8x1536xf32>, vector<8x1536xf32>, vector<8x1536xf32>, vector<8x1536xf32>, vector<8x1536xf32>, vector<8x1536xf32>, vector<8x1536xf32>, vector<8x1536xf32>, vector<8x1536xf32> -> vector<72x1536xf32>
    %c2_26 = arith.constant 2 : index
    %c0_27 = arith.constant 0 : index
    %c0_28 = arith.constant 0 : index
    %66 = vector.load %arg3[%c2_26, %c0_27, %c0_28] : memref<3x8x72xf32, #tpu.memory_space<vmem>>, vector<1x8x72xf32>
    %67 = vector.shape_cast %66 : vector<1x8x72xf32> to vector<8x72xf32>
    %cst_29 = arith.constant dense<0.000000e+00> : vector<8x1536xf32>
    %68 = tpu.matmul %67, %65, %cst_29 {dimension_numbers = #tpu.dot_dimension_numbers<[1], [0], [0], [1], [0, 0, 1, 1], [], []>} : vector<8x72xf32>, vector<72x1536xf32>, vector<8x1536xf32> -> vector<8x1536xf32>
    %c2_30 = arith.constant 2 : index
    %c0_31 = arith.constant 0 : index
    %c0_32 = arith.constant 0 : index
    %69 = vector.load %arg4[%c2_30, %c0_31, %c0_32] : memref<3x8x1xf32, #tpu.memory_space<vmem>>, vector<1x8x1xf32>
    %70 = vector.shape_cast %69 : vector<1x8x1xf32> to vector<8x1xf32>
    %71 = vector.broadcast %70 : vector<8x1xf32> to vector<8x1536xf32>
    %72 = arith.addf %68, %71 : vector<8x1536xf32>
    %cst_33 = arith.constant 0.000000e+00 : f32
    %73 = vector.broadcast %cst_33 : f32 to vector<8x1536xf32>
    %74 = arith.maximumf %72, %73 : vector<8x1536xf32>
    %75 = vector.broadcast %0 : vector<1x1536xf32> to vector<8x1536xf32>
    %76 = arith.mulf %74, %75 : vector<8x1536xf32>
    %77 = vector.extract_strided_slice %76 {offsets = [0, 0], sizes = [8, 384], strides = [1, 1]} : vector<8x1536xf32> to vector<8x384xf32>
    %78 = vector.shape_cast %77 : vector<8x384xf32> to vector<1x3072xf32>
    %79 = vector.extract_strided_slice %76 {offsets = [0, 384], sizes = [8, 384], strides = [1, 1]} : vector<8x1536xf32> to vector<8x384xf32>
    %80 = vector.shape_cast %79 : vector<8x384xf32> to vector<1x3072xf32>
    %81 = vector.extract_strided_slice %76 {offsets = [0, 768], sizes = [8, 384], strides = [1, 1]} : vector<8x1536xf32> to vector<8x384xf32>
    %82 = vector.shape_cast %81 : vector<8x384xf32> to vector<1x3072xf32>
    %83 = vector.extract_strided_slice %76 {offsets = [0, 1152], sizes = [8, 384], strides = [1, 1]} : vector<8x1536xf32> to vector<8x384xf32>
    %84 = vector.shape_cast %83 : vector<8x384xf32> to vector<1x3072xf32>
    %85 = tpu.concatenate %78, %80, %82, %84 in 0 : vector<1x3072xf32>, vector<1x3072xf32>, vector<1x3072xf32>, vector<1x3072xf32> -> vector<4x3072xf32>
    %c0_34 = arith.constant 0 : index
    %c0_35 = arith.constant 0 : index
    %86 = vector.load %arg5[%c0_34, %c0_35] : memref<3072x32xf32, #tpu.memory_space<vmem>>, vector<3072x32xf32>
    %cst_36 = arith.constant dense<0.000000e+00> : vector<4x32xf32>
    %87 = tpu.matmul %85, %86, %cst_36 {dimension_numbers = #tpu.dot_dimension_numbers<[1], [0], [0], [1], [0, 0, 1, 1], [], []>} : vector<4x3072xf32>, vector<3072x32xf32>, vector<4x32xf32> -> vector<4x32xf32>
    %c0_37 = arith.constant 0 : index
    %c0_38 = arith.constant 0 : index
    %88 = vector.load %arg6[%c0_37, %c0_38] : memref<1x32xf32, #tpu.memory_space<vmem>>, vector<1x32xf32>
    %89 = vector.broadcast %88 : vector<1x32xf32> to vector<4x32xf32>
    %90 = arith.addf %87, %89 : vector<4x32xf32>
    %c0_39 = arith.constant 0 : index
    %c0_40 = arith.constant 0 : index
    %c0_41 = arith.constant 0 : index
    %91 = vector.load %arg7[%c0_39, %c0_40, %c0_41] : memref<1x4x32xf32, #tpu.memory_space<vmem>>, vector<1x4x32xf32>
    %92 = vector.shape_cast %91 : vector<1x4x32xf32> to vector<4x32xf32>
    %93 = vector.shape_cast %90 : vector<4x32xf32> to vector<1x4x32xf32>
    tpu.vector_store %arg7[%c0_39, %c0_40, %c0_41], %93 {strides = array<i32>} : memref<1x4x32xf32, #tpu.memory_space<vmem>>, vector<1x4x32xf32>,
    return
  }
  func.func @transform_0(%arg0: i32) -> (i32, i32, i32) {
    %c0_i32 = arith.constant 0 : i32
    %c0_i32_0 = arith.constant 0 : i32
    %c0_i32_1 = arith.constant 0 : i32
    return %arg0, %c0_i32, %c0_i32_0 : i32, i32, i32
  }
  func.func @transform_1(%arg0: i32) -> (i32, i32) {
    %c0_i32 = arith.constant 0 : i32
    %c0_i32_0 = arith.constant 0 : i32
    %c0_i32_1 = arith.constant 0 : i32
    return %c0_i32, %c0_i32_0 : i32, i32
  }
  func.func @transform_2(%arg0: i32) -> (i32, i32, i32) {
    %c0_i32 = arith.constant 0 : i32
    %c0_i32_0 = arith.constant 0 : i32
    %c0_i32_1 = arith.constant 0 : i32
    %c0_i32_2 = arith.constant 0 : i32
    return %c0_i32, %c0_i32_0, %c0_i32_1 : i32, i32, i32
  }
  func.func @transform_3(%arg0: i32) -> (i32, i32, i32) {
    %c0_i32 = arith.constant 0 : i32
    %c0_i32_0 = arith.constant 0 : i32
    %c0_i32_1 = arith.constant 0 : i32
    %c0_i32_2 = arith.constant 0 : i32
    return %c0_i32, %c0_i32_0, %c0_i32_1 : i32, i32, i32
  }
  func.func @transform_4(%arg0: i32) -> (i32, i32) {
    %c0_i32 = arith.constant 0 : i32
    %c0_i32_0 = arith.constant 0 : i32
    %c0_i32_1 = arith.constant 0 : i32
    return %c0_i32, %c0_i32_0 : i32, i32
  }
  func.func @transform_5(%arg0: i32) -> (i32, i32) {
    %c0_i32 = arith.constant 0 : i32
    %c0_i32_0 = arith.constant 0 : i32
    %c0_i32_1 = arith.constant 0 : i32
    return %c0_i32, %c0_i32_0 : i32, i32
  }
  func.func @transform_6(%arg0: i32) -> (i32, i32, i32) {
    %c0_i32 = arith.constant 0 : i32
    %c0_i32_0 = arith.constant 0 : i32
    %c0_i32_1 = arith.constant 0 : i32
    return %arg0, %c0_i32, %c0_i32_0 : i32, i32, i32
  }
}

</mosaic_0001>

<bundles_post_ra>
// kernel: custom_encoder_forward.1
= control target key start
LH: loop header
LB: loop body
LE: loop exit
PB: predicated region body
PF: predicated region fallthrough
CT: control target
= control target key end

     0   :  { %11 = vsyncpa [#allocation3], 0  ;;  %s10276_s0 = inlined_call_operand.vmem [shape: f32[8,8,384], index: 0, kind: input, shape index: {}]   ;;  %s10277_s1 = inlined_call_operand.vmem [shape: f32[1,1536], index: 1, kind: input, shape index: {}]   ;;  %s10278_s2 = inlined_call_operand.vmem [shape: f32[3,8,72], index: 2, kind: input, shape index: {}]   ;;  %s10279_s3 = inlined_call_operand.vmem [shape: f32[3,8,1], index: 3, kind: input, shape index: {}]   ;;  %s10280_s4 = inlined_call_operand.vmem [shape: f32[3072,32], index: 4, kind: input, shape index: {}]   ;;  %s10281_s5 = inlined_call_operand.vmem [shape: f32[1,32], index: 5, kind: input, shape index: {}]   ;;  %s10282_s6 = inlined_call_operand.hbm [shape: f32[2,4,32], index: 6, kind: output, shape index: {}]  }
   0x1   :  { %13 = vsyncpa [#allocation3 + $0x1], 0  ;;  %s6837_s21 = smov 0   ;;  %s6839_s22 = smov 0  }
   0x2   :  { %s6841_s23 = smov 0   ;;  %s6843_s24 = smov 0  }
   0x3 LB: > { %s6858_s25 = sadd.s32 4294967295, %s6787_s24   ;;  %s4897_s26 = sadd.s32 4294967294, %s6787_s24   ;;  %s6787_s24 = sphi %s6843_s24, %s10462_s24   ;;  %s6783_s23 = sphi %s6841_s23, %s10461_s23   ;;  %s6779_s22 = sphi %s6839_s22, %s10460_s22   ;;  %s6775_s21 = sphi %s6837_s21, %s10459_s21  }
   0x4   : > { %s6862_s27 = sadd.s32 1, %s6787_s24   ;;  %s157_s28 = sadd.s32 1, %s6783_s23 }
   0x5   : > { %s154_s29 = ssub.s32 %s6787_s24, %s6862_s27  ;;  %p167_p0 = scmp.ne.s32.totalorder %s6783_s23, %s6779_s22 }
   0x6   : > { %p155_p1 = scmp.eq.s32.totalorder %s154_s29, 0  ;;  %p168_p2 = scmp.eq.s32.totalorder %s6858_s25, 1 }
   0x7   : > { %p173_p3 = scmp.ne.s32.totalorder %s6779_s22, %s6775_s21  ;;  %p174_p4 = scmp.eq.s32.totalorder %s4897_s26, 1 }
   0x8   : > { %s6873_s30 = scalar_select %p155_p1, %s6783_s23, %s157_s28  }
   0x9   : > { %p6875_p5 = por %p168_p2, %p167_p0  ;;  %p6879_p6 = por %p174_p4, %p173_p3 }
   0xa   : > { %p4900_p7 = scmp.ge.s32.totalorder %s6787_s24, 1  ;;  %p217_p8 = scmp.lt.s32.totalorder %s6787_s24, 3 }
   0xc   : > { %p218_p9 = pnand %p4900_p7, %p217_p8 }
   0xe   : > { %221 = sbr.rel (%p218_p9) target bundleno = 2036 (0x7f4), region = 44 }
  0x15   : > { %s4902_s9 = sshll.u32 %s6858_s25, 2  ;;  %s6789_s14 = smov 19   ;;  %vm308_vm0 = vcmask 154624   ;;  %v6797_v32 = vmov 0.0   ;;  %v6799_v46 = vmov 0   ;;  %vm363_vm1 = vcmask 1039360  }
  0x16   : > { %p249_p10 = scmp.lt.s32.totalorder %s4902_s9, 7  ;;  %s6790_s15 = smov 127   ;;  %820 = vmatprep.mubr.f32.mxu0 %v6797_v32  ;;  %891 = vmatprep.mubr.f32.mxu1 %v6797_v32  ;;  %vm4913_vm2 = vmneg %vm308_vm0  ;;  %vm6800_vm3 = vmmov 1   ;;  %vm414_vm5 = vcmask 1031168   ;;  %vm465_vm6 = vcmask 900096   ;;  %vm516_vm7 = vcmask 891904  }
  0x17   : > { %s6791_s16 = smov 126   ;;  %s6792_s17 = smov 110   ;;  %6303 = vset.pattern.permute.xlu0 %v6799_v46  ;;  %6724 = vset.pattern.permute.xlu1 %v6799_v46  ;;  %vm7036_vm4 = vmpackc.low %vm6800_vm3, %vm4913_vm2  ;;  %vm567_vm8 = vcmask 883712   ;;  %vm618_vm9 = vcmask 752640   ;;  %vm669_vm10 = vcmask 744448   ;;  %vm720_vm11 = vcmask 736256  }
  0x18   : > { %s10464_s9 = smov (!%p249_p10, %s4902_s9), 7  ;;  %s6793_s18 = smov 109   ;;  %vm752_vm12 = vcmask 588800   ;;  %vm3120_vm13 = vcmask 1040384   ;;  %vm3541_vm14 = vcmask 1041408   ;;  %vm3566_vm15 = vcmask 1042432  }
  0x19   : > { %s6041_s10 = smul.u32 24, %s10464_s9  ;;  %s6794_s19 = smov 108  }
  0x1a   : > { %s6795_s20 = smov 92   ;;  %s6796_s26 = smov 91  }
  0x1b   : > { %s253_s13 = scalar_lea.vmem %s10276_s0, %s6041_s10  ;;  %s6798_s28 = smov 90  }
  0x1c   : > { %v259_v0 = vld [vmem:[%s253_s13 + $0x10] sm:$0xff]  ;;  %v257_v1 = vld [vmem:[%s253_s13] sm:$0xff]  ;;  %v4904_v2 = vld [vmem:[%s253_s13 + $0x18] sm:$0xff]  ;;  %s245_s29 = sand.u32 1, %s6779_s22   ;;  %s4943_s10 = sshll.u32 %s6858_s25, 6 }
  0x1d   : > { %288 = vrot.lane.b32.xlu1 %v259_v0, %s6789_s14  ;;  %284 = vrot.lane.b32.xlu0 %v257_v1, %s6789_s14  ;;  %v258_v3 = vld [vmem:[%s253_s13 + $0x8] sm:$0xff]  ;;  %v4905_v5 = vld [vmem:[%s253_s13 + $0x20] sm:$0xff]  ;;  %s4901_s9 = sshll.u32 %s245_s29, 2  ;;  %s6801_s25 = smov [#allocation2]  }
  0x1e   : > { %v4906_v4 = vld [vmem:[%s253_s13 + $0x28] sm:$0xff]  ;;  %v4908_v6 = vld [vmem:[%s253_s13 + $0x38] sm:$0xff]  ;;  %v4907_v7 = vld [vmem:[%s253_s13 + $0x30] sm:$0xff]  ;;  %s247_s11 = scalar_lea.vmem [#allocation2], %s4901_s9 }
  0x1f   : > { %v4910_v8 = vld [vmem:[%s253_s13 + $0x48] sm:$0xff]  ;;  %v4909_v9 = vld [vmem:[%s253_s13 + $0x40] sm:$0xff]  ;;  %v4912_v10 = vld [vmem:[%s253_s13 + $0x58] sm:$0xff]  ;;  %s4838_s12 = sshll.u32 %s247_s11, 4  ;;  %s10236_s12 = int_to_ptr.vmem [resolvable:$true] %s4838_s12 }
  0x20   : > { %v4911_v11 = vld [vmem:[%s253_s13 + $0x50] sm:$0xff]  ;;  %v746_v1 = vld [vmem:[%s10279_s3] sm:$0xff] }
  0x21   : > { %290 = vrot.lane.b32.xlu1 %v4904_v2, %s6789_s14  ;;  %286 = vrot.lane.b32.xlu0 %v258_v3, %s6789_s14 }
  0x25   : > { %294 = vrot.lane.b32.xlu1 %v4906_v4, %s6789_s14  ;;  %292 = vrot.lane.b32.xlu0 %v4905_v5, %s6789_s14 }
  0x29   : > { %298 = vrot.lane.b32.xlu1 %v4908_v6, %s6789_s14  ;;  %296 = vrot.lane.b32.xlu0 %v4907_v7, %s6789_s14 }
  0x2d   : > { %302 = vrot.lane.b32.xlu1 %v4910_v8, %s6789_s14  ;;  %300 = vrot.lane.b32.xlu0 %v4909_v9, %s6789_s14 }
  0x31   : > { %306 = vrot.lane.b32.xlu1 %v4912_v10, %s6789_s14  ;;  %304 = vrot.lane.b32.xlu0 %v4911_v11, %s6789_s14 }
  0x8f   : > { %v289_v12 = vpop.permute.xlu1 %288  ;;  %v6901_v13 = vpop.permute.xlu0 %284 }
  0x90   : > { %v333_v16 = vsel %vm308_vm0, 0.0, %v6901_v13 }
  0x93   : > { %v291_v14 = vpop.permute.xlu1 %290  ;;  %v287_v15 = vpop.permute.xlu0 %286 }
  0x94   : > { %v6906_v17 = vsel %vm308_vm0, %v289_v12, %v291_v14  ;;  %v6910_v18 = vsel %vm308_vm0, %v6901_v13, %v287_v15  ;;  %v6913_v19 = vsel %vm308_vm0, %v287_v15, %v289_v12 }
  0x95   : > { %v6098_v20 = vpack.i.bf16 %v6906_v17, %v333_v16  ;;  %v6093_v21 = vpack.i.bf16 %v6913_v19, %v6910_v18 }
  0x97   : > { %v295_v22 = vpop.permute.xlu1 %294  ;;  %6099 = vrot.lane.b32.xlu1 %v6098_v20, %s6790_s15  ;;  %6094 = vrot.lane.b32.xlu0 %v6093_v21, %s6790_s15  ;;  %v293_v23 = vpop.permute.xlu0 %292 }
  0x98   : > { %v6921_v24 = vsel %vm308_vm0, %v291_v14, %v293_v23  ;;  %v6924_v25 = vsel %vm308_vm0, %v293_v23, %v295_v22 }
  0x99   : > { %v6103_v26 = vpack.i.bf16 %v6924_v25, %v6921_v24 }
  0x9b   : > { %6109 = vrot.lane.b32.xlu1 %v6093_v21, %s6791_s16  ;;  %6104 = vrot.lane.b32.xlu0 %v6103_v26, %s6790_s15  ;;  %v299_v27 = vpop.permute.xlu1 %298  ;;  %v297_v28 = vpop.permute.xlu0 %296 }
  0x9c   : > { %v6945_v29 = vsel %vm308_vm0, %v295_v22, %v297_v28  ;;  %v6948_v30 = vsel %vm308_vm0, %v297_v28, %v299_v27 }
  0x9d   : > { %v6198_v31 = vpack.i.bf16 %v6948_v30, %v6945_v29 }
  0x9f   : > { %6119 = vrot.lane.b32.xlu1 %v6098_v20, %s6791_s16  ;;  %6114 = vrot.lane.b32.xlu0 %v6093_v21, %s6792_s17  ;;  %v303_v33 = vpop.permute.xlu1 %302  ;;  %v301_v34 = vpop.permute.xlu0 %300 }
  0xa0   : > { %v6959_v35 = vsel %vm308_vm0, %v299_v27, %v301_v34  ;;  %v6962_v36 = vsel %vm308_vm0, %v301_v34, %v303_v33 }
  0xa1   : > { %v6203_v37 = vpack.i.bf16 %v6962_v36, %v6959_v35 }
  0xa3   : > { %6129 = vrot.lane.b32.xlu1 %v6098_v20, %s6792_s17  ;;  %6124 = vrot.lane.b32.xlu0 %v6103_v26, %s6791_s16  ;;  %v307_v38 = vpop.permute.xlu1 %306  ;;  %v305_v39 = vpop.permute.xlu0 %304 }
  0xa4   : > { %v6987_v40 = vsel %vm308_vm0, %v303_v33, %v305_v39  ;;  %v6990_v41 = vsel %vm308_vm0, %v305_v39, %v307_v38  ;;  %v334_v43 = vsel %vm308_vm0, %v307_v38, 0.0 }
  0xa5   : > { %v6258_v42 = vpack.i.bf16 %v6990_v41, %v6987_v40  ;;  %v6288_v44 = vpack.i.bf16 %v6987_v40, %v6962_v36  ;;  %v6298_v45 = vpack.i.bf16 %v334_v43, %v6990_v41 }
  0xa7   : > { %6139 = vrot.lane.b32.xlu1 %v6093_v21, %s6793_s18  ;;  %6134 = vrot.lane.b32.xlu0 %v6103_v26, %s6792_s17 }
  0xab   : > { %6149 = vrot.lane.b32.xlu1 %v6098_v20, %s6793_s18  ;;  %6144 = vrot.lane.b32.xlu0 %v6093_v21, %s6794_s19 }
  0xaf   : > { %6159 = vrot.lane.b32.xlu1 %v6098_v20, %s6794_s19  ;;  %6154 = vrot.lane.b32.xlu0 %v6103_v26, %s6793_s18 }
  0xb3   : > { %6169 = vrot.lane.b32.xlu1 %v6093_v21, %s6795_s20  ;;  %6164 = vrot.lane.b32.xlu0 %v6103_v26, %s6794_s19 }
  0xb7   : > { %6179 = vrot.lane.b32.xlu1 %v6098_v20, %s6795_s20  ;;  %6174 = vrot.lane.b32.xlu0 %v6093_v21, %s6796_s26 }
  0xbb   : > { %6189 = vrot.lane.b32.xlu1 %v6098_v20, %s6796_s26  ;;  %6184 = vrot.lane.b32.xlu0 %v6103_v26, %s6795_s20 }
  0xbf   : > { %6194 = vrot.lane.b32.xlu0 %v6103_v26, %s6796_s26  ;;  %6199 = vrot.lane.b32.xlu1 %v6198_v31, %s6790_s15 }
  0xc3   : > { %696 = vrot.lane.b32.xlu0 %v6910_v18, %s6798_s28  ;;  %698 = vrot.lane.b32.xlu1 %v6913_v19, %s6798_s28 }
  0xc7   : > { %694 = vrot.lane.b32.xlu1 %v333_v16, %s6798_s28  ;;  %6204 = vrot.lane.b32.xlu0 %v6203_v37, %s6790_s15 }
  0xcb   : > { %702 = vrot.lane.b32.xlu1 %v6921_v24, %s6798_s28  ;;  %700 = vrot.lane.b32.xlu0 %v6906_v17, %s6798_s28 }
  0xcf   : > { %6214 = vrot.lane.b32.xlu1 %v6198_v31, %s6792_s17  ;;  %6209 = vrot.lane.b32.xlu0 %v6198_v31, %s6791_s16 }
  0xd3   : > { %6224 = vrot.lane.b32.xlu1 %v6203_v37, %s6792_s17  ;;  %6219 = vrot.lane.b32.xlu0 %v6203_v37, %s6791_s16 }
  0xd7   : > { %6234 = vrot.lane.b32.xlu1 %v6198_v31, %s6794_s19  ;;  %6229 = vrot.lane.b32.xlu0 %v6198_v31, %s6793_s18 }
  0xdb   : > { %6244 = vrot.lane.b32.xlu1 %v6203_v37, %s6794_s19  ;;  %6239 = vrot.lane.b32.xlu0 %v6203_v37, %s6793_s18 }
  0xdf   : > { %6254 = vrot.lane.b32.xlu1 %v6198_v31, %s6796_s26  ;;  %6249 = vrot.lane.b32.xlu0 %v6198_v31, %s6795_s20 }
  0xe3   : > { %659 = vrot.lane.b32.xlu1 %v6959_v35, %s6796_s26  ;;  %608 = vrot.lane.b32.xlu0 %v6959_v35, %s6795_s20 }
  0xe7   : > { %704 = vrot.lane.b32.xlu1 %v6924_v25, %s6798_s28  ;;  %6259 = vrot.lane.b32.xlu0 %v6258_v42, %s6790_s15 }
  0xeb   : > { %361 = vrot.lane.b32.xlu1 %v334_v43, %s6790_s15  ;;  %706 = vrot.lane.b32.xlu0 %v6945_v29, %s6798_s28 }
  0xef   : > { %710 = vrot.lane.b32.xlu1 %v6959_v35, %s6798_s28  ;;  %708 = vrot.lane.b32.xlu0 %v6948_v30, %s6798_s28 }
  0xf3   : > { %6269 = vrot.lane.b32.xlu1 %v6258_v42, %s6792_s17  ;;  %6264 = vrot.lane.b32.xlu0 %v6258_v42, %s6791_s16 }
  0xf7   : > { %463 = vrot.lane.b32.xlu1 %v334_v43, %s6792_s17  ;;  %412 = vrot.lane.b32.xlu0 %v334_v43, %s6791_s16 }
  0xfb   : > { %6279 = vrot.lane.b32.xlu1 %v6258_v42, %s6794_s19  ;;  %6274 = vrot.lane.b32.xlu0 %v6258_v42, %s6793_s18 }
  0xff   : > { %565 = vrot.lane.b32.xlu1 %v334_v43, %s6794_s19  ;;  %514 = vrot.lane.b32.xlu0 %v334_v43, %s6793_s18 }
 0x103   : > { %6289 = vrot.lane.b32.xlu1 %v6288_v44, %s6796_s26  ;;  %6284 = vrot.lane.b32.xlu0 %v6288_v44, %s6795_s20 }
 0x107   : > { %6299 = vrot.lane.b32.xlu1 %v6298_v45, %s6796_s26  ;;  %6294 = vrot.lane.b32.xlu0 %v6298_v45, %s6795_s20 }
 0x109   : > { %v6100_v47 = vpop.permute.xlu1 %6099  ;;  %v6095_v48 = vpop.permute.xlu0 %6094 }
 0x10a   : > { %v6101_v49 = vunpack.i.l.bf16 %v6100_v47  ;;  %v6097_v50 = vunpack.i.h.bf16 %v6095_v48  ;;  %v6096_v51 = vunpack.i.l.bf16 %v6095_v48  ;;  %v6102_v52 = vunpack.i.h.bf16 %v6100_v47 }
 0x10b   : > { %714 = vrot.lane.b32.xlu1 %v6987_v40, %s6798_s28  ;;  %712 = vrot.lane.b32.xlu0 %v6962_v36, %s6798_s28 }
 0x10c   : > { %v365_v53 = vsel %vm363_vm1, %v6096_v51, %v6097_v50  ;;  %v364_v54 = vsel %vm363_vm1, %v6101_v49, %v6096_v51  ;;  %v366_v61 = vsel %vm363_vm1, %v6097_v50, %v6102_v52 }
 0x10d   : > { %v6110_v55 = vpop.permute.xlu1 %6109  ;;  %v7031_v56 = vpop.permute.xlu0 %6104  ;;  %v5366_v57 = vpack.c.bf16 %v365_v53, %v6910_v18  ;;  %v5368_v58 = vpack.c.bf16 %v364_v54, %v6901_v13  ;;  %v5385_v7 = vpack.c.bf16 %v366_v61, %v6913_v19 }
 0x10e   : > { %v6106_v59 = vunpack.i.l.bf16 %v7031_v56  ;;  %v6112_v62 = vunpack.i.h.bf16 %v6110_v55  ;;  %v6111_v63 = vunpack.i.l.bf16 %v6110_v55 }
 0x10f   : > { %718 = vrot.lane.b32.xlu1 %v334_v43, %s6798_s28  ;;  %716 = vrot.lane.b32.xlu0 %v6990_v41, %s6798_s28 }
 0x110   : > { %5367 = vmatprep.subr.bf16.mxu0 %v5366_v57  ;;  %v367_v0 = vsel %vm363_vm1, %v6102_v52, %v6106_v59  ;;  %v416_v9 = vsel %vm414_vm5, %v6111_v63, %v6112_v62 }
 0x111   : > { %5370 = vmatpush1.bf16.msk.msra.mxu0 %vm7036_vm4, %v5368_v58  ;;  %v6120_v2 = vpop.permute.xlu1 %6119  ;;  %v6115_v3 = vpop.permute.xlu0 %6114  ;;  %v5383_v4 = vpack.c.bf16 %v367_v0, %v6906_v17 }
 0x112   : > { %v6117_v5 = vunpack.i.h.bf16 %v6115_v3  ;;  %v6116_v6 = vunpack.i.l.bf16 %v6115_v3  ;;  %v6121_v8 = vunpack.i.l.bf16 %v6120_v2  ;;  %v6122_v19 = vunpack.i.h.bf16 %v6120_v2 }
 0x113   : > { %5384 = vmatprep.subr.bf16.mxu1 %v5383_v4  ;;  %749 = vperm.xlu0 %6303, %v746_v1  }
 0x114   : > { %5386 = vmatpush1.bf16.msra.mxu1 %v5385_v7  ;;  %v467_v10 = vsel %vm465_vm6, %v6116_v6, %v6117_v5  ;;  %v415_v17 = vsel %vm414_vm5, %v6121_v8, %v6111_v63  ;;  %v417_v39 = vsel %vm414_vm5, %v6112_v62, %v6122_v19 }
 0x115   : > { %v6130_v11 = vpop.permute.xlu1 %6129  ;;  %v7056_v12 = vpop.permute.xlu0 %6124  ;;  %v5371_v13 = vpack.c.bf16 %v467_v10, %v416_v9 }
 0x116   : > { %v6131_v14 = vunpack.i.l.bf16 %v6130_v11  ;;  %v6132_v15 = vunpack.i.h.bf16 %v6130_v11  ;;  %v6126_v16 = vunpack.i.l.bf16 %v7056_v12 }
 0x117   : > { %5372 = vmatprep.subr.bf16.mxu0 %v5371_v13 }
 0x118   : > { %v466_v18 = vsel %vm465_vm6, %v6131_v14, %v6116_v6  ;;  %v468_v26 = vsel %vm465_vm6, %v6117_v5, %v6132_v15  ;;  %v418_v31 = vsel %vm414_vm5, %v6122_v19, %v6126_v16 }
 0x119   : > { %v6140_v20 = vpop.permute.xlu1 %6139  ;;  %v7061_v21 = vpop.permute.xlu0 %6134  ;;  %v5373_v22 = vpack.c.bf16 %v466_v18, %v415_v17  ;;  %v5389_v44 = vpack.c.bf16 %v468_v26, %v417_v39 }
 0x11a   : > { %v6136_v23 = vunpack.i.l.bf16 %v7061_v21  ;;  %v6142_v27 = vunpack.i.h.bf16 %v6140_v20  ;;  %v6141_v28 = vunpack.i.l.bf16 %v6140_v20 }
 0x11b   : > { %5374 = vmatpush1.bf16.msra.mxu0 %v5373_v22 }
 0x11c   : > { %v469_v33 = vsel %vm465_vm6, %v6132_v15, %v6136_v23  ;;  %v518_v46 = vsel %vm516_vm7, %v6141_v28, %v6142_v27 }
 0x11d   : > { %v6150_v34 = vpop.permute.xlu1 %6149  ;;  %v6145_v37 = vpop.permute.xlu0 %6144  ;;  %v5387_v38 = vpack.c.bf16 %v469_v33, %v418_v31 }
 0x11e   : > { %v6147_v42 = vunpack.i.h.bf16 %v6145_v37  ;;  %v6146_v43 = vunpack.i.l.bf16 %v6145_v37  ;;  %v6151_v45 = vunpack.i.l.bf16 %v6150_v34  ;;  %v6152_v57 = vunpack.i.h.bf16 %v6150_v34 }
 0x11f   : > { %5388 = vmatprep.subr.bf16.mxu1 %v5387_v38 }
 0x120   : > { %5390 = vmatpush1.bf16.msra.mxu1 %v5389_v44  ;;  %v569_v47 = vsel %vm567_vm8, %v6146_v43, %v6147_v42  ;;  %v517_v54 = vsel %vm516_vm7, %v6151_v45, %v6141_v28  ;;  %v519_v8 = vsel %vm516_vm7, %v6142_v27, %v6152_v57 }
 0x121   : > { %v6160_v48 = vpop.permute.xlu1 %6159  ;;  %v7074_v49 = vpop.permute.xlu0 %6154  ;;  %v5375_v50 = vpack.c.bf16 %v569_v47, %v518_v46 }
 0x122   : > { %v6161_v51 = vunpack.i.l.bf16 %v6160_v48  ;;  %v6162_v52 = vunpack.i.h.bf16 %v6160_v48  ;;  %v6156_v53 = vunpack.i.l.bf16 %v7074_v49 }
 0x123   : > { %5376 = vmatprep.subr.bf16.mxu0 %v5375_v50 }
 0x124   : > { %v568_v55 = vsel %vm567_vm8, %v6161_v51, %v6146_v43  ;;  %v570_v0 = vsel %vm567_vm8, %v6147_v42, %v6162_v52  ;;  %v520_v3 = vsel %vm516_vm7, %v6152_v57, %v6156_v53  ;;  %v6107_v43 = vunpack.i.h.bf16 %v7031_v56 }
 0x125   : > { %v6170_v58 = vpop.permute.xlu1 %6169  ;;  %v7079_v61 = vpop.permute.xlu0 %6164  ;;  %v5377_v62 = vpack.c.bf16 %v568_v55, %v517_v54  ;;  %v5393_v11 = vpack.c.bf16 %v570_v0, %v519_v8  ;;  %v7119_v0 = vld [vmem:[%s10278_s2] sm:$0xff] }
 0x126   : > { %v6166_v63 = vunpack.i.l.bf16 %v7079_v61  ;;  %v6172_v1 = vunpack.i.h.bf16 %v6170_v58  ;;  %v6171_v2 = vunpack.i.l.bf16 %v6170_v58  ;;  %v368_v55 = vsel %vm363_vm1, %v6106_v59, %v6107_v43 }
 0x127   : > { %5378 = vmatpush1.bf16.msra.mxu0 %v5377_v62  ;;  %v5401_v56 = vpack.c.bf16 %v368_v55, %v6921_v24 }
 0x128   : > { %v571_v4 = vsel %vm567_vm8, %v6162_v52, %v6166_v63  ;;  %v620_v14 = vsel %vm618_vm9, %v6171_v2, %v6172_v1 }
 0x129   : > { %v6180_v5 = vpop.permute.xlu1 %6179  ;;  %v6175_v6 = vpop.permute.xlu0 %6174  ;;  %v5391_v7 = vpack.c.bf16 %v571_v4, %v520_v3  ;;  %v6137_v4 = vunpack.i.h.bf16 %v7061_v21 }
 0x12a   : > { %v6177_v9 = vunpack.i.h.bf16 %v6175_v6  ;;  %v6176_v10 = vunpack.i.l.bf16 %v6175_v6  ;;  %v6181_v13 = vunpack.i.l.bf16 %v6180_v5  ;;  %v6182_v31 = vunpack.i.h.bf16 %v6180_v5 }
 0x12b   : > { %5392 = vmatprep.subr.bf16.mxu1 %v5391_v7 }
 0x12c   : > { %5394 = vmatpush1.bf16.msra.mxu1 %v5393_v11  ;;  %v671_v15 = vsel %vm669_vm10, %v6176_v10, %v6177_v9  ;;  %v619_v27 = vsel %vm618_vm9, %v6181_v13, %v6171_v2  ;;  %v621_v50 = vsel %vm618_vm9, %v6172_v1, %v6182_v31  ;;  %v470_v11 = vsel %vm465_vm6, %v6136_v23, %v6137_v4 }
 0x12d   : > { %v6190_v17 = vpop.permute.xlu1 %6189  ;;  %v7092_v18 = vpop.permute.xlu0 %6184  ;;  %v5379_v19 = vpack.c.bf16 %v671_v15, %v620_v14  ;;  %v6167_v23 = vunpack.i.h.bf16 %v7079_v61 }
 0x12e   : > { %v6191_v20 = vunpack.i.l.bf16 %v6190_v17  ;;  %v6192_v22 = vunpack.i.h.bf16 %v6190_v17  ;;  %v6186_v26 = vunpack.i.l.bf16 %v7092_v18 }
 0x12f   : > { %5380 = vmatprep.subr.bf16.mxu0 %v5379_v19 }
 0x130   : > { %v670_v28 = vsel %vm669_vm10, %v6191_v20, %v6176_v10  ;;  %v672_v42 = vsel %vm669_vm10, %v6177_v9, %v6192_v22  ;;  %v622_v44 = vsel %vm618_vm9, %v6182_v31, %v6186_v26  ;;  %v6127_v9 = vunpack.i.h.bf16 %v7056_v12 }
 0x131   : > { %v6200_v33 = vpop.permute.xlu1 %6199  ;;  %v7097_v34 = vpop.permute.xlu0 %6194  ;;  %v5381_v37 = vpack.c.bf16 %v670_v28, %v619_v27  ;;  %v5397_v52 = vpack.c.bf16 %v672_v42, %v621_v50 }
 0x132   : > { %v6196_v38 = vunpack.i.l.bf16 %v7097_v34  ;;  %v6201_v39 = vunpack.i.l.bf16 %v6200_v33  ;;  %v6202_v57 = vunpack.i.h.bf16 %v6200_v33 }
 0x133   : > { %5382 = vmatpush1.bf16.msra.mxu0 %v5381_v37 }
 0x134   : > { %v673_v45 = vsel %vm669_vm10, %v6192_v22, %v6196_v38  ;;  %v369_v54 = vsel %vm363_vm1, %v6107_v43, %v6201_v39  ;;  %v370_v5 = vsel %vm363_vm1, %v6201_v39, %v6202_v57  ;;  %v6157_v39 = vunpack.i.h.bf16 %v7074_v49 }
 0x135   : > { %v699_v46 = vpop.permute.xlu1 %698  ;;  %v697_v47 = vpop.permute.xlu0 %696  ;;  %v5395_v48 = vpack.c.bf16 %v673_v45, %v622_v44  ;;  %v5399_v3 = vpack.c.bf16 %v369_v54, %v6924_v25  ;;  %v5417_v10 = vpack.c.bf16 %v370_v5, %v6945_v29  ;;  %v419_v29 = vsel %vm414_vm5, %v6126_v16, %v6127_v9 }
 0x136   : > { %v722_v51 = vsel %vm720_vm11, %v697_v47, %v699_v46  ;;  %v5405_v31 = vpack.c.bf16 %v470_v11, %v419_v29  ;;  %v572_v44 = vsel %vm567_vm8, %v6166_v63, %v6167_v23  ;;  %v521_v55 = vsel %vm516_vm7, %v6156_v53, %v6157_v39 }
 0x137   : > { %772 = vmatprep.subr.mxu0 %v722_v51  ;;  %5396 = vmatprep.subr.bf16.mxu1 %v5395_v48  ;;  %v6197_v53 = vunpack.i.h.bf16 %v7097_v34 }
 0x138   : > { %5398 = vmatpush1.bf16.msra.mxu1 %v5397_v52 }
 0x139   : > { %v695_v58 = vpop.permute.xlu1 %694  ;;  %v7114_v62 = vpop.permute.xlu0 %6204 }
 0x13a   : > { %v6206_v1 = vunpack.i.l.bf16 %v7114_v62  ;;  %v721_v2 = vsel %vm720_vm11, %v695_v58, %v697_v47 }
 0x13b   : > { %773 = vmatpush1.msra.mxu0 %v721_v2 }
 0x13c   : > { %4915 = vmatmul.mubr.msk.f32.vlgmr.msra.gmra.mrb[0].mxu0 %vm752_vm12, %v7119_v0  ;;  %5400 = vmatprep.subr.bf16.mxu0 %v5399_v3  ;;  %v371_v59 = vsel %vm363_vm1, %v6202_v57, %v6206_v1  ;;  %v5409_v3 = vpack.c.bf16 %v572_v44, %v521_v55 }
 0x13d   : > { %v7132_v6 = vpop.permute.xlu1 %702  ;;  %v701_v7 = vpop.permute.xlu0 %700  ;;  %5402 = vmatpush1.bf16.msra.mxu0 %v5401_v56  ;;  %962 = vmatprep.mubr.f32.mxu0 %v6797_v32  ;;  %v5415_v8 = vpack.c.bf16 %v371_v59, %v6948_v30 }
 0x13e   : > { %v724_v24 = vsel %vm720_vm11, %v701_v7, %v7132_v6  ;;  %v723_v25 = vsel %vm720_vm11, %v699_v46, %v701_v7 }
 0x13f   : > { %843 = vmatprep.subr.mxu1 %v724_v24  ;;  %v6187_v24 = vunpack.i.h.bf16 %v7092_v18 }
 0x140   : > { %844 = vmatpush1.msra.mxu1 %v723_v25 }
 0x141   : > { %v6215_v13 = vpop.permute.xlu1 %6214  ;;  %v6210_v14 = vpop.permute.xlu0 %6209  ;;  %4916 = vmatmul.mubr.msk.f32.vlgmr.msra.gmra.mrb[0].mxu1 %vm752_vm12, %v7119_v0  ;;  %5416 = vmatprep.subr.bf16.mxu1 %v5415_v8  ;;  %v623_v29 = vsel %vm618_vm9, %v6186_v26, %v6187_v24 }
 0x142   : > { %v6217_v15 = vunpack.i.h.bf16 %v6215_v13  ;;  %v6216_v17 = vunpack.i.l.bf16 %v6215_v13  ;;  %v6212_v19 = vunpack.i.h.bf16 %v6210_v14  ;;  %v6211_v20 = vunpack.i.l.bf16 %v6210_v14  ;;  %5418 = vmatpush1.bf16.msra.mxu1 %v5417_v10  ;;  %1033 = vmatprep.mubr.f32.mxu1 %v6797_v32 }
 0x144   : > { %v420_v30 = vsel %vm414_vm5, %v6127_v9, %v6211_v20  ;;  %v471_v21 = vsel %vm465_vm6, %v6137_v4, %v6216_v17  ;;  %v472_v33 = vsel %vm465_vm6, %v6216_v17, %v6217_v15  ;;  %v421_v37 = vsel %vm414_vm5, %v6211_v20, %v6212_v19 }
 0x145   : > { %v7153_v22 = vpop.permute.xlu1 %6224  ;;  %v7155_v27 = vpop.permute.xlu0 %6219  ;;  %v5403_v28 = vpack.c.bf16 %v471_v21, %v420_v30  ;;  %v5421_v48 = vpack.c.bf16 %v472_v33, %v421_v37  ;;  %v674_v17 = vsel %vm669_vm10, %v6196_v38, %v6197_v53  ;;  %v6207_v37 = vunpack.i.h.bf16 %v7114_v62 }
 0x146   : > { %v6226_v12 = vunpack.i.l.bf16 %v7153_v22  ;;  %v6221_v16 = vunpack.i.l.bf16 %v7155_v27  ;;  %v5413_v33 = vpack.c.bf16 %v674_v17, %v623_v29 }
 0x147   : > { %5404 = vmatprep.subr.bf16.mxu0 %v5403_v28 }
 0x148   : > { %5406 = vmatpush1.bf16.msra.mxu0 %v5405_v31  ;;  %v422_v42 = vsel %vm414_vm5, %v6212_v19, %v6221_v16  ;;  %v473_v43 = vsel %vm465_vm6, %v6217_v15, %v6226_v12 }
 0x149   : > { %v6235_v45 = vpop.permute.xlu1 %6234  ;;  %v6230_v46 = vpop.permute.xlu0 %6229  ;;  %v5419_v47 = vpack.c.bf16 %v473_v43, %v422_v42 }
 0x14a   : > { %v6237_v50 = vunpack.i.h.bf16 %v6235_v45  ;;  %v6236_v51 = vunpack.i.l.bf16 %v6235_v45  ;;  %v6232_v52 = vunpack.i.h.bf16 %v6230_v46  ;;  %v6231_v54 = vunpack.i.l.bf16 %v6230_v46 }
 0x14b   : > { %5420 = vmatprep.subr.bf16.mxu1 %v5419_v47  ;;  %v372_v45 = vsel %vm363_vm1, %v6206_v1, %v6207_v37 }
 0x14c   : > { %5422 = vmatpush1.bf16.msra.mxu1 %v5421_v48  ;;  %v522_v57 = vsel %vm516_vm7, %v6157_v39, %v6231_v54  ;;  %v573_v61 = vsel %vm567_vm8, %v6167_v23, %v6236_v51  ;;  %v574_v56 = vsel %vm567_vm8, %v6236_v51, %v6237_v50  ;;  %v523_v59 = vsel %vm516_vm7, %v6231_v54, %v6232_v52 }
 0x14d   : > { %v7176_v58 = vpop.permute.xlu1 %6244  ;;  %v7178_v63 = vpop.permute.xlu0 %6239  ;;  %v5407_v2 = vpack.c.bf16 %v573_v61, %v522_v57  ;;  %v5425_v10 = vpack.c.bf16 %v574_v56, %v523_v59  ;;  %v5433_v55 = vpack.c.bf16 %v372_v45, %v6959_v35  ;;  %v6227_v61 = vunpack.i.h.bf16 %v7153_v22 }
 0x14e   : > { %v6246_v4 = vunpack.i.l.bf16 %v7176_v58  ;;  %v6241_v49 = vunpack.i.l.bf16 %v7178_v63  ;;  %v6222_v35 = vunpack.i.h.bf16 %v7155_v27  ;;  %v6247_v27 = vunpack.i.h.bf16 %v7176_v58 }
 0x14f   : > { %5408 = vmatprep.subr.bf16.mxu0 %v5407_v2 }
 0x150   : > { %5410 = vmatpush1.bf16.msra.mxu0 %v5409_v3  ;;  %v524_v5 = vsel %vm516_vm7, %v6232_v52, %v6241_v49  ;;  %v575_v7 = vsel %vm567_vm8, %v6237_v50, %v6246_v4 }
 0x151   : > { %v6255_v25 = vpop.permute.xlu1 %6254  ;;  %v6250_v8 = vpop.permute.xlu0 %6249  ;;  %v5423_v9 = vpack.c.bf16 %v575_v7, %v524_v5 }
 0x152   : > { %v6257_v11 = vunpack.i.h.bf16 %v6255_v25  ;;  %v6256_v13 = vunpack.i.l.bf16 %v6255_v25  ;;  %v6252_v14 = vunpack.i.h.bf16 %v6250_v8  ;;  %v6251_v15 = vunpack.i.l.bf16 %v6250_v8 }
 0x153   : > { %5424 = vmatprep.subr.bf16.mxu1 %v5423_v9 }
 0x154   : > { %5426 = vmatpush1.bf16.msra.mxu1 %v5425_v10  ;;  %v624_v19 = vsel %vm618_vm9, %v6187_v24, %v6251_v15  ;;  %v675_v20 = vsel %vm669_vm10, %v6197_v53, %v6256_v13  ;;  %v676_v30 = vsel %vm669_vm10, %v6256_v13, %v6257_v11  ;;  %v625_v21 = vsel %vm618_vm9, %v6251_v15, %v6252_v14 }
 0x155   : > { %v7202_v23 = vpop.permute.xlu1 %659  ;;  %v7204_v28 = vpop.permute.xlu0 %608  ;;  %v5411_v34 = vpack.c.bf16 %v675_v20, %v624_v19  ;;  %v5429_v26 = vpack.c.bf16 %v676_v30, %v625_v21 }
 0x156   : > { %v677_v38 = vsel %vm669_vm10, %v6257_v11, %v7202_v23  ;;  %v626_v31 = vsel %vm618_vm9, %v6252_v14, %v7204_v28 }
 0x157   : > { %5412 = vmatprep.subr.bf16.mxu0 %v5411_v34  ;;  %v5427_v18 = vpack.c.bf16 %v677_v38, %v626_v31  ;;  %v576_v31 = vsel %vm567_vm8, %v6246_v4, %v6247_v27 }
 0x158   : > { %5414 = vmatpush1.bf16.msra.mxu0 %v5413_v33 }
 0x159   : > { %v705_v39 = vpop.permute.xlu1 %704  ;;  %v6260_v42 = vpop.permute.xlu0 %6259  ;;  %5428 = vmatprep.subr.bf16.mxu1 %v5427_v18 }
 0x15a   : > { %v6261_v43 = vunpack.i.l.bf16 %v6260_v42  ;;  %5430 = vmatpush1.bf16.msra.mxu1 %v5429_v26  ;;  %v6262_v46 = vunpack.i.h.bf16 %v6260_v42  ;;  %v725_v51 = vsel %vm720_vm11, %v7132_v6, %v705_v39 }
 0x15c   : > { %v373_v44 = vsel %vm363_vm1, %v6207_v37, %v6261_v43  ;;  %v374_v62 = vsel %vm363_vm1, %v6261_v43, %v6262_v46 }
 0x15d   : > { %v362_v47 = vpop.permute.xlu1 %361  ;;  %v707_v48 = vpop.permute.xlu0 %706  ;;  %v5431_v52 = vpack.c.bf16 %v373_v44, %v6962_v36  ;;  %v5449_v3 = vpack.c.bf16 %v374_v62, %v6987_v40  ;;  %v423_v40 = vsel %vm414_vm5, %v6221_v16, %v6222_v35  ;;  %v6242_v16 = vunpack.i.h.bf16 %v7178_v63 }
 0x15e   : > { %v726_v50 = vsel %vm720_vm11, %v705_v39, %v707_v48  ;;  %v375_v54 = vsel %vm363_vm1, %v6262_v46, %v362_v47 }
 0x15f   : > { %914 = vmatprep.subr.mxu0 %v726_v50  ;;  %v5447_v2 = vpack.c.bf16 %v375_v54, %v6990_v41  ;;  %v474_v41 = vsel %vm465_vm6, %v6226_v12, %v6227_v61  ;;  %v525_v33 = vsel %vm516_vm7, %v6241_v49, %v6242_v16 }
 0x160   : > { %915 = vmatpush1.msra.mxu0 %v725_v51  ;;  %v5437_v12 = vpack.c.bf16 %v474_v41, %v423_v40  ;;  %v5441_v4 = vpack.c.bf16 %v576_v31, %v525_v33 }
 0x161   : > { %v7222_v57 = vpop.permute.xlu1 %710  ;;  %v709_v1 = vpop.permute.xlu0 %708  ;;  %4917 = vmatmul.mubr.msk.f32.vlgmr.msra.gmra.mrb[2].mxu0 %vm752_vm12, %v7119_v0  ;;  %5432 = vmatprep.subr.bf16.mxu0 %v5431_v52 }
 0x162   : > { %5434 = vmatpush1.bf16.msra.mxu0 %v5433_v55  ;;  %v728_v6 = vsel %vm720_vm11, %v709_v1, %v7222_v57  ;;  %v727_v36 = vsel %vm720_vm11, %v707_v48, %v709_v1  ;;  %1104 = vmatprep.mubr.f32.mxu0 %v6797_v32 }
 0x163   : > { %985 = vmatprep.subr.mxu1 %v728_v6 }
 0x164   : > { %986 = vmatpush1.msra.mxu1 %v727_v36 }
 0x165   : > { %v6270_v56 = vpop.permute.xlu1 %6269  ;;  %v6265_v59 = vpop.permute.xlu0 %6264  ;;  %4918 = vmatmul.mubr.msk.f32.vlgmr.msra.gmra.mrb[2].mxu1 %vm752_vm12, %v7119_v0  ;;  %5448 = vmatprep.subr.bf16.mxu1 %v5447_v2 }
 0x166   : > { %v6272_v53 = vunpack.i.h.bf16 %v6270_v56  ;;  %v6271_v5 = vunpack.i.l.bf16 %v6270_v56  ;;  %v6267_v7 = vunpack.i.h.bf16 %v6265_v59  ;;  %v6266_v24 = vunpack.i.l.bf16 %v6265_v59  ;;  %5450 = vmatpush1.bf16.msra.mxu1 %v5449_v3  ;;  %1175 = vmatprep.mubr.f32.mxu1 %v6797_v32 }
 0x168   : > { %v424_v25 = vsel %vm414_vm5, %v6222_v35, %v6266_v24  ;;  %v475_v8 = vsel %vm465_vm6, %v6227_v61, %v6271_v5  ;;  %v476_v9 = vsel %vm465_vm6, %v6271_v5, %v6272_v53  ;;  %v425_v10 = vsel %vm414_vm5, %v6266_v24, %v6267_v7 }
 0x169   : > { %v464_v11 = vpop.permute.xlu1 %463  ;;  %v413_v13 = vpop.permute.xlu0 %412  ;;  %v5435_v14 = vpack.c.bf16 %v475_v8, %v424_v25  ;;  %v5453_v19 = vpack.c.bf16 %v476_v9, %v425_v10 }
 0x16a   : > { %v477_v15 = vsel %vm465_vm6, %v6272_v53, %v464_v11  ;;  %v426_v22 = vsel %vm414_vm5, %v6267_v7, %v413_v13 }
 0x16b   : > { %v5451_v17 = vpack.c.bf16 %v477_v15, %v426_v22  ;;  %5436 = vmatprep.subr.bf16.mxu0 %v5435_v14 }
 0x16c   : > { %5438 = vmatpush1.bf16.msra.mxu0 %v5437_v12  ;;  %v255_v12 = vld [vmem:[%s10277_s1] sm:$0xff] }
 0x16d   : > { %v6280_v20 = vpop.permute.xlu1 %6279  ;;  %v6275_v29 = vpop.permute.xlu0 %6274  ;;  %5452 = vmatprep.subr.bf16.mxu1 %v5451_v17 }
 0x16e   : > { %v6282_v30 = vunpack.i.h.bf16 %v6280_v20  ;;  %v6281_v21 = vunpack.i.l.bf16 %v6280_v20  ;;  %v6277_v34 = vunpack.i.h.bf16 %v6275_v29  ;;  %v6276_v38 = vunpack.i.l.bf16 %v6275_v29  ;;  %5454 = vmatpush1.bf16.msra.mxu1 %v5453_v19 }
 0x170   : > { %v526_v18 = vsel %vm516_vm7, %v6242_v16, %v6276_v38  ;;  %v577_v26 = vsel %vm567_vm8, %v6247_v27, %v6281_v21  ;;  %v578_v37 = vsel %vm567_vm8, %v6281_v21, %v6282_v30  ;;  %v527_v39 = vsel %vm516_vm7, %v6276_v38, %v6277_v34 }
 0x171   : > { %v566_v42 = vpop.permute.xlu1 %565  ;;  %v515_v43 = vpop.permute.xlu0 %514  ;;  %v5439_v44 = vpack.c.bf16 %v577_v26, %v526_v18  ;;  %v5457_v63 = vpack.c.bf16 %v578_v37, %v527_v39 }
 0x172   : > { %v579_v45 = vsel %vm567_vm8, %v6282_v30, %v566_v42  ;;  %v528_v58 = vsel %vm516_vm7, %v6277_v34, %v515_v43 }
 0x173   : > { %v5455_v46 = vpack.c.bf16 %v579_v45, %v528_v58  ;;  %5440 = vmatprep.subr.bf16.mxu0 %v5439_v44 }
 0x174   : > { %5442 = vmatpush1.bf16.msra.mxu0 %v5441_v4 }
 0x175   : > { %v6290_v49 = vpop.permute.xlu1 %6289  ;;  %v6285_v47 = vpop.permute.xlu0 %6284  ;;  %5456 = vmatprep.subr.bf16.mxu1 %v5455_v46 }
 0x176   : > { %v6292_v48 = vunpack.i.h.bf16 %v6290_v49  ;;  %v6291_v50 = vunpack.i.l.bf16 %v6290_v49  ;;  %v6287_v51 = vunpack.i.h.bf16 %v6285_v47  ;;  %v6286_v52 = vunpack.i.l.bf16 %v6285_v47  ;;  %5458 = vmatpush1.bf16.msra.mxu1 %v5457_v63 }
 0x178   : > { %v678_v54 = vsel %vm669_vm10, %v7202_v23, %v6291_v50  ;;  %v627_v55 = vsel %vm618_vm9, %v7204_v28, %v6286_v52  ;;  %v628_v62 = vsel %vm618_vm9, %v6286_v52, %v6287_v51  ;;  %v679_v1 = vsel %vm669_vm10, %v6291_v50, %v6292_v48 }
 0x179   : > { %v6300_v6 = vpop.permute.xlu1 %6299  ;;  %v6295_v36 = vpop.permute.xlu0 %6294  ;;  %v5443_v61 = vpack.c.bf16 %v679_v1, %v628_v62  ;;  %v5445_v35 = vpack.c.bf16 %v678_v54, %v627_v55 }
 0x17a   : > { %v6302_v2 = vunpack.i.h.bf16 %v6300_v6  ;;  %v6301_v3 = vunpack.i.l.bf16 %v6300_v6  ;;  %v6297_v56 = vunpack.i.h.bf16 %v6295_v36  ;;  %v6296_v59 = vunpack.i.l.bf16 %v6295_v36 }
 0x17b   : > { %5444 = vmatprep.subr.bf16.mxu0 %v5443_v61 }
 0x17c   : > { %v680_v53 = vsel %vm669_vm10, %v6292_v48, %v6301_v3  ;;  %v629_v23 = vsel %vm618_vm9, %v6287_v51, %v6296_v59  ;;  %5446 = vmatpush1.bf16.msra.mxu0 %v5445_v35  ;;  %v630_v28 = vsel %vm618_vm9, %v6296_v59, %v6297_v56  ;;  %v681_v5 = vsel %vm669_vm10, %v6301_v3, %v6302_v2 }
 0x17d   : > { %v715_v7 = vpop.permute.xlu1 %714  ;;  %v713_v24 = vpop.permute.xlu0 %712  ;;  %v5459_v41 = vpack.c.bf16 %v681_v5, %v630_v28  ;;  %v5461_v40 = vpack.c.bf16 %v680_v53, %v629_v23 }
 0x17e   : > { %v730_v25 = vsel %vm720_vm11, %v713_v24, %v715_v7  ;;  %v729_v8 = vsel %vm720_vm11, %v7222_v57, %v713_v24  ;;  %v1196_v57 = vlaneseq }
 0x17f   : > { %1056 = vmatprep.subr.mxu0 %v730_v25  ;;  %5460 = vmatprep.subr.bf16.mxu1 %v5459_v41 }
 0x180   : > { %1057 = vmatpush1.msra.mxu0 %v729_v8  ;;  %5462 = vmatpush1.bf16.msra.mxu1 %v5461_v40  ;;  %v7284_v14 = vshrl.u32 %v1196_v57, 7 }
 0x181   : > { %v719_v9 = vpop.permute.xlu1 %718  ;;  %v717_v10 = vpop.permute.xlu0 %716  ;;  %4919 = vmatmul.mubr.msk.f32.vlgmr.msra.gmra.mrb[4].mxu0 %vm752_vm12, %v7119_v0 }
 0x182   : > { %v732_v11 = vsel %vm720_vm11, %v717_v10, %v719_v9  ;;  %v731_v13 = vsel %vm720_vm11, %v715_v7, %v717_v10  ;;  %1808 = vmatprep.mubr.f32.mxu0 %v6797_v32  ;;  %v1198_v15 = vsub.s32 0, %v7284_v14  ;;  %v1206_v29 = vsub.s32 2, %v7284_v14  ;;  %v256_v7 = vld [vmem:[%s10277_s1 + $0x8] sm:$0xf] }
 0x183   : > { %1127 = vmatprep.subr.mxu1 %v732_v11  ;;  %v1210_v33 = vsub.s32 3, %v7284_v14  ;;  %v1214_v46 = vsub.s32 4, %v7284_v14  ;;  %v1218_v63 = vsub.s32 5, %v7284_v14  ;;  %v1222_v51 = vsub.s32 6, %v7284_v14 }
 0x184   : > { %1128 = vmatpush1.msra.mxu1 %v731_v13  ;;  %v7293_v17 = vrot.slane %v255_v12, %v1198_v15  ;;  %v7303_v26 = vrot.slane %v255_v12, %v1206_v29  ;;  %v1226_v55 = vsub.s32 7, %v7284_v14  ;;  %v7343_v40 = vrot.slane %v256_v7, %v1198_v15 }
 0x185   : > { %4920 = vmatmul.mubr.msk.f32.vlgmr.msra.gmra.mrb[4].mxu1 %vm752_vm12, %v7119_v0  ;;  %v1202_v0 = vsub.s32 1, %v7284_v14  ;;  %v7308_v45 = vrot.slane %v255_v12, %v1210_v33  ;;  %v7318_v48 = vrot.slane %v255_v12, %v1214_v46  ;;  %v7322_v54 = vrot.slane %v255_v12, %v1218_v63 }
 0x186   : > { %1879 = vmatprep.mubr.f32.mxu1 %v6797_v32  ;;  %v7327_v35 = vrot.slane %v255_v12, %v1222_v51  ;;  %v7331_v59 = vrot.slane %v255_v12, %v1226_v55 }
 0x187   : > { %v7299_v38 = vrot.slane %v255_v12, %v1202_v0  ;;  %v7346_v9 = vrot.slane %v256_v7, %v1202_v0  ;;  %v7350_v12 = vrot.slane %v256_v7, %v1206_v29 }
 0x192   : > { %v7287_v22 = vpop.permute.xlu0 %749 }
 0x20f   : > { %v822_v27 = vpop.f32.mrb[0].mxu0 }
 0x210   : > { %v823_v16 = vadd.f32 %v822_v27, %v7287_v22  ;;  %v824_v19 = vpop.f32.mrb[1].mxu0 }
 0x211   : > { %v825_v20 = vadd.f32 %v824_v19, %v7287_v22  ;;  %v7354_v19 = vrot.slane %v256_v7, %v1210_v33 }
 0x212   : > { %v1182_v30 = vmax.f32 %v823_v16, 0.0 }
 0x213   : > { %v1183_v34 = vmax.f32 %v825_v20, 0.0 }
 0x214   : > { %v1256_v21 = vmul.f32 %v7293_v17, %v1182_v30  ;;  %v893_v31 = vpop.f32.mrb[0].mxu1 }
 0x215   : > { %v894_v18 = vadd.f32 %v893_v31, %v7287_v22  ;;  %v895_v37 = vpop.f32.mrb[1].mxu1  ;;  %v1257_v43 = vmul.f32 %v7299_v38, %v1183_v34 }
 0x216   : > { %v896_v39 = vadd.f32 %v895_v37, %v7287_v22  ;;  %1280 = vrot.lane.b32.xlu1 %v1256_v21, %s6789_s14 }
 0x217   : > { %v1184_v42 = vmax.f32 %v894_v18, 0.0 }
 0x218   : > { %v1185_v44 = vmax.f32 %v896_v39, 0.0 }
 0x219   : > { %v1258_v58 = vmul.f32 %v7303_v26, %v1184_v42 }
 0x21a   : > { %1282 = vrot.lane.b32.xlu1 %v1257_v43, %s6789_s14  ;;  %v1259_v4 = vmul.f32 %v7308_v45, %v1185_v44 }
 0x21b   : > { %1284 = vrot.lane.b32.xlu0 %v1258_v58, %s6789_s14 }
 0x21e   : > { %1286 = vrot.lane.b32.xlu1 %v1259_v4, %s6789_s14 }
 0x234   : > { %v964_v49 = vpop.f32.mrb[2].mxu0 }
 0x235   : > { %v965_v47 = vadd.f32 %v964_v49, %v7287_v22  ;;  %v966_v50 = vpop.f32.mrb[3].mxu0 }
 0x236   : > { %v967_v52 = vadd.f32 %v966_v50, %v7287_v22 }
 0x237   : > { %v1186_v62 = vmax.f32 %v965_v47, 0.0 }
 0x238   : > { %v1187_v1 = vmax.f32 %v967_v52, 0.0  ;;  %v1035_v6 = vpop.f32.mrb[2].mxu1 }
 0x239   : > { %v1260_v36 = vmul.f32 %v7318_v48, %v1186_v62  ;;  %v1036_v61 = vadd.f32 %v1035_v6, %v7287_v22  ;;  %v1037_v2 = vpop.f32.mrb[3].mxu1 }
 0x23a   : > { %v1261_v3 = vmul.f32 %v7322_v54, %v1187_v1  ;;  %v1038_v56 = vadd.f32 %v1037_v2, %v7287_v22 }
 0x23b   : > { %v1188_v53 = vmax.f32 %v1036_v61, 0.0  ;;  %1288 = vrot.lane.b32.xlu0 %v1260_v36, %s6789_s14 }
 0x23c   : > { %v1189_v23 = vmax.f32 %v1038_v56, 0.0  ;;  %1290 = vrot.lane.b32.xlu1 %v1261_v3, %s6789_s14 }
 0x23d   : > { %v1262_v28 = vmul.f32 %v7327_v35, %v1188_v53 }
 0x23e   : > { %v1263_v5 = vmul.f32 %v7331_v59, %v1189_v23 }
 0x23f   : > { %1292 = vrot.lane.b32.xlu0 %v1262_v28, %s6789_s14 }
 0x240   : > { %1294 = vrot.lane.b32.xlu1 %v1263_v5, %s6789_s14 }
 0x254   : > { %v1106_v24 = vpop.f32.mrb[4].mxu0 }
 0x255   : > { %v1107_v41 = vadd.f32 %v1106_v24, %v7287_v22  ;;  %v1108_v25 = vpop.f32.mrb[5].mxu0 }
 0x256   : > { %v1109_v8 = vadd.f32 %v1108_v25, %v7287_v22 }
 0x257   : > { %v1190_v10 = vmax.f32 %v1107_v41, 0.0 }
 0x258   : > { %v1191_v11 = vmax.f32 %v1109_v8, 0.0  ;;  %v1177_v13 = vpop.f32.mrb[4].mxu1 }
 0x259   : > { %v1264_v57 = vmul.f32 %v7343_v40, %v1190_v10  ;;  %v1178_v14 = vadd.f32 %v1177_v13, %v7287_v22  ;;  %v1179_v27 = vpop.f32.mrb[5].mxu1 }
 0x25a   : > { %v1265_v16 = vmul.f32 %v7346_v9, %v1191_v11  ;;  %v1180_v15 = vadd.f32 %v1179_v27, %v7287_v22 }
 0x25b   : > { %v1192_v20 = vmax.f32 %v1178_v14, 0.0  ;;  %1296 = vrot.lane.b32.xlu0 %v1264_v57, %s6789_s14  ;;  %v4922_v57 = vld [vmem:[%s10279_s3 + $0x8] sm:$0xff] }
 0x25c   : > { %v1193_v0 = vmax.f32 %v1180_v15, 0.0  ;;  %1298 = vrot.lane.b32.xlu1 %v1265_v16, %s6789_s14 }
 0x25d   : > { %v1266_v30 = vmul.f32 %v7350_v12, %v1192_v20 }
 0x25e   : > { %v1267_v21 = vmul.f32 %v7354_v19, %v1193_v0 }
 0x25f   : > { %1300 = vrot.lane.b32.xlu0 %v1266_v30, %s6789_s14 }
 0x260   : > { %1302 = vrot.lane.b32.xlu1 %v1267_v21, %s6789_s14 }
 0x288   : > { %v7362_v29 = vpop.permute.xlu1 %1280 }
 0x289   : > { %v1328_v22 = vsel %vm308_vm0, 0.0, %v7362_v29 }
 0x28a   : > { %1682 = vrot.lane.b32.xlu0 %v1328_v22, %s6798_s28 }
 0x28c   : > { %v1283_v34 = vpop.permute.xlu1 %1282 }
 0x28d   : > { %v7369_v31 = vsel %vm308_vm0, %v7362_v29, %v1283_v34  ;;  %v1285_v33 = vpop.permute.xlu0 %1284 }
 0x28e   : > { %v7372_v18 = vsel %vm308_vm0, %v1283_v34, %v1285_v33 }
 0x28f   : > { %v6304_v37 = vpack.i.bf16 %v7372_v18, %v7369_v31 }
 0x290   : > { %v1287_v39 = vpop.permute.xlu1 %1286 }
 0x291   : > { %v7377_v42 = vsel %vm308_vm0, %v1285_v33, %v1287_v39  ;;  %6305 = vrot.lane.b32.xlu0 %v6304_v37, %s6790_s15 }
 0x292   : > { %v6309_v43 = vpack.i.bf16 %v7377_v42, %v1328_v22 }
 0x294   : > { %6310 = vrot.lane.b32.xlu1 %v6309_v43, %s6790_s15 }
 0x295   : > { %6315 = vrot.lane.b32.xlu0 %v6304_v37, %s6791_s16 }
 0x298   : > { %6320 = vrot.lane.b32.xlu1 %v6304_v37, %s6792_s17 }
 0x299   : > { %6325 = vrot.lane.b32.xlu0 %v6309_v43, %s6791_s16 }
 0x29c   : > { %6330 = vrot.lane.b32.xlu1 %v6309_v43, %s6792_s17 }
 0x29d   : > { %6335 = vrot.lane.b32.xlu0 %v6304_v37, %s6793_s18 }
 0x2a0   : > { %6340 = vrot.lane.b32.xlu1 %v6304_v37, %s6794_s19 }
 0x2a1   : > { %6345 = vrot.lane.b32.xlu0 %v6309_v43, %s6793_s18 }
 0x2a4   : > { %6350 = vrot.lane.b32.xlu1 %v6309_v43, %s6794_s19 }
 0x2a5   : > { %6355 = vrot.lane.b32.xlu0 %v6304_v37, %s6795_s20 }
 0x2a8   : > { %6360 = vrot.lane.b32.xlu1 %v6304_v37, %s6796_s26 }
 0x2a9   : > { %6365 = vrot.lane.b32.xlu0 %v6309_v43, %s6795_s20 }
 0x2ac   : > { %6370 = vrot.lane.b32.xlu1 %v6309_v43, %s6796_s26 }
 0x2ad   : > { %v1289_v44 = vpop.permute.xlu0 %1288  ;;  %1684 = vrot.lane.b32.xlu0 %v7369_v31, %s6798_s28 }
 0x2ae   : > { %v1291_v58 = vpop.permute.xlu1 %1290  ;;  %v7397_v4 = vsel %vm308_vm0, %v1287_v39, %v1289_v44 }
 0x2af   : > { %v7400_v46 = vsel %vm308_vm0, %v1289_v44, %v1291_v58 }
 0x2b0   : > { %1686 = vrot.lane.b32.xlu1 %v7372_v18, %s6798_s28  ;;  %v6374_v51 = vpack.i.bf16 %v7400_v46, %v7397_v4 }
 0x2b1   : > { %v1293_v63 = vpop.permute.xlu0 %1292  ;;  %1688 = vrot.lane.b32.xlu0 %v7377_v42, %s6798_s28 }
 0x2b2   : > { %v1295_v49 = vpop.permute.xlu1 %1294  ;;  %v7407_v47 = vsel %vm308_vm0, %v1291_v58, %v1293_v63 }
 0x2b3   : > { %v7410_v50 = vsel %vm308_vm0, %v1293_v63, %v1295_v49 }
 0x2b4   : > { %1690 = vrot.lane.b32.xlu1 %v7397_v4, %s6798_s28  ;;  %v6379_v52 = vpack.i.bf16 %v7410_v50, %v7407_v47 }
 0x2b5   : > { %6375 = vrot.lane.b32.xlu0 %v6374_v51, %s6790_s15 }
 0x2b8   : > { %6380 = vrot.lane.b32.xlu1 %v6379_v52, %s6790_s15 }
 0x2b9   : > { %6390 = vrot.lane.b32.xlu0 %v6374_v51, %s6792_s17 }
 0x2bc   : > { %6385 = vrot.lane.b32.xlu1 %v6374_v51, %s6791_s16 }
 0x2bd   : > { %6400 = vrot.lane.b32.xlu0 %v6379_v52, %s6792_s17 }
 0x2c0   : > { %6395 = vrot.lane.b32.xlu1 %v6379_v52, %s6791_s16 }
 0x2c1   : > { %6410 = vrot.lane.b32.xlu0 %v6374_v51, %s6794_s19 }
 0x2c4   : > { %6405 = vrot.lane.b32.xlu1 %v6374_v51, %s6793_s18 }
 0x2c5   : > { %6420 = vrot.lane.b32.xlu0 %v6379_v52, %s6794_s19 }
 0x2c8   : > { %6415 = vrot.lane.b32.xlu1 %v6379_v52, %s6793_s18 }
 0x2c9   : > { %6430 = vrot.lane.b32.xlu0 %v6374_v51, %s6796_s26 }
 0x2cc   : > { %6425 = vrot.lane.b32.xlu1 %v6374_v51, %s6795_s20 }
 0x2cd   : > { %v1297_v55 = vpop.permute.xlu0 %1296  ;;  %6440 = vrot.lane.b32.xlu0 %v6379_v52, %s6796_s26 }
 0x2ce   : > { %v1299_v62 = vpop.permute.xlu1 %1298  ;;  %v7438_v61 = vsel %vm308_vm0, %v1295_v49, %v1297_v55 }
 0x2cf   : > { %v7441_v2 = vsel %vm308_vm0, %v1297_v55, %v1299_v62 }
 0x2d0   : > { %6435 = vrot.lane.b32.xlu1 %v6379_v52, %s6795_s20  ;;  %v6444_v53 = vpack.i.bf16 %v7441_v2, %v7438_v61 }
 0x2d1   : > { %v1301_v1 = vpop.permute.xlu0 %1300  ;;  %1694 = vrot.lane.b32.xlu0 %v7407_v47, %s6798_s28 }
 0x2d2   : > { %v7435_v6 = vsel %vm308_vm0, %v1299_v62, %v1301_v1  ;;  %v1303_v36 = vpop.permute.xlu1 %1302 }
 0x2d3   : > { %v7444_v3 = vsel %vm308_vm0, %v1301_v1, %v1303_v36  ;;  %v1329_v23 = vsel %vm308_vm0, %v1303_v36, 0.0 }
 0x2d4   : > { %1692 = vrot.lane.b32.xlu1 %v7400_v46, %s6798_s28  ;;  %v6449_v56 = vpack.i.bf16 %v7444_v3, %v7435_v6  ;;  %v6484_v28 = vpack.i.bf16 %v1329_v23, %v7444_v3 }
 0x2d6   : > { %6450 = vrot.lane.b32.xlu0 %v6449_v56, %s6790_s15 }
 0x2d8   : > { %6445 = vrot.lane.b32.xlu1 %v6444_v53, %s6790_s15 }
 0x2da   : > { %6460 = vrot.lane.b32.xlu0 %v6444_v53, %s6792_s17 }
 0x2dc   : > { %6455 = vrot.lane.b32.xlu1 %v6444_v53, %s6791_s16 }
 0x2de   : > { %1452 = vrot.lane.b32.xlu0 %v7435_v6, %s6792_s17 }
 0x2e0   : > { %1402 = vrot.lane.b32.xlu1 %v7435_v6, %s6791_s16 }
 0x2e2   : > { %6470 = vrot.lane.b32.xlu0 %v6444_v53, %s6794_s19 }
 0x2e4   : > { %6465 = vrot.lane.b32.xlu1 %v6444_v53, %s6793_s18 }
 0x2e6   : > { %1552 = vrot.lane.b32.xlu0 %v7435_v6, %s6794_s19 }
 0x2e8   : > { %1502 = vrot.lane.b32.xlu1 %v7435_v6, %s6793_s18 }
 0x2ea   : > { %6480 = vrot.lane.b32.xlu0 %v6444_v53, %s6796_s26 }
 0x2ec   : > { %6475 = vrot.lane.b32.xlu1 %v6444_v53, %s6795_s20 }
 0x2ee   : > { %1652 = vrot.lane.b32.xlu0 %v7435_v6, %s6796_s26 }
 0x2f0   : > { %1602 = vrot.lane.b32.xlu1 %v7435_v6, %s6795_s20 }
 0x2f2   : > { %1696 = vrot.lane.b32.xlu0 %v7410_v50, %s6798_s28 }
 0x2f4   : > { %1698 = vrot.lane.b32.xlu1 %v7438_v61, %s6798_s28 }
 0x2f6   : > { %1700 = vrot.lane.b32.xlu0 %v7441_v2, %s6798_s28 }
 0x2f8   : > { %1356 = vrot.lane.b32.xlu1 %v1329_v23, %s6790_s15 }
 0x2fa   : > { %6485 = vrot.lane.b32.xlu0 %v6484_v28, %s6791_s16 }
 0x2fc   : > { %1702 = vrot.lane.b32.xlu1 %v7435_v6, %s6798_s28  ;;  %v7485_v5 = vpop.permute.xlu0 %1682 }
 0x2fe   : > { %6495 = vrot.lane.b32.xlu0 %v6484_v28, %s6793_s18 }
 0x300   : > { %6490 = vrot.lane.b32.xlu1 %v6484_v28, %s6792_s17 }
 0x302   : > { %6505 = vrot.lane.b32.xlu0 %v6484_v28, %s6795_s20 }
 0x303   : > { %v7489_v7 = vpop.permute.xlu0 %6305 }
 0x304   : > { %v6308_v24 = vunpack.i.h.bf16 %v7489_v7  ;;  %v6307_v41 = vunpack.i.l.bf16 %v7489_v7  ;;  %6500 = vrot.lane.b32.xlu1 %v6484_v28, %s6794_s19 }
 0x306   : > { %1704 = vrot.lane.b32.xlu0 %v7444_v3, %s6798_s28  ;;  %v7496_v25 = vpop.permute.xlu1 %6310  ;;  %v1359_v8 = vsel %vm363_vm1, %v6307_v41, %v6308_v24 }
 0x307   : > { %v6312_v10 = vunpack.i.l.bf16 %v7496_v25  ;;  %v7502_v11 = vpop.permute.xlu0 %6315  ;;  %v5463_v13 = vpack.c.bf16 %v1359_v8, %v7369_v31 }
 0x308   : > { %6510 = vrot.lane.b32.xlu1 %v6484_v28, %s6796_s26  ;;  %v6318_v27 = vunpack.i.h.bf16 %v7502_v11  ;;  %v6317_v16 = vunpack.i.l.bf16 %v7502_v11 }
 0x309   : > { %v1358_v14 = vsel %vm363_vm1, %v6312_v10, %v6307_v41  ;;  %5464 = vmatprep.subr.bf16.mxu0 %v5463_v13 }
 0x30a   : > { %v5465_v15 = vpack.c.bf16 %v1358_v14, %v7362_v29  ;;  %1738 = vperm.xlu0 %6303, %v4922_v57   ;;  %v7513_v20 = vpop.permute.xlu1 %6320  ;;  %v1409_v29 = vsel %vm414_vm5, %v6317_v16, %v6318_v27 }
 0x30b   : > { %v6323_v0 = vunpack.i.h.bf16 %v7513_v20  ;;  %v6322_v30 = vunpack.i.l.bf16 %v7513_v20  ;;  %v7517_v21 = vpop.permute.xlu0 %6325 }
 0x30c   : > { %1706 = vrot.lane.b32.xlu1 %v1329_v23, %s6798_s28  ;;  %5467 = vmatpush1.bf16.msk.msra.mxu0 %vm7036_vm4, %v5465_v15  ;;  %v6327_v22 = vunpack.i.l.bf16 %v7517_v21 }
 0x30d   : > { %v1459_v34 = vsel %vm465_vm6, %v6322_v30, %v6323_v0 }
 0x30e   : > { %v7529_v31 = vpop.permute.xlu1 %6330  ;;  %v5468_v33 = vpack.c.bf16 %v1459_v34, %v1409_v29  ;;  %v1408_v43 = vsel %vm414_vm5, %v6327_v22, %v6317_v16 }
 0x30f   : > { %v6332_v37 = vunpack.i.l.bf16 %v7529_v31  ;;  %v7532_v39 = vpop.permute.xlu0 %6335 }
 0x310   : > { %5469 = vmatprep.subr.bf16.mxu0 %v5468_v33  ;;  %v6338_v58 = vunpack.i.h.bf16 %v7532_v39  ;;  %v6337_v63 = vunpack.i.l.bf16 %v7532_v39 }
 0x311   : > { %v1458_v44 = vsel %vm465_vm6, %v6332_v37, %v6322_v30 }
 0x312   : > { %v7538_v49 = vpop.permute.xlu1 %6340  ;;  %v5470_v51 = vpack.c.bf16 %v1458_v44, %v1408_v43  ;;  %v1509_v36 = vsel %vm516_vm7, %v6337_v63, %v6338_v58 }
 0x313   : > { %v6343_v52 = vunpack.i.h.bf16 %v7538_v49  ;;  %v6342_v55 = vunpack.i.l.bf16 %v7538_v49  ;;  %v7542_v62 = vpop.permute.xlu0 %6345 }
 0x314   : > { %5471 = vmatpush1.bf16.msra.mxu0 %v5470_v51  ;;  %v6347_v1 = vunpack.i.l.bf16 %v7542_v62 }
 0x315   : > { %v1559_v56 = vsel %vm567_vm8, %v6342_v55, %v6343_v52 }
 0x316   : > { %v7551_v53 = vpop.permute.xlu1 %6350  ;;  %v5472_v23 = vpack.c.bf16 %v1559_v56, %v1509_v36  ;;  %v1508_v8 = vsel %vm516_vm7, %v6347_v1, %v6337_v63 }
 0x317   : > { %v6352_v28 = vunpack.i.l.bf16 %v7551_v53  ;;  %v7554_v41 = vpop.permute.xlu0 %6355 }
 0x318   : > { %5473 = vmatprep.subr.bf16.mxu0 %v5472_v23  ;;  %v6358_v13 = vunpack.i.h.bf16 %v7554_v41  ;;  %v6357_v57 = vunpack.i.l.bf16 %v7554_v41 }
 0x319   : > { %v1558_v10 = vsel %vm567_vm8, %v6352_v28, %v6342_v55  ;;  %v6313_v28 = vunpack.i.h.bf16 %v7496_v25 }
 0x31a   : > { %v7560_v14 = vpop.permute.xlu1 %6360  ;;  %v5474_v16 = vpack.c.bf16 %v1558_v10, %v1508_v8  ;;  %v1609_v34 = vsel %vm618_vm9, %v6357_v57, %v6358_v13  ;;  %v7590_v10 = vld [vmem:[%s10278_s2 + $0x8] sm:$0xff] }
 0x31b   : > { %v6363_v15 = vunpack.i.h.bf16 %v7560_v14  ;;  %v6362_v30 = vunpack.i.l.bf16 %v7560_v14  ;;  %v7564_v22 = vpop.permute.xlu0 %6365 }
 0x31c   : > { %5475 = vmatpush1.bf16.msra.mxu0 %v5474_v16  ;;  %v6367_v29 = vunpack.i.l.bf16 %v7564_v22 }
 0x31d   : > { %v1659_v33 = vsel %vm669_vm10, %v6362_v30, %v6363_v15 }
 0x31e   : > { %v7573_v37 = vpop.permute.xlu1 %6370  ;;  %v5476_v43 = vpack.c.bf16 %v1659_v33, %v1609_v34  ;;  %v1608_v51 = vsel %vm618_vm9, %v6367_v29, %v6357_v57  ;;  %v1360_v34 = vsel %vm363_vm1, %v6308_v24, %v6313_v28 }
 0x31f   : > { %v6372_v44 = vunpack.i.l.bf16 %v7573_v37  ;;  %v1685_v63 = vpop.permute.xlu0 %1684  ;;  %v5482_v24 = vpack.c.bf16 %v1360_v34, %v7372_v18 }
 0x320   : > { %5477 = vmatprep.subr.bf16.mxu0 %v5476_v43  ;;  %v1708_v16 = vsel %vm720_vm11, %v7485_v5, %v1685_v63 }
 0x321   : > { %v1658_v55 = vsel %vm669_vm10, %v6372_v44, %v6362_v30 }
 0x322   : > { %v7578_v1 = vpop.permute.xlu1 %1686  ;;  %v5478_v36 = vpack.c.bf16 %v1658_v55, %v1608_v51 }
 0x323   : > { %v7580_v56 = vpop.permute.xlu0 %1688  ;;  %v1709_v23 = vsel %vm720_vm11, %v1685_v63, %v7578_v1  ;;  %v6333_v63 = vunpack.i.h.bf16 %v7529_v31 }
 0x324   : > { %5479 = vmatpush1.bf16.msra.mxu0 %v5478_v36  ;;  %v6328_v36 = vunpack.i.h.bf16 %v7517_v21 }
 0x325   : > { %1760 = vmatprep.subr.mxu0 %v1709_v23  ;;  %v1460_v18 = vsel %vm465_vm6, %v6323_v0, %v6333_v63 }
 0x326   : > { %v7585_v8 = vpop.permute.xlu1 %1690 }
 0x327   : > { %v6376_v57 = vpop.permute.xlu0 %6375 }
 0x328   : > { %v6378_v30 = vunpack.i.h.bf16 %v6376_v57  ;;  %v6377_v29 = vunpack.i.l.bf16 %v6376_v57  ;;  %1761 = vmatpush1.msra.mxu0 %v1708_v16 }
 0x329   : > { %4925 = vmatmul.mubr.msk.f32.vlgmr.msra.gmra.mrb[6].mxu0 %vm752_vm12, %v7590_v10 }
 0x32a   : > { %v7599_v25 = vpop.permute.xlu1 %6380  ;;  %v1361_v33 = vsel %vm363_vm1, %v6313_v28, %v6377_v29  ;;  %1950 = vmatprep.mubr.f32.mxu0 %v6797_v32  ;;  %v1362_v7 = vsel %vm363_vm1, %v6377_v29, %v6378_v30 }
 0x32b   : > { %v6382_v43 = vunpack.i.l.bf16 %v7599_v25  ;;  %v6391_v44 = vpop.permute.xlu0 %6390  ;;  %v5480_v5 = vpack.c.bf16 %v1361_v33, %v7377_v42  ;;  %v5498_v31 = vpack.c.bf16 %v1362_v7, %v7397_v4  ;;  %v6353_v7 = vunpack.i.h.bf16 %v7551_v53 }
 0x32c   : > { %v6392_v51 = vunpack.i.l.bf16 %v6391_v44  ;;  %v6393_v34 = vunpack.i.h.bf16 %v6391_v44  ;;  %v6348_v44 = vunpack.i.h.bf16 %v7542_v62 }
 0x32d   : > { %5481 = vmatprep.subr.bf16.mxu1 %v5480_v5  ;;  %v1363_v55 = vsel %vm363_vm1, %v6378_v30, %v6382_v43 }
 0x32e   : > { %v6386_v23 = vpop.permute.xlu1 %6385  ;;  %5483 = vmatpush1.bf16.msra.mxu1 %v5482_v24  ;;  %v5496_v28 = vpack.c.bf16 %v1363_v55, %v7400_v46  ;;  %v1461_v30 = vsel %vm465_vm6, %v6333_v63, %v6392_v51  ;;  %v1410_v46 = vsel %vm414_vm5, %v6318_v27, %v6328_v36  ;;  %v1462_v63 = vsel %vm465_vm6, %v6392_v51, %v6393_v34 }
 0x32f   : > { %v6387_v57 = vunpack.i.l.bf16 %v6386_v23  ;;  %v7613_v42 = vpop.permute.xlu0 %6400  ;;  %v6388_v16 = vunpack.i.h.bf16 %v6386_v23  ;;  %v5486_v5 = vpack.c.bf16 %v1460_v18, %v1410_v46  ;;  %v1510_v51 = vsel %vm516_vm7, %v6338_v58, %v6348_v44 }
 0x330   : > { %5497 = vmatprep.subr.bf16.mxu0 %v5496_v28  ;;  %v6402_v29 = vunpack.i.l.bf16 %v7613_v42 }
 0x331   : > { %5499 = vmatpush1.bf16.msra.mxu0 %v5498_v31  ;;  %v1411_v21 = vsel %vm414_vm5, %v6328_v36, %v6387_v57  ;;  %v1412_v24 = vsel %vm414_vm5, %v6387_v57, %v6388_v16  ;;  %v1560_v31 = vsel %vm567_vm8, %v6343_v52, %v6353_v7 }
 0x332   : > { %v7625_v33 = vpop.permute.xlu1 %6395  ;;  %v5484_v4 = vpack.c.bf16 %v1461_v30, %v1411_v21  ;;  %v1463_v27 = vsel %vm465_vm6, %v6393_v34, %v6402_v29  ;;  %v5502_v57 = vpack.c.bf16 %v1462_v63, %v1412_v24 }
 0x333   : > { %v6397_v20 = vunpack.i.l.bf16 %v7625_v33  ;;  %v6411_v0 = vpop.permute.xlu0 %6410 }
 0x334   : > { %5485 = vmatprep.subr.bf16.mxu1 %v5484_v4  ;;  %v6412_v55 = vunpack.i.l.bf16 %v6411_v0  ;;  %v6413_v30 = vunpack.i.h.bf16 %v6411_v0  ;;  %v5490_v4 = vpack.c.bf16 %v1560_v31, %v1510_v51  ;;  %v6368_v0 = vunpack.i.h.bf16 %v7564_v22 }
 0x335   : > { %5487 = vmatpush1.bf16.msra.mxu1 %v5486_v5  ;;  %v1413_v11 = vsel %vm414_vm5, %v6388_v16, %v6397_v20  ;;  %v6373_v5 = vunpack.i.h.bf16 %v7573_v37 }
 0x336   : > { %v6406_v36 = vpop.permute.xlu1 %6405  ;;  %v5500_v23 = vpack.c.bf16 %v1463_v27, %v1413_v11  ;;  %v1561_v62 = vsel %vm567_vm8, %v6353_v7, %v6412_v55  ;;  %v1562_v7 = vsel %vm567_vm8, %v6412_v55, %v6413_v30  ;;  %v1610_v55 = vsel %vm618_vm9, %v6358_v13, %v6368_v0 }
 0x337   : > { %v6407_v53 = vunpack.i.l.bf16 %v6406_v36  ;;  %v7638_v28 = vpop.permute.xlu0 %6420  ;;  %v6408_v18 = vunpack.i.h.bf16 %v6406_v36 }
 0x338   : > { %5501 = vmatprep.subr.bf16.mxu0 %v5500_v23  ;;  %v6422_v16 = vunpack.i.l.bf16 %v7638_v28  ;;  %v1660_v23 = vsel %vm669_vm10, %v6363_v15, %v6373_v5 }
 0x339   : > { %5503 = vmatpush1.bf16.msra.mxu0 %v5502_v57  ;;  %v1511_v21 = vsel %vm516_vm7, %v6348_v44, %v6407_v53  ;;  %v1512_v24 = vsel %vm516_vm7, %v6407_v53, %v6408_v18  ;;  %v5494_v51 = vpack.c.bf16 %v1660_v23, %v1610_v55  ;;  %v6403_v55 = vunpack.i.h.bf16 %v7613_v42 }
 0x33a   : > { %v7649_v46 = vpop.permute.xlu1 %6415  ;;  %v5488_v34 = vpack.c.bf16 %v1561_v62, %v1511_v21  ;;  %v1563_v58 = vsel %vm567_vm8, %v6413_v30, %v6422_v16  ;;  %v5506_v36 = vpack.c.bf16 %v1562_v7, %v1512_v24 }
 0x33b   : > { %v6417_v49 = vunpack.i.l.bf16 %v7649_v46  ;;  %v6431_v52 = vpop.permute.xlu0 %6430 }
 0x33c   : > { %5489 = vmatprep.subr.bf16.mxu1 %v5488_v34  ;;  %v6432_v11 = vunpack.i.l.bf16 %v6431_v52  ;;  %v1711_v34 = vsel %vm720_vm11, %v7580_v56, %v7585_v8 }
 0x33d   : > { %5491 = vmatpush1.bf16.msra.mxu1 %v5490_v4  ;;  %v1513_v39 = vsel %vm516_vm7, %v6408_v18, %v6417_v49  ;;  %v6433_v18 = vunpack.i.h.bf16 %v6431_v52 }
 0x33e   : > { %v6426_v27 = vpop.permute.xlu1 %6425  ;;  %v5504_v44 = vpack.c.bf16 %v1563_v58, %v1513_v39  ;;  %v1661_v22 = vsel %vm669_vm10, %v6373_v5, %v6432_v11  ;;  %v6383_v39 = vunpack.i.h.bf16 %v7599_v25 }
 0x33f   : > { %v6427_v37 = vunpack.i.l.bf16 %v6426_v27  ;;  %v7662_v63 = vpop.permute.xlu0 %6440  ;;  %v6428_v53 = vunpack.i.h.bf16 %v6426_v27  ;;  %v1662_v52 = vsel %vm669_vm10, %v6432_v11, %v6433_v18 }
 0x340   : > { %5505 = vmatprep.subr.bf16.mxu0 %v5504_v44  ;;  %v6442_v57 = vunpack.i.l.bf16 %v7662_v63 }
 0x341   : > { %5507 = vmatpush1.bf16.msra.mxu0 %v5506_v36  ;;  %v1611_v31 = vsel %vm618_vm9, %v6368_v0, %v6427_v37  ;;  %v1612_v30 = vsel %vm618_vm9, %v6427_v37, %v6428_v53  ;;  %v1710_v0 = vsel %vm720_vm11, %v7578_v1, %v7580_v56  ;;  %v1364_v37 = vsel %vm363_vm1, %v6382_v43, %v6383_v39 }
 0x342   : > { %v7673_v21 = vpop.permute.xlu1 %6435  ;;  %v5492_v62 = vpack.c.bf16 %v1661_v22, %v1611_v31  ;;  %v1663_v13 = vsel %vm669_vm10, %v6433_v18, %v6442_v57  ;;  %v5510_v24 = vpack.c.bf16 %v1662_v52, %v1612_v30  ;;  %v6398_v1 = vunpack.i.h.bf16 %v7625_v33 }
 0x343   : > { %v6437_v14 = vunpack.i.l.bf16 %v7673_v21  ;;  %v7676_v15 = vpop.permute.xlu0 %1694 }
 0x344   : > { %5493 = vmatprep.subr.bf16.mxu1 %v5492_v62 }
 0x345   : > { %5495 = vmatpush1.bf16.msra.mxu1 %v5494_v51  ;;  %v1613_v41 = vsel %vm618_vm9, %v6428_v53, %v6437_v14 }
 0x346   : > { %v1693_v4 = vpop.permute.xlu1 %1692  ;;  %1831 = vmatprep.subr.mxu1 %v1711_v34  ;;  %v5508_v5 = vpack.c.bf16 %v1663_v13, %v1613_v41  ;;  %v5514_v34 = vpack.c.bf16 %v1364_v37, %v7407_v47  ;;  %v1414_v41 = vsel %vm414_vm5, %v6397_v20, %v6398_v1  ;;  %v1464_v47 = vsel %vm465_vm6, %v6402_v29, %v6403_v55 }
 0x347   : > { %v1713_v7 = vsel %vm720_vm11, %v1693_v4, %v7676_v15  ;;  %v1712_v23 = vsel %vm720_vm11, %v7585_v8, %v1693_v4 }
 0x348   : > { %v7690_v58 = vpop.permute.xlu0 %6450  ;;  %5509 = vmatprep.subr.bf16.mxu0 %v5508_v5 }
 0x349   : > { %1832 = vmatpush1.msra.mxu1 %v1710_v0  ;;  %5511 = vmatpush1.bf16.msra.mxu0 %v5510_v24  ;;  %v6452_v56 = vunpack.i.l.bf16 %v7690_v58  ;;  %v5518_v24 = vpack.c.bf16 %v1464_v47, %v1414_v41  ;;  %v6443_v41 = vunpack.i.h.bf16 %v7662_v63 }
 0x34a   : > { %v6446_v27 = vpop.permute.xlu1 %6445  ;;  %4926 = vmatmul.mubr.msk.f32.vlgmr.msra.gmra.mrb[6].mxu1 %vm752_vm12, %v7590_v10  ;;  %1902 = vmatprep.subr.mxu0 %v1713_v7 }
 0x34b   : > { %v6448_v11 = vunpack.i.h.bf16 %v6446_v27  ;;  %v6447_v44 = vunpack.i.l.bf16 %v6446_v27  ;;  %2021 = vmatprep.mubr.f32.mxu1 %v6797_v32 }
 0x34c   : > { %v6461_v36 = vpop.permute.xlu0 %6460 }
 0x34d   : > { %v1366_v53 = vsel %vm363_vm1, %v6447_v44, %v6448_v11  ;;  %v6462_v31 = vunpack.i.l.bf16 %v6461_v36  ;;  %1903 = vmatpush1.msra.mxu0 %v1712_v23  ;;  %v1365_v22 = vsel %vm363_vm1, %v6383_v39, %v6447_v44  ;;  %v1367_v43 = vsel %vm363_vm1, %v6448_v11, %v6452_v56 }
 0x34e   : > { %v6456_v18 = vpop.permute.xlu1 %6455  ;;  %4927 = vmatmul.mubr.msk.f32.vlgmr.msra.gmra.mrb[8].mxu0 %vm752_vm12, %v7590_v10  ;;  %v5512_v25 = vpack.c.bf16 %v1365_v22, %v7410_v50  ;;  %v5530_v8 = vpack.c.bf16 %v1366_v53, %v7438_v61  ;;  %v5528_v30 = vpack.c.bf16 %v1367_v43, %v7441_v2  ;;  %v6463_v13 = vunpack.i.h.bf16 %v6461_v36 }
 0x34f   : > { %v6458_v62 = vunpack.i.h.bf16 %v6456_v18  ;;  %v6457_v51 = vunpack.i.l.bf16 %v6456_v18  ;;  %2092 = vmatprep.mubr.f32.mxu0 %v6797_v32  ;;  %v1465_v52 = vsel %vm465_vm6, %v6403_v55, %v6462_v31  ;;  %v6418_v39 = vunpack.i.h.bf16 %v7649_v46 }
 0x350   : > { %v7723_v50 = vpop.permute.xlu0 %1452  ;;  %5513 = vmatprep.subr.bf16.mxu1 %v5512_v25  ;;  %5529 = vmatprep.subr.bf16.mxu0 %v5528_v30  ;;  %v1466_v0 = vsel %vm465_vm6, %v6462_v31, %v6463_v13  ;;  %v6423_v11 = vunpack.i.h.bf16 %v7638_v28 }
 0x351   : > { %5515 = vmatpush1.bf16.msra.mxu1 %v5514_v34  ;;  %v1415_v61 = vsel %vm414_vm5, %v6398_v1, %v6457_v51  ;;  %v1416_v2 = vsel %vm414_vm5, %v6457_v51, %v6458_v62  ;;  %5531 = vmatpush1.bf16.msra.mxu0 %v5530_v8  ;;  %v1467_v4 = vsel %vm465_vm6, %v6463_v13, %v7723_v50 }
 0x352   : > { %v7731_v33 = vpop.permute.xlu1 %1402  ;;  %v5516_v20 = vpack.c.bf16 %v1465_v52, %v1415_v61  ;;  %v5534_v27 = vpack.c.bf16 %v1466_v0, %v1416_v2  ;;  %v1514_v36 = vsel %vm516_vm7, %v6417_v49, %v6418_v39  ;;  %v1564_v55 = vsel %vm567_vm8, %v6422_v16, %v6423_v11 }
 0x353   : > { %v1417_v5 = vsel %vm414_vm5, %v6458_v62, %v7731_v33  ;;  %v5522_v8 = vpack.c.bf16 %v1564_v55, %v1514_v36  ;;  %v6438_v62 = vunpack.i.h.bf16 %v7673_v21 }
 0x354   : > { %v6471_v42 = vpop.permute.xlu0 %6470  ;;  %5517 = vmatprep.subr.bf16.mxu1 %v5516_v20  ;;  %v5532_v29 = vpack.c.bf16 %v1467_v4, %v1417_v5 }
 0x355   : > { %v6472_v7 = vunpack.i.l.bf16 %v6471_v42  ;;  %5519 = vmatpush1.bf16.msra.mxu1 %v5518_v24  ;;  %v6473_v23 = vunpack.i.h.bf16 %v6471_v42  ;;  %v1614_v47 = vsel %vm618_vm9, %v6437_v14, %v6438_v62  ;;  %v1664_v24 = vsel %vm669_vm10, %v6442_v57, %v6443_v41 }
 0x356   : > { %v6466_v44 = vpop.permute.xlu1 %6465  ;;  %5533 = vmatprep.subr.bf16.mxu0 %v5532_v29  ;;  %v5526_v29 = vpack.c.bf16 %v1664_v24, %v1614_v47  ;;  %v6453_v57 = vunpack.i.h.bf16 %v7690_v58 }
 0x357   : > { %v6468_v37 = vunpack.i.h.bf16 %v6466_v44  ;;  %v6467_v1 = vunpack.i.l.bf16 %v6466_v44  ;;  %5535 = vmatpush1.bf16.msra.mxu0 %v5534_v27  ;;  %v1565_v22 = vsel %vm567_vm8, %v6423_v11, %v6472_v7  ;;  %v1566_v51 = vsel %vm567_vm8, %v6472_v7, %v6473_v23 }
 0x358   : > { %v7743_v53 = vpop.permute.xlu0 %1552 }
 0x359   : > { %v1515_v31 = vsel %vm516_vm7, %v6418_v39, %v6467_v1  ;;  %v1516_v18 = vsel %vm516_vm7, %v6467_v1, %v6468_v37  ;;  %v1567_v46 = vsel %vm567_vm8, %v6473_v23, %v7743_v53  ;;  %v1368_v23 = vsel %vm363_vm1, %v6452_v56, %v6453_v57 }
 0x35a   : > { %v7751_v25 = vpop.permute.xlu1 %1502  ;;  %v5520_v43 = vpack.c.bf16 %v1565_v22, %v1515_v31  ;;  %v5538_v16 = vpack.c.bf16 %v1566_v51, %v1516_v18 }
 0x35b   : > { %v1517_v49 = vsel %vm516_vm7, %v6468_v37, %v7751_v25 }
 0x35c   : > { %v5536_v30 = vpack.c.bf16 %v1567_v46, %v1517_v49  ;;  %v6481_v28 = vpop.permute.xlu0 %6480  ;;  %5521 = vmatprep.subr.bf16.mxu1 %v5520_v43 }
 0x35d   : > { %v6482_v34 = vunpack.i.l.bf16 %v6481_v28  ;;  %5523 = vmatpush1.bf16.msra.mxu1 %v5522_v8  ;;  %v6483_v2 = vunpack.i.h.bf16 %v6481_v28 }
 0x35e   : > { %v6476_v13 = vpop.permute.xlu1 %6475  ;;  %5537 = vmatprep.subr.bf16.mxu0 %v5536_v30 }
 0x35f   : > { %v6478_v61 = vunpack.i.h.bf16 %v6476_v13  ;;  %v6477_v52 = vunpack.i.l.bf16 %v6476_v13  ;;  %5539 = vmatpush1.bf16.msra.mxu0 %v5538_v16  ;;  %v1665_v5 = vsel %vm669_vm10, %v6443_v41, %v6482_v34  ;;  %v1666_v7 = vsel %vm669_vm10, %v6482_v34, %v6483_v2 }
 0x360   : > { %v7763_v20 = vpop.permute.xlu0 %1652 }
 0x361   : > { %v1615_v4 = vsel %vm618_vm9, %v6438_v62, %v6477_v52  ;;  %v1616_v39 = vsel %vm618_vm9, %v6477_v52, %v6478_v61  ;;  %v1667_v21 = vsel %vm669_vm10, %v6483_v2, %v7763_v20 }
 0x362   : > { %v7771_v0 = vpop.permute.xlu1 %1602  ;;  %v5524_v42 = vpack.c.bf16 %v1665_v5, %v1615_v4  ;;  %v5542_v63 = vpack.c.bf16 %v1666_v7, %v1616_v39 }
 0x363   : > { %v1617_v14 = vsel %vm618_vm9, %v6478_v61, %v7771_v0 }
 0x364   : > { %v5540_v27 = vpack.c.bf16 %v1667_v21, %v1617_v14  ;;  %v1697_v11 = vpop.permute.xlu0 %1696  ;;  %5525 = vmatprep.subr.bf16.mxu1 %v5524_v42 }
 0x365   : > { %5527 = vmatpush1.bf16.msra.mxu1 %v5526_v29  ;;  %v1714_v1 = vsel %vm720_vm11, %v7676_v15, %v1697_v11  ;;  %v5546_v15 = vpack.c.bf16 %v1368_v23, %v7435_v6 }
 0x366   : > { %v1699_v44 = vpop.permute.xlu1 %1698  ;;  %5541 = vmatprep.subr.bf16.mxu0 %v5540_v27 }
 0x367   : > { %5543 = vmatpush1.bf16.msra.mxu0 %v5542_v63  ;;  %v1715_v37 = vsel %vm720_vm11, %v1697_v11, %v1699_v44 }
 0x368   : > { %v1701_v36 = vpop.permute.xlu0 %1700  ;;  %1973 = vmatprep.subr.mxu1 %v1715_v37 }
 0x369   : > { %1974 = vmatpush1.msra.mxu1 %v1714_v1  ;;  %v1716_v56 = vsel %vm720_vm11, %v1699_v44, %v1701_v36 }
 0x36a   : > { %v1357_v31 = vpop.permute.xlu1 %1356  ;;  %4928 = vmatmul.mubr.msk.f32.vlgmr.msra.gmra.mrb[8].mxu1 %vm752_vm12, %v7590_v10 }
 0x36b   : > { %v1369_v22 = vsel %vm363_vm1, %v6453_v57, %v1357_v31  ;;  %2163 = vmatprep.mubr.f32.mxu1 %v6797_v32 }
 0x36c   : > { %v5544_v55 = vpack.c.bf16 %v1369_v22, %v7444_v3  ;;  %v6486_v18 = vpop.permute.xlu0 %6485 }
 0x36d   : > { %v6488_v49 = vunpack.i.h.bf16 %v6486_v18  ;;  %v6487_v8 = vunpack.i.l.bf16 %v6486_v18 }
 0x36e   : > { %v1703_v43 = vpop.permute.xlu1 %1702  ;;  %5545 = vmatprep.subr.bf16.mxu1 %v5544_v55 }
 0x36f   : > { %5547 = vmatpush1.bf16.msra.mxu1 %v5546_v15  ;;  %v1717_v58 = vsel %vm720_vm11, %v1701_v36, %v1703_v43  ;;  %v1418_v28 = vsel %vm414_vm5, %v7731_v33, %v6487_v8  ;;  %v1419_v34 = vsel %vm414_vm5, %v6487_v8, %v6488_v49 }
 0x370   : > { %v6496_v46 = vpop.permute.xlu0 %6495  ;;  %2044 = vmatprep.subr.mxu0 %v1717_v58 }
 0x371   : > { %2045 = vmatpush1.msra.mxu0 %v1716_v56  ;;  %v6498_v6 = vunpack.i.h.bf16 %v6496_v46  ;;  %v6497_v30 = vunpack.i.l.bf16 %v6496_v46 }
 0x372   : > { %v6491_v62 = vpop.permute.xlu1 %6490  ;;  %4929 = vmatmul.mubr.msk.f32.vlgmr.msra.gmra.mrb[10].mxu0 %vm752_vm12, %v7590_v10 }
 0x373   : > { %v6493_v3 = vunpack.i.h.bf16 %v6491_v62  ;;  %v6492_v51 = vunpack.i.l.bf16 %v6491_v62  ;;  %2734 = vmatprep.mubr.f32.mxu0 %v6797_v32  ;;  %v1518_v5 = vsel %vm516_vm7, %v7751_v25, %v6497_v30  ;;  %v1519_v24 = vsel %vm516_vm7, %v6497_v30, %v6498_v6 }
 0x374   : > { %v6506_v61 = vpop.permute.xlu0 %6505 }
 0x375   : > { %v1468_v16 = vsel %vm465_vm6, %v7723_v50, %v6492_v51  ;;  %v1469_v41 = vsel %vm465_vm6, %v6492_v51, %v6493_v3  ;;  %v6508_v33 = vunpack.i.h.bf16 %v6506_v61  ;;  %v6507_v39 = vunpack.i.l.bf16 %v6506_v61 }
 0x376   : > { %v5550_v13 = vpack.c.bf16 %v1468_v16, %v1418_v28  ;;  %v6501_v52 = vpop.permute.xlu1 %6500  ;;  %v5548_v47 = vpack.c.bf16 %v1469_v41, %v1419_v34 }
 0x377   : > { %v6503_v2 = vunpack.i.h.bf16 %v6501_v52  ;;  %v6502_v4 = vunpack.i.l.bf16 %v6501_v52  ;;  %v1618_v25 = vsel %vm618_vm9, %v7771_v0, %v6507_v39  ;;  %v1619_v63 = vsel %vm618_vm9, %v6507_v39, %v6508_v33 }
 0x378   : > { %5549 = vmatprep.subr.bf16.mxu1 %v5548_v47  ;;  %v1705_v1 = vpop.permute.xlu0 %1704 }
 0x379   : > { %v1568_v50 = vsel %vm567_vm8, %v7743_v53, %v6502_v4  ;;  %5551 = vmatpush1.bf16.msra.mxu1 %v5550_v13  ;;  %v1569_v42 = vsel %vm567_vm8, %v6502_v4, %v6503_v2  ;;  %v1718_v23 = vsel %vm720_vm11, %v1703_v43, %v1705_v1 }
 0x37a   : > { %v5554_v21 = vpack.c.bf16 %v1568_v50, %v1518_v5  ;;  %v6511_v14 = vpop.permute.xlu1 %6510  ;;  %v5552_v29 = vpack.c.bf16 %v1569_v42, %v1519_v24 }
 0x37b   : > { %v6513_v7 = vunpack.i.h.bf16 %v6511_v14  ;;  %v6512_v27 = vunpack.i.l.bf16 %v6511_v14 }
 0x37c   : > { %5553 = vmatprep.subr.bf16.mxu1 %v5552_v29 }
 0x37d   : > { %v1668_v11 = vsel %vm669_vm10, %v7763_v20, %v6512_v27  ;;  %5555 = vmatpush1.bf16.msra.mxu1 %v5554_v21  ;;  %v1669_v53 = vsel %vm669_vm10, %v6512_v27, %v6513_v7 }
 0x37e   : > { %v5558_v57 = vpack.c.bf16 %v1668_v11, %v1618_v25  ;;  %v1707_v44 = vpop.permute.xlu1 %1706  ;;  %v5556_v37 = vpack.c.bf16 %v1669_v53, %v1619_v63 }
 0x37f   : > { %v1719_v36 = vsel %vm720_vm11, %v1705_v1, %v1707_v44 }
 0x380   : > { %5557 = vmatprep.subr.bf16.mxu1 %v5556_v37 }
 0x381   : > { %5559 = vmatpush1.bf16.msra.mxu1 %v5558_v57 }
 0x382   : > { %2115 = vmatprep.subr.mxu1 %v1719_v36 }
 0x385   : > { %2116 = vmatpush1.msra.mxu1 %v1718_v23 }
 0x386   : > { %4930 = vmatmul.mubr.msk.f32.vlgmr.msra.gmra.mrb[10].mxu1 %vm752_vm12, %v7590_v10 }
 0x387   : > { %2805 = vmatprep.mubr.f32.mxu1 %v6797_v32 }
 0x389   : > { %v1739_v20 = vpop.permute.xlu0 %1738 }
 0x3fc   : > { %v1810_v0 = vpop.f32.mrb[6].mxu0 }
 0x3fd   : > { %v1811_v31 = vadd.f32 %v1810_v0, %v1739_v20  ;;  %v1812_v22 = vpop.f32.mrb[7].mxu0 }
 0x3fe   : > { %v1813_v55 = vadd.f32 %v1812_v22, %v1739_v20 }
 0x3ff   : > { %v2170_v18 = vmax.f32 %v1811_v31, 0.0 }
 0x400   : > { %v2171_v15 = vmax.f32 %v1813_v55, 0.0 }
 0x401   : > { %v2182_v58 = vmul.f32 %v2170_v18, %v7293_v17 }
 0x402   : > { %v2183_v56 = vmul.f32 %v2171_v15, %v7299_v38 }
 0x403   : > { %2206 = vrot.lane.b32.xlu1 %v2182_v58, %s6789_s14 }
 0x404   : > { %2208 = vrot.lane.b32.xlu0 %v2183_v56, %s6789_s14 }
 0x41d   : > { %v1881_v43 = vpop.f32.mrb[6].mxu1 }
 0x41e   : > { %v1882_v46 = vadd.f32 %v1881_v43, %v1739_v20  ;;  %v1883_v10 = vpop.f32.mrb[7].mxu1 }
 0x41f   : > { %v1884_v49 = vadd.f32 %v1883_v10, %v1739_v20 }
 0x420   : > { %v2172_v8 = vmax.f32 %v1882_v46, 0.0 }
 0x421   : > { %v2173_v62 = vmax.f32 %v1884_v49, 0.0  ;;  %v1952_v3 = vpop.f32.mrb[8].mxu0 }
 0x422   : > { %v2184_v51 = vmul.f32 %v2172_v8, %v7303_v26  ;;  %v1953_v6 = vadd.f32 %v1952_v3, %v1739_v20  ;;  %v1954_v30 = vpop.f32.mrb[9].mxu0 }
 0x423   : > { %v2185_v28 = vmul.f32 %v2173_v62, %v7308_v45  ;;  %v1955_v16 = vadd.f32 %v1954_v30, %v1739_v20 }
 0x424   : > { %v2174_v34 = vmax.f32 %v1953_v6, 0.0  ;;  %2210 = vrot.lane.b32.xlu1 %v2184_v51, %s6789_s14 }
 0x425   : > { %v2175_v41 = vmax.f32 %v1955_v16, 0.0  ;;  %2212 = vrot.lane.b32.xlu0 %v2185_v28, %s6789_s14 }
 0x426   : > { %v2186_v13 = vmul.f32 %v2174_v34, %v7318_v48 }
 0x427   : > { %v2187_v61 = vmul.f32 %v2175_v41, %v7322_v54 }
 0x428   : > { %2214 = vrot.lane.b32.xlu1 %v2186_v13, %s6789_s14 }
 0x429   : > { %2216 = vrot.lane.b32.xlu0 %v2187_v61, %s6789_s14 }
 0x43d   : > { %v2023_v52 = vpop.f32.mrb[8].mxu1 }
 0x43e   : > { %v2024_v47 = vadd.f32 %v2023_v52, %v1739_v20  ;;  %v2025_v2 = vpop.f32.mrb[9].mxu1 }
 0x43f   : > { %v2026_v4 = vadd.f32 %v2025_v2, %v1739_v20 }
 0x440   : > { %v2176_v5 = vmax.f32 %v2024_v47, 0.0 }
 0x441   : > { %v2177_v24 = vmax.f32 %v2026_v4, 0.0 }
 0x442   : > { %v2188_v33 = vmul.f32 %v2176_v5, %v7327_v35 }
 0x443   : > { %v2189_v39 = vmul.f32 %v2177_v24, %v7331_v59 }
 0x444   : > { %2218 = vrot.lane.b32.xlu1 %v2188_v33, %s6789_s14 }
 0x445   : > { %v2094_v50 = vpop.f32.mrb[10].mxu0  ;;  %2220 = vrot.lane.b32.xlu0 %v2189_v39, %s6789_s14 }
 0x446   : > { %v2095_v42 = vadd.f32 %v2094_v50, %v1739_v20  ;;  %v2096_v21 = vpop.f32.mrb[11].mxu0 }
 0x447   : > { %v2097_v14 = vadd.f32 %v2096_v21, %v1739_v20 }
 0x448   : > { %v2178_v29 = vmax.f32 %v2095_v42, 0.0 }
 0x449   : > { %v2179_v7 = vmax.f32 %v2097_v14, 0.0 }
 0x44a   : > { %v2190_v27 = vmul.f32 %v2178_v29, %v7343_v40 }
 0x44b   : > { %v2191_v25 = vmul.f32 %v2179_v7, %v7346_v9 }
 0x44c   : > { %2222 = vrot.lane.b32.xlu1 %v2190_v27, %s6789_s14  ;;  %v4932_v27 = vld [vmem:[%s10279_s3 + $0x10] sm:$0xff] }
 0x44d   : > { %2224 = vrot.lane.b32.xlu0 %v2191_v25, %s6789_s14 }
 0x459   : > { %v2165_v11 = vpop.f32.mrb[10].mxu1 }
 0x45a   : > { %v2166_v63 = vadd.f32 %v2165_v11, %v1739_v20  ;;  %v2167_v53 = vpop.f32.mrb[11].mxu1 }
 0x45b   : > { %v2168_v57 = vadd.f32 %v2167_v53, %v1739_v20 }
 0x45c   : > { %v2180_v44 = vmax.f32 %v2166_v63, 0.0 }
 0x45d   : > { %v2181_v37 = vmax.f32 %v2168_v57, 0.0 }
 0x45e   : > { %v2192_v1 = vmul.f32 %v2180_v44, %v7350_v12 }
 0x45f   : > { %v2193_v36 = vmul.f32 %v2181_v37, %v7354_v19 }
 0x460   : > { %2226 = vrot.lane.b32.xlu1 %v2192_v1, %s6789_s14 }
 0x461   : > { %2228 = vrot.lane.b32.xlu0 %v2193_v36, %s6789_s14 }
 0x475   : > { %v7843_v23 = vpop.permute.xlu1 %2206 }
 0x476   : > { %v2254_v0 = vsel %vm308_vm0, 0.0, %v7843_v23  ;;  %v2209_v31 = vpop.permute.xlu0 %2208 }
 0x477   : > { %v7849_v22 = vsel %vm308_vm0, %v7843_v23, %v2209_v31  ;;  %2608 = vrot.lane.b32.xlu0 %v2254_v0, %s6798_s28 }
 0x478   : > { %2610 = vrot.lane.b32.xlu1 %v7849_v22, %s6798_s28 }
 0x496   : > { %v2211_v20 = vpop.permute.xlu1 %2210 }
 0x497   : > { %v7855_v55 = vsel %vm308_vm0, %v2209_v31, %v2211_v20  ;;  %v2213_v15 = vpop.permute.xlu0 %2212 }
 0x498   : > { %v6519_v18 = vpack.i.bf16 %v7855_v55, %v7849_v22  ;;  %v7866_v58 = vsel %vm308_vm0, %v2211_v20, %v2213_v15 }
 0x499   : > { %v6549_v46 = vpack.i.bf16 %v7866_v58, %v2254_v0 }
 0x49a   : > { %6520 = vrot.lane.b32.xlu0 %v6519_v18, %s6791_s16  ;;  %6515 = vrot.lane.b32.xlu1 %v6519_v18, %s6790_s15  ;;  %v2215_v56 = vpop.permute.xlu1 %2214 }
 0x49b   : > { %v2217_v43 = vpop.permute.xlu0 %2216  ;;  %v7873_v10 = vsel %vm308_vm0, %v2213_v15, %v2215_v56 }
 0x49c   : > { %v7876_v49 = vsel %vm308_vm0, %v2215_v56, %v2217_v43 }
 0x49d   : > { %v6584_v8 = vpack.i.bf16 %v7876_v49, %v7873_v10 }
 0x49e   : > { %6530 = vrot.lane.b32.xlu0 %v6519_v18, %s6793_s18  ;;  %6525 = vrot.lane.b32.xlu1 %v6519_v18, %s6792_s17 }
 0x4a2   : > { %6540 = vrot.lane.b32.xlu0 %v6519_v18, %s6795_s20  ;;  %6535 = vrot.lane.b32.xlu1 %v6519_v18, %s6794_s19 }
 0x4a6   : > { %2612 = vrot.lane.b32.xlu0 %v7855_v55, %s6798_s28  ;;  %6545 = vrot.lane.b32.xlu1 %v6519_v18, %s6796_s26 }
 0x4aa   : > { %6550 = vrot.lane.b32.xlu0 %v6549_v46, %s6790_s15  ;;  %2614 = vrot.lane.b32.xlu1 %v7866_v58, %s6798_s28 }
 0x4ae   : > { %6555 = vrot.lane.b32.xlu0 %v6549_v46, %s6791_s16  ;;  %6585 = vrot.lane.b32.xlu1 %v6584_v8, %s6790_s15 }
 0x4b2   : > { %6560 = vrot.lane.b32.xlu0 %v6549_v46, %s6792_s17  ;;  %6590 = vrot.lane.b32.xlu1 %v6584_v8, %s6791_s16 }
 0x4b6   : > { %6565 = vrot.lane.b32.xlu0 %v6549_v46, %s6793_s18  ;;  %6595 = vrot.lane.b32.xlu1 %v6584_v8, %s6792_s17  ;;  %v2219_v62 = vpop.permute.xlu1 %2218 }
 0x4b7   : > { %v2221_v3 = vpop.permute.xlu0 %2220  ;;  %v7899_v51 = vsel %vm308_vm0, %v2217_v43, %v2219_v62 }
 0x4b8   : > { %v7902_v6 = vsel %vm308_vm0, %v2219_v62, %v2221_v3 }
 0x4b9   : > { %v6619_v30 = vpack.i.bf16 %v7902_v6, %v7899_v51 }
 0x4ba   : > { %6570 = vrot.lane.b32.xlu0 %v6549_v46, %s6794_s19  ;;  %6600 = vrot.lane.b32.xlu1 %v6584_v8, %s6793_s18 }
 0x4be   : > { %6575 = vrot.lane.b32.xlu0 %v6549_v46, %s6795_s20  ;;  %6605 = vrot.lane.b32.xlu1 %v6584_v8, %s6794_s19  ;;  %v2223_v28 = vpop.permute.xlu1 %2222 }
 0x4bf   : > { %v7917_v16 = vsel %vm308_vm0, %v2221_v3, %v2223_v28  ;;  %v2225_v34 = vpop.permute.xlu0 %2224 }
 0x4c0   : > { %v7923_v41 = vsel %vm308_vm0, %v2223_v28, %v2225_v34 }
 0x4c1   : > { %v6654_v13 = vpack.i.bf16 %v7923_v41, %v7917_v16 }
 0x4c2   : > { %6580 = vrot.lane.b32.xlu0 %v6549_v46, %s6796_s26  ;;  %6610 = vrot.lane.b32.xlu1 %v6584_v8, %s6795_s20 }
 0x4c6   : > { %6615 = vrot.lane.b32.xlu1 %v6584_v8, %s6796_s26  ;;  %2616 = vrot.lane.b32.xlu0 %v7873_v10, %s6798_s28 }
 0x4ca   : > { %2618 = vrot.lane.b32.xlu0 %v7876_v49, %s6798_s28  ;;  %2620 = vrot.lane.b32.xlu1 %v7899_v51, %s6798_s28 }
 0x4ce   : > { %6620 = vrot.lane.b32.xlu0 %v6619_v30, %s6790_s15  ;;  %6625 = vrot.lane.b32.xlu1 %v6619_v30, %s6791_s16 }
 0x4d2   : > { %6630 = vrot.lane.b32.xlu0 %v6619_v30, %s6792_s17  ;;  %6635 = vrot.lane.b32.xlu1 %v6619_v30, %s6793_s18  ;;  %v2227_v61 = vpop.permute.xlu1 %2226 }
 0x4d3   : > { %v7937_v52 = vsel %vm308_vm0, %v2225_v34, %v2227_v61  ;;  %v2229_v47 = vpop.permute.xlu0 %2228 }
 0x4d4   : > { %v6684_v2 = vpack.i.bf16 %v7937_v52, %v7923_v41  ;;  %v7944_v4 = vsel %vm308_vm0, %v2227_v61, %v2229_v47  ;;  %v2255_v24 = vsel %vm308_vm0, %v2229_v47, 0.0  ;;  %vm4822_vm0 = vcmask 257024  }
 0x4d5   : > { %v6689_v5 = vpack.i.bf16 %v7944_v4, %v7937_v52  ;;  %v6719_v33 = vpack.i.bf16 %v2255_v24, %v7944_v4 }
 0x4d6   : > { %6640 = vrot.lane.b32.xlu0 %v6619_v30, %s6794_s19  ;;  %6645 = vrot.lane.b32.xlu1 %v6619_v30, %s6795_s20 }
 0x4da   : > { %6650 = vrot.lane.b32.xlu0 %v6619_v30, %s6796_s26  ;;  %2524 = vrot.lane.b32.xlu1 %v7917_v16, %s6795_s20 }
 0x4de   : > { %2574 = vrot.lane.b32.xlu0 %v7917_v16, %s6796_s26  ;;  %2622 = vrot.lane.b32.xlu1 %v7902_v6, %s6798_s28 }
 0x4e2   : > { %2624 = vrot.lane.b32.xlu0 %v7917_v16, %s6798_s28  ;;  %6655 = vrot.lane.b32.xlu1 %v6654_v13, %s6790_s15 }
 0x4e6   : > { %6665 = vrot.lane.b32.xlu0 %v6654_v13, %s6792_s17  ;;  %6660 = vrot.lane.b32.xlu1 %v6654_v13, %s6791_s16 }
 0x4e9   : > { %v7964_v39 = vpop.permute.xlu0 %2608 }
 0x4ea   : > { %6675 = vrot.lane.b32.xlu0 %v6654_v13, %s6794_s19  ;;  %6670 = vrot.lane.b32.xlu1 %v6654_v13, %s6793_s18  ;;  %v7966_v50 = vpop.permute.xlu1 %2610 }
 0x4ee   : > { %6685 = vrot.lane.b32.xlu0 %v6684_v2, %s6796_s26  ;;  %6680 = vrot.lane.b32.xlu1 %v6684_v2, %s6795_s20 }
 0x4f2   : > { %2282 = vrot.lane.b32.xlu0 %v2255_v24, %s6790_s15  ;;  %6690 = vrot.lane.b32.xlu1 %v6689_v5, %s6790_s15  ;;  %s10234_s15 = scalar_lea.hbm %s10282_s6, %s4943_s10 }
 0x4f6   : > { %6700 = vrot.lane.b32.xlu0 %v6689_v5, %s6792_s17  ;;  %6695 = vrot.lane.b32.xlu1 %v6689_v5, %s6791_s16 }
 0x4fa   : > { %2382 = vrot.lane.b32.xlu0 %v2255_v24, %s6792_s17  ;;  %2332 = vrot.lane.b32.xlu1 %v2255_v24, %s6791_s16  ;;  %s4825_s16 = scalar_lea.sflag [#allocation3], %s245_s29  ;;  %s6725_s17 = scalar_lea.vmem %s10236_s12, 64 }
 0x4fb   : > { %p6726_p11 = scmp.ne.s32.totalorder %s10236_s12, %s6725_s17 }
 0x4fd   : > { %p6727_p12 = pnand %p6726_p11, %p6875_p5 }
 0x4fe   : > { %6710 = vrot.lane.b32.xlu0 %v6689_v5, %s6794_s19  ;;  %6705 = vrot.lane.b32.xlu1 %v6689_v5, %s6793_s18 }
 0x4ff   : > { %p6728_p13 = pneg %p6727_p12 }
 0x502   : > { %2482 = vrot.lane.b32.xlu0 %v2255_v24, %s6794_s19  ;;  %2432 = vrot.lane.b32.xlu1 %v2255_v24, %s6793_s18  ;;  %s6729_s18 = sshll.u32 %s6801_s25, 4  ;;  %s6730_s18 = int_to_ptr.vmem [resolvable:$false] %s6729_s18 }
 0x503   : > { %s6731_s19 = scalar_lea.vmem %s6730_s18, 128  ;;  %p6732_p0 = scmp.lt.s32.totalorder %s10236_s12, %s6730_s18 }
 0x504   : > { %p6733_p1 = scmp.lt.s32.totalorder %s6731_s19, %s6725_s17 }
 0x506   : > { %6720 = vrot.lane.b32.xlu0 %v6719_v33, %s6796_s26  ;;  %6715 = vrot.lane.b32.xlu1 %v6719_v33, %s6795_s20  ;;  %p6734_p2 = por %p6733_p1, %p6732_p0 }
 0x508   : > { %p6735_p3 = pnand %p6734_p2, %p6728_p13 }
 0x50a   : > { %2628 = vrot.lane.b32.xlu0 %v7937_v52, %s6798_s28  ;;  %2626 = vrot.lane.b32.xlu1 %v7923_v41, %s6798_s28 }
 0x50c   : > { %v7972_v42 = vpop.permute.xlu0 %6520  ;;  %v6516_v21 = vpop.permute.xlu1 %6515 }
 0x50d   : > { %v6518_v14 = vunpack.i.h.bf16 %v6516_v21  ;;  %v6517_v29 = vunpack.i.l.bf16 %v6516_v21  ;;  %v6523_v0 = vunpack.i.h.bf16 %v7972_v42  ;;  %v6522_v31 = vunpack.i.l.bf16 %v7972_v42 }
 0x50e   : > { %2632 = vrot.lane.b32.xlu0 %v2255_v24, %s6798_s28  ;;  %2630 = vrot.lane.b32.xlu1 %v7944_v4, %s6798_s28 }
 0x50f   : > { %v2285_v7 = vsel %vm363_vm1, %v6517_v29, %v6518_v14  ;;  %v2335_v3 = vsel %vm414_vm5, %v6522_v31, %v6523_v0 }
 0x510   : > { %v7981_v25 = vpop.permute.xlu0 %6530  ;;  %v6526_v11 = vpop.permute.xlu1 %6525  ;;  %v5560_v63 = vpack.c.bf16 %v2285_v7, %v7849_v22 }
 0x511   : > { %v6528_v1 = vunpack.i.h.bf16 %v6526_v11  ;;  %v6527_v36 = vunpack.i.l.bf16 %v6526_v11  ;;  %v6533_v2 = vunpack.i.h.bf16 %v7981_v25  ;;  %v6532_v5 = vunpack.i.l.bf16 %v7981_v25 }
 0x512   : > { %5561 = vmatprep.subr.bf16.mxu0 %v5560_v63  ;;  %2664 = vperm.xlu1 %6724, %v4932_v27  }
 0x513   : > { %v2385_v56 = vsel %vm465_vm6, %v6527_v36, %v6528_v1 }
 0x514   : > { %v7984_v53 = vpop.permute.xlu0 %6540  ;;  %v7986_v57 = vpop.permute.xlu1 %6535  ;;  %v5565_v28 = vpack.c.bf16 %v2385_v56, %v2335_v3 }
 0x515   : > { %v6538_v34 = vunpack.i.h.bf16 %v7986_v57  ;;  %v6537_v13 = vunpack.i.l.bf16 %v7986_v57  ;;  %v6542_v3 = vunpack.i.l.bf16 %v7984_v53 }
 0x518   : > { %v7988_v44 = vpop.permute.xlu0 %2612  ;;  %v7990_v37 = vpop.permute.xlu1 %6545 }
 0x519   : > { %v6547_v56 = vunpack.i.l.bf16 %v7990_v37 }
 0x51c   : > { %v6551_v20 = vpop.permute.xlu0 %6550  ;;  %v7994_v18 = vpop.permute.xlu1 %2614 }
 0x51d   : > { %v6552_v22 = vunpack.i.l.bf16 %v6551_v20  ;;  %v6553_v15 = vunpack.i.h.bf16 %v6551_v20 }
 0x51f   : > { %v2284_v43 = vsel %vm363_vm1, %v6552_v22, %v6517_v29  ;;  %v2286_v61 = vsel %vm363_vm1, %v6518_v14, %v6553_v15  ;;  %v2485_v29 = vsel %vm567_vm8, %v6537_v13, %v6538_v34 }
 0x520   : > { %v5562_v46 = vpack.c.bf16 %v2284_v43, %v7843_v23  ;;  %v6556_v8 = vpop.permute.xlu0 %6555  ;;  %v7999_v62 = vpop.permute.xlu1 %6585  ;;  %v5579_v21 = vpack.c.bf16 %v2286_v61, %v7855_v55 }
 0x521   : > { %v6587_v30 = vunpack.i.l.bf16 %v7999_v62  ;;  %v6557_v47 = vunpack.i.l.bf16 %v6556_v8  ;;  %v6558_v25 = vunpack.i.h.bf16 %v6556_v8  ;;  %v6543_v8 = vunpack.i.h.bf16 %v7984_v53 }
 0x522   : > { %5564 = vmatpush1.bf16.msk.msra.mxu0 %vm7036_vm4, %v5562_v46 }
 0x523   : > { %5566 = vmatprep.subr.bf16.mxu0 %v5565_v28  ;;  %v2287_v23 = vsel %vm363_vm1, %v6553_v15, %v6587_v30  ;;  %v2334_v7 = vsel %vm414_vm5, %v6557_v47, %v6522_v31  ;;  %v6548_v15 = vunpack.i.h.bf16 %v7990_v37  ;;  %v2336_v28 = vsel %vm414_vm5, %v6523_v0, %v6558_v25 }
 0x524   : > { %v6561_v24 = vpop.permute.xlu0 %6560  ;;  %v8013_v33 = vpop.permute.xlu1 %6590  ;;  %v5577_v42 = vpack.c.bf16 %v2287_v23, %v7866_v58  ;;  %v2435_v58 = vsel %vm516_vm7, %v6532_v5, %v6533_v2 }
 0x525   : > { %v6562_v14 = vunpack.i.l.bf16 %v6561_v24  ;;  %v6563_v60 = vunpack.i.h.bf16 %v6561_v24  ;;  %v6592_v11 = vunpack.i.l.bf16 %v8013_v33  ;;  %v5569_v22 = vpack.c.bf16 %v2485_v29, %v2435_v58 }
 0x526   : > { %5578 = vmatprep.subr.bf16.mxu1 %v5577_v42  ;;  %v2585_v42 = vsel %vm669_vm10, %v6547_v56, %v6548_v15 }
 0x527   : > { %v2384_v27 = vsel %vm465_vm6, %v6562_v14, %v6527_v36  ;;  %5580 = vmatpush1.bf16.msra.mxu1 %v5579_v21  ;;  %v2386_v31 = vsel %vm465_vm6, %v6528_v1, %v6563_v60  ;;  %v2337_v43 = vsel %vm414_vm5, %v6558_v25, %v6592_v11 }
 0x528   : > { %v5567_v63 = vpack.c.bf16 %v2384_v27, %v2334_v7  ;;  %v6566_v57 = vpop.permute.xlu0 %6565  ;;  %v8021_v20 = vpop.permute.xlu1 %6595  ;;  %v5583_v47 = vpack.c.bf16 %v2386_v31, %v2336_v28  ;;  %v2535_v27 = vsel %vm618_vm9, %v6542_v3, %v6543_v8 }
 0x529   : > { %v6597_v55 = vunpack.i.l.bf16 %v8021_v20  ;;  %v6567_v36 = vunpack.i.l.bf16 %v6566_v57  ;;  %v6568_v53 = vunpack.i.h.bf16 %v6566_v57 }
 0x52a   : > { %5568 = vmatpush1.bf16.msra.mxu0 %v5567_v63  ;;  %v5573_v63 = vpack.c.bf16 %v2585_v42, %v2535_v27 }
 0x52b   : > { %5570 = vmatprep.subr.bf16.mxu0 %v5569_v22  ;;  %v2387_v46 = vsel %vm465_vm6, %v6563_v60, %v6597_v55  ;;  %v2434_v21 = vsel %vm516_vm7, %v6567_v36, %v6532_v5  ;;  %v2436_v57 = vsel %vm516_vm7, %v6533_v2, %v6568_v53 }
 0x52c   : > { %v6571_v37 = vpop.permute.xlu0 %6570  ;;  %v8037_v61 = vpop.permute.xlu1 %6600  ;;  %v5581_v1 = vpack.c.bf16 %v2387_v46, %v2337_v43 }
 0x52d   : > { %v6572_v23 = vunpack.i.l.bf16 %v6571_v37  ;;  %v6573_v24 = vunpack.i.h.bf16 %v6571_v37  ;;  %v6602_v60 = vunpack.i.l.bf16 %v8037_v61 }
 0x52e   : > { %5582 = vmatprep.subr.bf16.mxu1 %v5581_v1 }
 0x52f   : > { %v2484_v14 = vsel %vm567_vm8, %v6572_v23, %v6537_v13  ;;  %5584 = vmatpush1.bf16.msra.mxu1 %v5583_v47  ;;  %v2486_v58 = vsel %vm567_vm8, %v6538_v34, %v6573_v24  ;;  %v2437_v13 = vsel %vm516_vm7, %v6568_v53, %v6602_v60 }
 0x530   : > { %v5571_v29 = vpack.c.bf16 %v2484_v14, %v2434_v21  ;;  %v6576_v0 = vpop.permute.xlu0 %6575  ;;  %v8043_v7 = vpop.permute.xlu1 %6605  ;;  %v5587_v46 = vpack.c.bf16 %v2486_v58, %v2436_v57  ;;  %v2634_v58 = vsel %vm720_vm11, %v7964_v39, %v7966_v50 }
 0x531   : > { %v6607_v25 = vunpack.i.l.bf16 %v8043_v7  ;;  %v6577_v22 = vunpack.i.l.bf16 %v6576_v0  ;;  %v6578_v23 = vunpack.i.h.bf16 %v6576_v0 }
 0x532   : > { %5572 = vmatpush1.bf16.msra.mxu0 %v5571_v29 }
 0x533   : > { %5574 = vmatprep.subr.bf16.mxu0 %v5573_v63  ;;  %v2487_v5 = vsel %vm567_vm8, %v6573_v24, %v6607_v25  ;;  %v2534_v37 = vsel %vm618_vm9, %v6577_v22, %v6542_v3  ;;  %v2635_v3 = vsel %vm720_vm11, %v7966_v50, %v7988_v44  ;;  %v2536_v29 = vsel %vm618_vm9, %v6543_v8, %v6578_v23  ;;  %v8083_v63 = vld [vmem:[%s10278_s2 + $0x10] sm:$0xff] }
 0x534   : > { %v6581_v31 = vpop.permute.xlu0 %6580  ;;  %v8055_v36 = vpop.permute.xlu1 %6610  ;;  %v5585_v43 = vpack.c.bf16 %v2487_v5, %v2437_v13  ;;  %v6588_v13 = vunpack.i.h.bf16 %v7999_v62  ;;  %v2636_v50 = vsel %vm720_vm11, %v7988_v44, %v7994_v18 }
 0x535   : > { %v6582_v28 = vunpack.i.l.bf16 %v6581_v31  ;;  %v6583_v34 = vunpack.i.h.bf16 %v6581_v31  ;;  %v6612_v47 = vunpack.i.l.bf16 %v8055_v36 }
 0x536   : > { %5586 = vmatprep.subr.bf16.mxu1 %v5585_v43  ;;  %v2288_v31 = vsel %vm363_vm1, %v6587_v30, %v6588_v13  ;;  %v6598_v43 = vunpack.i.h.bf16 %v8021_v20 }
 0x537   : > { %v2584_v1 = vsel %vm669_vm10, %v6582_v28, %v6547_v56  ;;  %5588 = vmatpush1.bf16.msra.mxu1 %v5587_v46  ;;  %v2586_v14 = vsel %vm669_vm10, %v6548_v15, %v6583_v34  ;;  %v2537_v56 = vsel %vm618_vm9, %v6578_v23, %v6612_v47  ;;  %v6608_v23 = vunpack.i.h.bf16 %v8043_v7 }
 0x538   : > { %v5575_v42 = vpack.c.bf16 %v2584_v1, %v2534_v37  ;;  %v8060_v24 = vpop.permute.xlu0 %2616  ;;  %v8062_v2 = vpop.permute.xlu1 %6615  ;;  %v5591_v22 = vpack.c.bf16 %v2586_v14, %v2536_v29  ;;  %v2388_v30 = vsel %vm465_vm6, %v6597_v55, %v6598_v43  ;;  %v6603_v55 = vunpack.i.h.bf16 %v8037_v61 }
 0x539   : > { %v6617_v21 = vunpack.i.l.bf16 %v8062_v2  ;;  %v2637_v8 = vsel %vm720_vm11, %v7994_v18, %v8060_v24  ;;  %v5595_v18 = vpack.c.bf16 %v2288_v31, %v7873_v10 }
 0x53a   : > { %5576 = vmatpush1.bf16.msra.mxu0 %v5575_v42  ;;  %v2438_v7 = vsel %vm516_vm7, %v6602_v60, %v6603_v55 }
 0x53b   : > { %2686 = vmatprep.subr.mxu0 %v2635_v3  ;;  %v2587_v53 = vsel %vm669_vm10, %v6583_v34, %v6617_v21  ;;  %v6593_v34 = vunpack.i.h.bf16 %v8013_v33 }
 0x53c   : > { %v8076_v0 = vpop.permute.xlu0 %2618  ;;  %v8078_v27 = vpop.permute.xlu1 %2620  ;;  %v5589_v15 = vpack.c.bf16 %v2587_v53, %v2537_v56 }
 0x53d   : > { %v2338_v20 = vsel %vm414_vm5, %v6592_v11, %v6593_v34 }
 0x53e   : > { %2687 = vmatpush1.msra.mxu0 %v2634_v58  ;;  %5590 = vmatprep.subr.bf16.mxu1 %v5589_v15  ;;  %v5599_v53 = vpack.c.bf16 %v2388_v30, %v2338_v20  ;;  %v2488_v15 = vsel %vm567_vm8, %v6607_v25, %v6608_v23  ;;  %v6618_v58 = vunpack.i.h.bf16 %v8062_v2  ;;  %v6613_v25 = vunpack.i.h.bf16 %v8055_v36 }
 0x53f   : > { %5592 = vmatpush1.bf16.msra.mxu1 %v5591_v22  ;;  %4935 = vmatmul.mubr.msk.f32.vlgmr.msra.gmra.mrb[12].mxu0 %vm752_vm12, %v8083_v63  ;;  %v5603_v31 = vpack.c.bf16 %v2488_v15, %v2438_v7 }
 0x540   : > { %v8094_v5 = vpop.permute.xlu0 %6620  ;;  %v8096_v57 = vpop.permute.xlu1 %6625  ;;  %2757 = vmatprep.subr.mxu1 %v2637_v8  ;;  %2876 = vmatprep.mubr.f32.mxu0 %v6797_v32 }
 0x541   : > { %v6622_v39 = vunpack.i.l.bf16 %v8094_v5  ;;  %v6627_v46 = vunpack.i.l.bf16 %v8096_v57  ;;  %v6623_v30 = vunpack.i.h.bf16 %v8094_v5 }
 0x543   : > { %2758 = vmatpush1.msra.mxu1 %v2636_v50  ;;  %v2289_v28 = vsel %vm363_vm1, %v6588_v13, %v6622_v39  ;;  %v2290_v20 = vsel %vm363_vm1, %v6622_v39, %v6623_v30 }
 0x544   : > { %v8112_v37 = vpop.permute.xlu0 %6630  ;;  %v8114_v1 = vpop.permute.xlu1 %6635  ;;  %v5593_v44 = vpack.c.bf16 %v2289_v28, %v7876_v49  ;;  %4936 = vmatmul.mubr.msk.f32.vlgmr.msra.gmra.mrb[12].mxu1 %vm752_vm12, %v8083_v63  ;;  %v2339_v49 = vsel %vm414_vm5, %v6593_v34, %v6627_v46  ;;  %v2588_v28 = vsel %vm669_vm10, %v6617_v21, %v6618_v58  ;;  %v2538_v34 = vsel %vm618_vm9, %v6612_v47, %v6613_v25 }
 0x545   : > { %v6632_v62 = vunpack.i.l.bf16 %v8112_v37  ;;  %2947 = vmatprep.mubr.f32.mxu1 %v6797_v32  ;;  %v6637_v42 = vunpack.i.l.bf16 %v8114_v1  ;;  %v5607_v21 = vpack.c.bf16 %v2588_v28, %v2538_v34  ;;  %v2638_v47 = vsel %vm720_vm11, %v8060_v24, %v8076_v0 }
 0x546   : > { %5594 = vmatprep.subr.bf16.mxu0 %v5593_v44  ;;  %v5611_v24 = vpack.c.bf16 %v2290_v20, %v7899_v51 }
 0x547   : > { %5596 = vmatpush1.bf16.msra.mxu0 %v5595_v18  ;;  %v2389_v10 = vsel %vm465_vm6, %v6598_v43, %v6632_v62  ;;  %v2439_v11 = vsel %vm516_vm7, %v6603_v55, %v6637_v42  ;;  %v6633_v55 = vunpack.i.h.bf16 %v8112_v37 }
 0x548   : > { %v8137_v14 = vpop.permute.xlu0 %6640  ;;  %v8139_v3 = vpop.permute.xlu1 %6645  ;;  %v5597_v56 = vpack.c.bf16 %v2389_v10, %v2339_v49 }
 0x549   : > { %v6642_v29 = vunpack.i.l.bf16 %v8137_v14  ;;  %v6647_v33 = vunpack.i.l.bf16 %v8139_v3  ;;  %v2390_v39 = vsel %vm465_vm6, %v6632_v62, %v6633_v55 }
 0x54a   : > { %5598 = vmatprep.subr.bf16.mxu0 %v5597_v56 }
 0x54b   : > { %5600 = vmatpush1.bf16.msra.mxu0 %v5599_v53  ;;  %v2489_v22 = vsel %vm567_vm8, %v6608_v23, %v6642_v29  ;;  %v2539_v61 = vsel %vm618_vm9, %v6613_v25, %v6647_v33  ;;  %v2639_v23 = vsel %vm720_vm11, %v8076_v0, %v8078_v27  ;;  %v6628_v53 = vunpack.i.h.bf16 %v8096_v57 }
 0x54c   : > { %v8157_v13 = vpop.permute.xlu0 %6650  ;;  %v8159_v8 = vpop.permute.xlu1 %2524  ;;  %v5601_v50 = vpack.c.bf16 %v2489_v22, %v2439_v11  ;;  %v6643_v22 = vunpack.i.h.bf16 %v8137_v14  ;;  %v6638_v25 = vunpack.i.h.bf16 %v8114_v1 }
 0x54d   : > { %v6652_v43 = vunpack.i.l.bf16 %v8157_v13  ;;  %v2340_v7 = vsel %vm414_vm5, %v6627_v46, %v6628_v53  ;;  %v6653_v28 = vunpack.i.h.bf16 %v8157_v13  ;;  %v6648_v46 = vunpack.i.h.bf16 %v8139_v3 }
 0x54e   : > { %5602 = vmatprep.subr.bf16.mxu0 %v5601_v50  ;;  %v2490_v57 = vsel %vm567_vm8, %v6642_v29, %v6643_v22  ;;  %v2440_v14 = vsel %vm516_vm7, %v6637_v42, %v6638_v25 }
 0x54f   : > { %5604 = vmatpush1.bf16.msra.mxu0 %v5603_v31  ;;  %v2589_v60 = vsel %vm669_vm10, %v6618_v58, %v6652_v43  ;;  %v5615_v31 = vpack.c.bf16 %v2390_v39, %v2340_v7  ;;  %v2541_v20 = vsel %vm618_vm9, %v6648_v46, %v8159_v8  ;;  %v2540_v1 = vsel %vm618_vm9, %v6647_v33, %v6648_v46 }
 0x550   : > { %v8174_v44 = vpop.permute.xlu0 %2574  ;;  %v8176_v18 = vpop.permute.xlu1 %2622  ;;  %v5605_v2 = vpack.c.bf16 %v2589_v60, %v2539_v61 }
 0x551   : > { %v2591_v34 = vsel %vm669_vm10, %v6653_v28, %v8174_v44  ;;  %v2640_v46 = vsel %vm720_vm11, %v8078_v27, %v8176_v18 }
 0x552   : > { %5606 = vmatprep.subr.bf16.mxu0 %v5605_v2 }
 0x553   : > { %5608 = vmatpush1.bf16.msra.mxu0 %v5607_v21 }
 0x554   : > { %v8182_v49 = vpop.permute.xlu0 %2624  ;;  %v8184_v10 = vpop.permute.xlu1 %6655  ;;  %2828 = vmatprep.subr.mxu0 %v2639_v23 }
 0x555   : > { %v6657_v36 = vunpack.i.l.bf16 %v8184_v10 }
 0x557   : > { %2829 = vmatpush1.msra.mxu0 %v2638_v47  ;;  %v2291_v56 = vsel %vm363_vm1, %v6623_v30, %v6657_v36  ;;  %v5619_v47 = vpack.c.bf16 %v2490_v57, %v2440_v14 }
 0x558   : > { %v8196_v15 = vpop.permute.xlu0 %6665  ;;  %v8198_v58 = vpop.permute.xlu1 %6660  ;;  %v5609_v11 = vpack.c.bf16 %v2291_v56, %v7902_v6  ;;  %4937 = vmatmul.mubr.msk.f32.vlgmr.msra.gmra.mrb[14].mxu0 %vm752_vm12, %v8083_v63  ;;  %v2590_v56 = vsel %vm669_vm10, %v6652_v43, %v6653_v28  ;;  %v2641_v43 = vsel %vm720_vm11, %v8176_v18, %v8182_v49 }
 0x559   : > { %v6667_v0 = vunpack.i.l.bf16 %v8196_v15  ;;  %v6662_v5 = vunpack.i.l.bf16 %v8198_v58  ;;  %3018 = vmatprep.mubr.f32.mxu0 %v6797_v32  ;;  %v6663_v13 = vunpack.i.h.bf16 %v8198_v58 }
 0x55a   : > { %5610 = vmatprep.subr.bf16.mxu1 %v5609_v11 }
 0x55b   : > { %5612 = vmatpush1.bf16.msra.mxu1 %v5611_v24  ;;  %v2341_v6 = vsel %vm414_vm5, %v6628_v53, %v6662_v5  ;;  %v2391_v51 = vsel %vm465_vm6, %v6633_v55, %v6667_v0  ;;  %v6658_v55 = vunpack.i.h.bf16 %v8184_v10  ;;  %v5621_v53 = vpack.c.bf16 %v2591_v34, %v2541_v20 }
 0x55c   : > { %v8219_v50 = vpop.permute.xlu0 %6675  ;;  %v8221_v37 = vpop.permute.xlu1 %6670  ;;  %v5613_v62 = vpack.c.bf16 %v2391_v51, %v2341_v6  ;;  %v5623_v24 = vpack.c.bf16 %v2590_v56, %v2540_v1  ;;  %v6668_v10 = vunpack.i.h.bf16 %v8196_v15 }
 0x55d   : > { %v6677_v61 = vunpack.i.l.bf16 %v8219_v50  ;;  %v6672_v60 = vunpack.i.l.bf16 %v8221_v37  ;;  %v2292_v39 = vsel %vm363_vm1, %v6657_v36, %v6658_v55 }
 0x55e   : > { %5614 = vmatprep.subr.bf16.mxu1 %v5613_v62  ;;  %v5627_v51 = vpack.c.bf16 %v2292_v39, %v7917_v16  ;;  %v2392_v34 = vsel %vm465_vm6, %v6667_v0, %v6668_v10 }
 0x55f   : > { %5616 = vmatpush1.bf16.msra.mxu1 %v5615_v31  ;;  %v2441_v2 = vsel %vm516_vm7, %v6638_v25, %v6672_v60  ;;  %v2491_v21 = vsel %vm567_vm8, %v6643_v22, %v6677_v61 }
 0x560   : > { %v8241_v29 = vpop.permute.xlu0 %6685  ;;  %v8243_v30 = vpop.permute.xlu1 %6680  ;;  %v5617_v23 = vpack.c.bf16 %v2491_v21, %v2441_v2  ;;  %v2342_v2 = vsel %vm414_vm5, %v6662_v5, %v6663_v13  ;;  %v6678_v21 = vunpack.i.h.bf16 %v8219_v50 }
 0x561   : > { %v5631_v20 = vpack.c.bf16 %v2392_v34, %v2342_v2  ;;  %v6683_v1 = vunpack.i.h.bf16 %v8243_v30 }
 0x562   : > { %5618 = vmatprep.subr.bf16.mxu1 %v5617_v23  ;;  %v6673_v23 = vunpack.i.h.bf16 %v8221_v37 }
 0x563   : > { %5620 = vmatpush1.bf16.msra.mxu1 %v5619_v47 }
 0x564   : > { %v2283_v42 = vpop.permute.xlu0 %2282  ;;  %v6691_v11 = vpop.permute.xlu1 %6690  ;;  %5622 = vmatprep.subr.bf16.mxu1 %v5621_v53  ;;  %v6687_v53 = vunpack.i.l.bf16 %v8241_v29 }
 0x565   : > { %v6693_v22 = vunpack.i.h.bf16 %v6691_v11  ;;  %v6692_v6 = vunpack.i.l.bf16 %v6691_v11 }
 0x567   : > { %5624 = vmatpush1.bf16.msra.mxu1 %v5623_v24  ;;  %v2293_v3 = vsel %vm363_vm1, %v6658_v55, %v6692_v6  ;;  %v2295_v33 = vsel %vm363_vm1, %v6693_v22, %v2283_v42  ;;  %v2294_v7 = vsel %vm363_vm1, %v6692_v6, %v6693_v22  ;;  %v6688_v55 = vunpack.i.h.bf16 %v8241_v29 }
 0x568   : > { %v6701_v36 = vpop.permute.xlu0 %6700  ;;  %v6696_v25 = vpop.permute.xlu1 %6695  ;;  %2899 = vmatprep.subr.mxu1 %v2641_v43  ;;  %v5625_v15 = vpack.c.bf16 %v2293_v3, %v7923_v41  ;;  %v5641_v16 = vpack.c.bf16 %v2295_v33, %v7944_v4  ;;  %v5643_v41 = vpack.c.bf16 %v2294_v7, %v7937_v52  ;;  %v6682_v42 = vunpack.i.l.bf16 %v8243_v30 }
 0x569   : > { %v6703_v62 = vunpack.i.h.bf16 %v6701_v36  ;;  %v6702_v31 = vunpack.i.l.bf16 %v6701_v36  ;;  %v6698_v28 = vunpack.i.h.bf16 %v6696_v25  ;;  %v6697_v57 = vunpack.i.l.bf16 %v6696_v25 }
 0x56a   : > { %5626 = vmatprep.subr.bf16.mxu0 %v5625_v15  ;;  %v2492_v24 = vsel %vm567_vm8, %v6677_v61, %v6678_v21  ;;  %v2543_v50 = vsel %vm618_vm9, %v6682_v42, %v6683_v1  ;;  %v2593_v61 = vsel %vm669_vm10, %v6687_v53, %v6688_v55  ;;  %v2592_v36 = vsel %vm669_vm10, %v8174_v44, %v6687_v53  ;;  %v3608_v53 = vld [vmem:[%s10280_s4 + $0x88] sm:$0xff] }
 0x56b   : > { %2900 = vmatpush1.msra.mxu1 %v2640_v46  ;;  %5628 = vmatpush1.bf16.msra.mxu0 %v5627_v51  ;;  %v2343_v14 = vsel %vm414_vm5, %v6663_v13, %v6697_v57  ;;  %v2394_v27 = vsel %vm465_vm6, %v6702_v31, %v6703_v62  ;;  %v2344_v18 = vsel %vm414_vm5, %v6697_v57, %v6698_v28 }
 0x56c   : > { %v2383_v0 = vpop.permute.xlu0 %2382  ;;  %v2333_v4 = vpop.permute.xlu1 %2332  ;;  %4938 = vmatmul.mubr.msk.f32.vlgmr.msra.gmra.mrb[14].mxu1 %vm752_vm12, %v8083_v63  ;;  %5642 = vmatprep.subr.bf16.mxu1 %v5641_v16  ;;  %v2393_v58 = vsel %vm465_vm6, %v6668_v10, %v6702_v31  ;;  %v5647_v11 = vpack.c.bf16 %v2394_v27, %v2344_v18  ;;  %v2542_v25 = vsel %vm618_vm9, %v8159_v8, %v6682_v42 }
 0x56d   : > { %v2395_v52 = vsel %vm465_vm6, %v6703_v62, %v2383_v0  ;;  %v2345_v5 = vsel %vm414_vm5, %v6698_v28, %v2333_v4  ;;  %5644 = vmatpush1.bf16.msra.mxu1 %v5643_v41  ;;  %v5629_v47 = vpack.c.bf16 %v2393_v58, %v2343_v14  ;;  %3089 = vmatprep.mubr.f32.mxu1 %v6797_v32 }
 0x56e   : > { %v5645_v56 = vpack.c.bf16 %v2395_v52, %v2345_v5  ;;  %v2442_v32 = vsel %vm516_vm7, %v6672_v60, %v6673_v23  ;;  %v5637_v28 = vpack.c.bf16 %v2593_v61, %v2543_v50  ;;  %v5639_v46 = vpack.c.bf16 %v2592_v36, %v2542_v25  ;;  %v3612_v36 = vld [vmem:[%s10280_s4 + $0xa8] sm:$0xff] }
 0x56f   : > { %5630 = vmatprep.subr.bf16.mxu0 %v5629_v47  ;;  %v5635_v37 = vpack.c.bf16 %v2492_v24, %v2442_v32  ;;  %v3592_v24 = vld [vmem:[%s10280_s4 + $0x8] sm:$0xff] }
 0x570   : > { %5632 = vmatpush1.bf16.msra.mxu0 %v5631_v20  ;;  %v6711_v39 = vpop.permute.xlu0 %6710  ;;  %v6706_v22 = vpop.permute.xlu1 %6705  ;;  %5646 = vmatprep.subr.bf16.mxu1 %v5645_v56 }
 0x571   : > { %v6713_v6 = vunpack.i.h.bf16 %v6711_v39  ;;  %v6712_v29 = vunpack.i.l.bf16 %v6711_v39  ;;  %v6708_v10 = vunpack.i.h.bf16 %v6706_v22  ;;  %v6707_v13 = vunpack.i.l.bf16 %v6706_v22  ;;  %5648 = vmatpush1.bf16.msra.mxu1 %v5647_v11  ;;  %v3640_v11 = vld [vmem:[%s10280_s4 + $0x188] sm:$0xff]  ;;  %v3623_v22 = vld [vmem:[%s10280_s4 + $0x100] sm:$0xff] }
 0x573   : > { %v2443_v30 = vsel %vm516_vm7, %v6673_v23, %v6707_v13  ;;  %v2493_v43 = vsel %vm567_vm8, %v6678_v21, %v6712_v29  ;;  %v2494_v60 = vsel %vm567_vm8, %v6712_v29, %v6713_v6  ;;  %v2444_v3 = vsel %vm516_vm7, %v6707_v13, %v6708_v10  ;;  %v3609_v29 = vld [vmem:[%s10280_s4 + $0x90] sm:$0xff]  ;;  %v3610_v13 = vld [vmem:[%s10280_s4 + $0x98] sm:$0xff] }
 0x574   : > { %v2483_v33 = vpop.permute.xlu0 %2482  ;;  %v2433_v51 = vpop.permute.xlu1 %2432  ;;  %v5633_v7 = vpack.c.bf16 %v2493_v43, %v2443_v30  ;;  %v5651_v57 = vpack.c.bf16 %v2494_v60, %v2444_v3  ;;  %v3641_v30 = vld [vmem:[%s10280_s4 + $0x190] sm:$0xff]  ;;  %v3642_v43 = vld [vmem:[%s10280_s4 + $0x198] sm:$0xff]  ;;  %v5661_v50 = vpack.c.bf16 %v3610_v13, %v3609_v29 }
 0x575   : > { %v2495_v15 = vsel %vm567_vm8, %v6713_v6, %v2483_v33  ;;  %v2445_v62 = vsel %vm516_vm7, %v6708_v10, %v2433_v51  ;;  %v3624_v6 = vld [vmem:[%s10280_s4 + $0x108] sm:$0xff]  ;;  %v5693_v61 = vpack.c.bf16 %v3642_v43, %v3641_v30  ;;  %v3594_v60 = vld [vmem:[%s10280_s4 + $0x18] sm:$0xff]  ;;  %v3625_v3 = vld [vmem:[%s10280_s4 + $0x110] sm:$0xff] }
 0x576   : > { %v5649_v31 = vpack.c.bf16 %v2495_v15, %v2445_v62  ;;  %5634 = vmatprep.subr.bf16.mxu0 %v5633_v7  ;;  %v5691_v10 = vpack.c.bf16 %v3624_v6, %v3623_v22  ;;  %v3626_v51 = vld [vmem:[%s10280_s4 + $0x118] sm:$0xff]  ;;  %v3611_v7 = vld [vmem:[%s10280_s4 + $0xa0] sm:$0xff]  ;;  %v3649_v6 = vld [vmem:[%s10280_s4 + $0x1d0] sm:$0xff] }
 0x577   : > { %5636 = vmatpush1.bf16.msra.mxu0 %v5635_v37  ;;  %v3593_v37 = vld [vmem:[%s10280_s4 + $0x10] sm:$0xff]  ;;  %v5695_v25 = vpack.c.bf16 %v3626_v51, %v3625_v3  ;;  %v5665_v15 = vpack.c.bf16 %v3612_v36, %v3611_v7  ;;  %v3643_v62 = vld [vmem:[%s10280_s4 + $0x1a0] sm:$0xff]  ;;  %v3618_v22 = vld [vmem:[%s10280_s4 + $0xd8] sm:$0xff] }
 0x578   : > { %v6721_v34 = vpop.permute.xlu0 %6720  ;;  %v6716_v16 = vpop.permute.xlu1 %6715  ;;  %5638 = vmatprep.subr.bf16.mxu0 %v5637_v28  ;;  %5650 = vmatprep.subr.bf16.mxu1 %v5649_v31  ;;  %v5663_v33 = vpack.c.bf16 %v3594_v60, %v3593_v37  ;;  %v3644_v31 = vld [vmem:[%s10280_s4 + $0x1a8] sm:$0xff]  ;;  %v3595_v28 = vld [vmem:[%s10280_s4 + $0x20] sm:$0xff]  ;;  %v3601_v13 = vld [vmem:[%s10280_s4 + $0x50] sm:$0xff] }
 0x579   : > { %v6723_v2 = vunpack.i.h.bf16 %v6721_v34  ;;  %v6722_v21 = vunpack.i.l.bf16 %v6721_v34  ;;  %v6718_v44 = vunpack.i.h.bf16 %v6716_v16  ;;  %v6717_v41 = vunpack.i.l.bf16 %v6716_v16  ;;  %5652 = vmatpush1.bf16.msra.mxu1 %v5651_v57  ;;  %v3627_v34 = vld [vmem:[%s10280_s4 + $0x120] sm:$0xff]  ;;  %v3628_v16 = vld [vmem:[%s10280_s4 + $0x128] sm:$0xff]  ;;  %v3602_v30 = vld [vmem:[%s10280_s4 + $0x58] sm:$0xff] }
 0x57a   : > { %v5697_v57 = vpack.c.bf16 %v3644_v31, %v3643_v62  ;;  %v3634_v37 = vld [vmem:[%s10280_s4 + $0x158] sm:$0xff]  ;;  %v3619_v3 = vld [vmem:[%s10280_s4 + $0xe0] sm:$0xff]  ;;  %v3652_v36 = vld [vmem:[%s10280_s4 + $0x1e8] sm:$0xff] }
 0x57b   : > { %v2594_v8 = vsel %vm669_vm10, %v6688_v55, %v6722_v21  ;;  %v2544_v14 = vsel %vm618_vm9, %v6683_v1, %v6717_v41  ;;  %5640 = vmatpush1.bf16.msra.mxu0 %v5639_v46  ;;  %v2545_v23 = vsel %vm618_vm9, %v6717_v41, %v6718_v44  ;;  %v2595_v27 = vsel %vm669_vm10, %v6722_v21, %v6723_v2  ;;  %v3639_v1 = vld [vmem:[%s10280_s4 + $0x180] sm:$0xff]  ;;  %v3596_v46 = vld [vmem:[%s10280_s4 + $0x28] sm:$0xff]  ;;  %v3613_v21 = vld [vmem:[%s10280_s4 + $0xb0] sm:$0xff] }
 0x57c   : > { %v5655_v18 = vpack.c.bf16 %v2594_v8, %v2544_v14  ;;  %v2629_v0 = vpop.permute.xlu0 %2628  ;;  %v2627_v4 = vpop.permute.xlu1 %2626  ;;  %v5653_v58 = vpack.c.bf16 %v2595_v27, %v2545_v23  ;;  %v5689_v32 = vpack.c.bf16 %v3640_v11, %v3639_v1  ;;  %v5667_v2 = vpack.c.bf16 %v3596_v46, %v3595_v28  ;;  %v3614_v44 = vld [vmem:[%s10280_s4 + $0xb8] sm:$0xff]  ;;  %v3645_v41 = vld [vmem:[%s10280_s4 + $0x1b0] sm:$0xff]  ;;  %v3599_v1 = vld [vmem:[%s10280_s4 + $0x40] sm:$0xff] }
 0x57d   : > { %v2642_v52 = vsel %vm720_vm11, %v8182_v49, %v2627_v4  ;;  %v2643_v5 = vsel %vm720_vm11, %v2627_v4, %v2629_v0  ;;  %v3607_v49 = vld [vmem:[%s10280_s4 + $0x80] sm:$0xff]  ;;  %v5699_v8 = vpack.c.bf16 %v3628_v16, %v3627_v34  ;;  %v5669_v14 = vpack.c.bf16 %v3614_v44, %v3613_v21  ;;  %v3646_v23 = vld [vmem:[%s10280_s4 + $0x1b8] sm:$0xff]  ;;  %v3597_v27 = vld [vmem:[%s10280_s4 + $0x30] sm:$0xff] }
 0x57e   : > { %2970 = vmatprep.subr.mxu0 %v2643_v5  ;;  %5654 = vmatprep.subr.bf16.mxu1 %v5653_v58  ;;  %v5657_v42 = vpack.c.bf16 %v3608_v53, %v3607_v49  ;;  %v3629_v4 = vld [vmem:[%s10280_s4 + $0x130] sm:$0xff]  ;;  %v3630_v58 = vld [vmem:[%s10280_s4 + $0x138] sm:$0xff]  ;;  %v3616_v5 = vld [vmem:[%s10280_s4 + $0xc8] sm:$0xff] }
 0x57f   : > { %2971 = vmatpush1.msra.mxu0 %v2642_v52  ;;  %5656 = vmatpush1.bf16.msra.mxu1 %v5655_v18  ;;  %v3598_v18 = vld [vmem:[%s10280_s4 + $0x38] sm:$0xff]  ;;  %v3615_v52 = vld [vmem:[%s10280_s4 + $0xc0] sm:$0xff]  ;;  %v3621_v46 = vld [vmem:[%s10280_s4 + $0xf0] sm:$0xff] }
 0x580   : > { %v2633_v47 = vpop.permute.xlu0 %2632  ;;  %v2631_v20 = vpop.permute.xlu1 %2630  ;;  %4939 = vmatmul.mubr.msk.f32.vlgmr.msra.gmra.mrb[16].mxu0 %vm752_vm12, %v8083_v63  ;;  %5658 = vmatprep.subr.bf16.mxu0 %v5657_v42  ;;  %v5673_v49 = vpack.c.bf16 %v3616_v5, %v3615_v52  ;;  %v3600_v42 = vld [vmem:[%s10280_s4 + $0x48] sm:$0xff]  ;;  %v3631_v11 = vld [vmem:[%s10280_s4 + $0x140] sm:$0xff]  ;;  %v3622_v16 = vld [vmem:[%s10280_s4 + $0xf8] sm:$0xff] }
 0x581   : > { %v2644_v55 = vsel %vm720_vm11, %v2629_v0, %v2631_v20  ;;  %v2645_v56 = vsel %vm720_vm11, %v2631_v20, %v2633_v47  ;;  %v5701_v0 = vpack.c.bf16 %v3646_v23, %v3645_v41  ;;  %v3647_v47 = vld [vmem:[%s10280_s4 + $0x1c0] sm:$0xff]  ;;  %v3648_v20 = vld [vmem:[%s10280_s4 + $0x1c8] sm:$0xff]  ;;  %v3654_v21 = vld [vmem:[%s10280_s4 + $0x1f8] sm:$0xff]  ;;  %v5685_v44 = vpack.c.bf16 %v3622_v16, %v3621_v46 }
 0x582   : > { %3041 = vmatprep.subr.mxu1 %v2645_v56  ;;  %v5703_v56 = vpack.c.bf16 %v3630_v58, %v3629_v4  ;;  %v5705_v53 = vpack.c.bf16 %v3648_v20, %v3647_v47  ;;  %v3651_v51 = vld [vmem:[%s10280_s4 + $0x1e0] sm:$0xff]  ;;  %v3637_v23 = vld [vmem:[%s10280_s4 + $0x170] sm:$0xff]  ;;  %v3672_v58 = vld [vmem:[%s10280_s4 + $0x288] sm:$0xff] }
 0x583   : > { %3042 = vmatpush1.msra.mxu1 %v2644_v55  ;;  %v5671_v55 = vpack.c.bf16 %v3598_v18, %v3597_v27  ;;  %v5713_v62 = vpack.c.bf16 %v3652_v36, %v3651_v51  ;;  %v3635_v28 = vld [vmem:[%s10280_s4 + $0x160] sm:$0xff]  ;;  %v3638_v18 = vld [vmem:[%s10280_s4 + $0x178] sm:$0xff]  ;;  %v3704_v47 = vld [vmem:[%s10280_s4 + $0x388] sm:$0xff] }
 0x584   : > { %4940 = vmatmul.mubr.msk.f32.vlgmr.msra.gmra.mrb[16].mxu1 %vm752_vm12, %v8083_v63  ;;  %v3591_v63 = vld [vmem:[%s10280_s4] sm:$0xff]  ;;  %5690 = vmatprep.subr.bf16.mxu1 %v5689_v32 }
 0x585   : > { %v5659_v39 = vpack.c.bf16 %v3592_v24, %v3591_v63  ;;  %5692 = vmatpush3.bf16.msra.mxu1 %v5691_v10  ;;  %v5675_v63 = vpack.c.bf16 %v3600_v42, %v3599_v1  ;;  %v3632_v24 = vld [vmem:[%s10280_s4 + $0x148] sm:$0xff]  ;;  %v3650_v10 = vld [vmem:[%s10280_s4 + $0x1d8] sm:$0xff]  ;;  %v3671_v4 = vld [vmem:[%s10280_s4 + $0x280] sm:$0xff] }
 0x586   : > { %5694 = vmatprep.subr.bf16.mxu1 %v5693_v61  ;;  %v5707_v32 = vpack.c.bf16 %v3632_v24, %v3631_v11  ;;  %v5709_v43 = vpack.c.bf16 %v3650_v10, %v3649_v6  ;;  %v3633_v61 = vld [vmem:[%s10280_s4 + $0x150] sm:$0xff]  ;;  %v3703_v52 = vld [vmem:[%s10280_s4 + $0x380] sm:$0xff]  ;;  %v5721_v5 = vpack.c.bf16 %v3672_v58, %v3671_v4  ;;  %v8610_v58 = vld [vmem:[%s10280_s4 + $0x398] sm:$0xff] }
 0x587   : > { %5660 = vmatpush3.bf16.msra.mxu0 %v5659_v39  ;;  %v3617_v39 = vld [vmem:[%s10280_s4 + $0xd0] sm:$0xff]  ;;  %v5711_v60 = vpack.c.bf16 %v3634_v37, %v3633_v61  ;;  %v5753_v20 = vpack.c.bf16 %v3704_v47, %v3703_v52 }
 0x588   : > { %5662 = vmatprep.subr.bf16.mxu0 %v5661_v50  ;;  %v5677_v29 = vpack.c.bf16 %v3618_v22, %v3617_v39  ;;  %v5679_v50 = vpack.c.bf16 %v3602_v30, %v3601_v13  ;;  %v8605_v4 = vld [vmem:[%s10280_s4 + $0x390] sm:$0xff] }
 0x589   : > { %5696 = vmatpush3.bf16.msra.mxu1 %v5695_v25  ;;  %v3603_v25 = vld [vmem:[%s10280_s4 + $0x60] sm:$0xff]  ;;  %v8615_v52 = vld [vmem:[%s10280_s4 + $0x210] sm:$0xff] }
 0x58a   : > { %5698 = vmatprep.subr.bf16.mxu1 %v5697_v57  ;;  %v3636_v57 = vld [vmem:[%s10280_s4 + $0x168] sm:$0xff]  ;;  %10335 = vst [vmem:[#allocation5_spill] sm:$0xff] %v8615_v52  ;;  %v8787_v52 = vld [vmem:[%s10280_s4 + $0x2d8] sm:$0xff] }
 0x58b   : > { %5664 = vmatpush3.bf16.msra.mxu0 %v5663_v33  ;;  %v3620_v33 = vld [vmem:[%s10280_s4 + $0xe8] sm:$0xff]  ;;  %v5715_v34 = vpack.c.bf16 %v3636_v57, %v3635_v28  ;;  %10360 = vst [vmem:[#allocation30_spill] sm:$0xff] %v8787_v52  ;;  %v8897_v52 = vld [vmem:[%s10280_s4 + $0x2f0] sm:$0xff] }
 0x58c   : > { %5666 = vmatprep.subr.bf16.mxu0 %v5665_v15  ;;  %v5681_v7 = vpack.c.bf16 %v3620_v33, %v3619_v3  ;;  %v3604_v15 = vld [vmem:[%s10280_s4 + $0x68] sm:$0xff]  ;;  %10376 = vst [vmem:[#allocation46_spill] sm:$0xff] %v8897_v52 }
 0x58d   : > { %5700 = vmatpush3.bf16.msra.mxu1 %v5699_v8  ;;  %v5683_v31 = vpack.c.bf16 %v3604_v15, %v3603_v25  ;;  %v3605_v8 = vld [vmem:[%s10280_s4 + $0x70] sm:$0xff] }
 0x58e   : > { %5702 = vmatprep.subr.bf16.mxu1 %v5701_v0  ;;  %v5719_v0 = vpack.c.bf16 %v3638_v18, %v3637_v23  ;;  %v8585_v23 = vld [vmem:[%s10280_s4 + $0x300] sm:$0xff]  ;;  %v8595_v18 = vld [vmem:[%s10280_s4 + $0x290] sm:$0xff] }
 0x58f   : > { %5668 = vmatpush3.bf16.msra.mxu0 %v5667_v2  ;;  %v3653_v2 = vld [vmem:[%s10280_s4 + $0x1f0] sm:$0xff] }
 0x590   : > { %5670 = vmatprep.subr.bf16.mxu0 %v5669_v14  ;;  %v5717_v41 = vpack.c.bf16 %v3654_v21, %v3653_v2  ;;  %v3606_v14 = vld [vmem:[%s10280_s4 + $0x78] sm:$0xff] }
 0x591   : > { %5704 = vmatpush3.bf16.msra.mxu1 %v5703_v56  ;;  %v5687_v27 = vpack.c.bf16 %v3606_v14, %v3605_v8  ;;  %v8524_v56 = vpop.permute.xlu1 %2664 }
 0x592   : > { %5706 = vmatprep.subr.bf16.mxu1 %v5705_v53 }
 0x593   : > { %5672 = vmatpush3.bf16.msra.mxu0 %v5671_v55 }
 0x594   : > { %5674 = vmatprep.subr.bf16.mxu0 %v5673_v49 }
 0x595   : > { %5708 = vmatpush3.bf16.msra.mxu1 %v5707_v32 }
 0x596   : > { %5710 = vmatprep.subr.bf16.mxu1 %v5709_v43 }
 0x597   : > { %5676 = vmatpush3.bf16.msra.mxu0 %v5675_v63 }
 0x598   : > { %5678 = vmatprep.subr.bf16.mxu0 %v5677_v29 }
 0x599   : > { %5712 = vmatpush3.bf16.msra.mxu1 %v5711_v60 }
 0x59a   : > { %5714 = vmatprep.subr.bf16.mxu1 %v5713_v62 }
 0x59b   : > { %5680 = vmatpush3.bf16.msra.mxu0 %v5679_v50 }
 0x59c   : > { %5682 = vmatprep.subr.bf16.mxu0 %v5681_v7 }
 0x59d   : > { %5716 = vmatpush3.bf16.msra.mxu1 %v5715_v34 }
 0x59e   : > { %5718 = vmatprep.subr.bf16.mxu1 %v5717_v41  ;;  %v8577_v41 = vld [vmem:[%s10280_s4 + $0x208] sm:$0xff] }
 0x59f   : > { %5684 = vmatpush3.bf16.msra.mxu0 %v5683_v31 }
 0x5a0   : > { %5686 = vmatprep.subr.bf16.mxu0 %v5685_v44  ;;  %v8572_v44 = vld [vmem:[%s10280_s4 + $0x200] sm:$0xff] }
 0x5a1   : > { %5720 = vmatpush3.bf16.msra.mxu1 %v5719_v0  ;;  %v8600_v0 = vld [vmem:[%s10280_s4 + $0x298] sm:$0xff] }
 0x5a2   : > { %5754 = vmatprep.subr.bf16.mxu1 %v5753_v20 }
 0x5a3   : > { %5688 = vmatpush3.bf16.msra.mxu0 %v5687_v27  ;;  %v8590_v27 = vld [vmem:[%s10280_s4 + $0x308] sm:$0xff] }
 0x5a4   : > { %5722 = vmatprep.subr.bf16.mxu0 %v5721_v5  ;;  %v8620_v5 = vld [vmem:[%s10280_s4 + $0x218] sm:$0xff] }
 0x5a5   : > { %10336 = vst [vmem:[#allocation6_spill] sm:$0xff] %v8620_v5  ;;  %v8792_v5 = vld [vmem:[%s10280_s4 + $0x3d0] sm:$0xff] }
 0x5a6   : > { %10361 = vst [vmem:[#allocation31_spill] sm:$0xff] %v8792_v5 }
 0x612   : > { %v2736_v55 = vpop.f32.mrb[12].mxu0 }
 0x613   : > { %v2738_v49 = vpop.f32.mrb[13].mxu0  ;;  %v2737_v53 = vadd.f32 %v2736_v55, %v8524_v56 }
 0x614   : > { %v2739_v34 = vadd.f32 %v2738_v49, %v8524_v56  ;;  %v8627_v49 = vld [vmem:[%s10280_s4 + $0x310] sm:$0xff] }
 0x615   : > { %v3096_v1 = vmax.f32 %v2737_v53, 0.0  ;;  %v8632_v53 = vld [vmem:[%s10280_s4 + $0x318] sm:$0xff] }
 0x617   : > { %v2807_v42 = vpop.f32.mrb[12].mxu1  ;;  %v8528_v11 = vmul.f32 %v3096_v1, %v7293_v17  ;;  %v8637_v1 = vld [vmem:[%s10280_s4 + $0x2a0] sm:$0xff] }
 0x618   : > { %v2809_v63 = vpop.f32.mrb[13].mxu1  ;;  %v8580_v14 = vadd.f32 %v2807_v42, %v8524_v56  ;;  %10337 = vst [vmem:[#allocation7_spill] sm:$0xff] %v8637_v1  ;;  %v8642_v42 = vld [vmem:[%s10280_s4 + $0x2a8] sm:$0xff]  ;;  %v8809_v1 = vld [vmem:[%s10280_s4 + $0x250] sm:$0xff] }
 0x619   : > { %v2810_v24 = vadd.f32 %v2809_v63, %v8524_v56  ;;  %v3124_v39 = vrot.slane %v8528_v11, 1  ;;  %v3130_v22 = vrot.slane %v8528_v11, 2  ;;  %v3136_v29 = vrot.slane %v8528_v11, 3  ;;  %10338 = vst [vmem:[#allocation8_spill] sm:$0xff] %v8642_v42  ;;  %10363 = vst [vmem:[#allocation33_spill] sm:$0xff] %v8809_v1  ;;  %v8814_v42 = vld [vmem:[%s10280_s4 + $0x258] sm:$0xff] }
 0x61a   : > { %v3121_v10 = vsel %vm3120_vm13, %v8528_v11, 0.0  ;;  %v3148_v28 = vrot.slane %v8528_v11, 5  ;;  %v3142_v46 = vrot.slane %v8528_v11, 4  ;;  %10364 = vst [vmem:[#allocation34_spill] sm:$0xff] %v8814_v42  ;;  %v3154_v52 = vrot.slane %v8528_v11, 6 }
 0x61b   : > { %v3099_v32 = vmax.f32 %v2810_v24, 0.0  ;;  %v3125_v50 = vsel %vm3120_vm13, %v3124_v39, 0.0  ;;  %v3137_v3 = vsel %vm3120_vm13, %v3136_v29, 0.0  ;;  %v8655_v29 = vld [vmem:[%s10280_s4 + $0x3a8] sm:$0xff] }
 0x61c   : > { %v3149_v16 = vsel %vm3120_vm13, %v3148_v28, 0.0  ;;  %v3143_v47 = vsel %vm3120_vm13, %v3142_v46, 0.0  ;;  %v8726_v28 = vld [vmem:[%s10280_s4 + $0x2c0] sm:$0xff] }
 0x61d   : > { %v8534_v6 = vmul.f32 %v3099_v32, %v7308_v45  ;;  %v3131_v45 = vsel %vm3120_vm13, %v3130_v22, 0.0  ;;  %v3097_v32 = vmax.f32 %v2739_v34, 0.0  ;;  %v8650_v22 = vld [vmem:[%s10280_s4 + $0x3a0] sm:$0xff]  ;;  %10350 = vst [vmem:[#allocation20_spill] sm:$0xff] %v8726_v28  ;;  %v8741_v34 = vld [vmem:[%s10280_s4 + $0x3c8] sm:$0xff] }
 0x61e   : > { %v8736_v46 = vld [vmem:[%s10280_s4 + $0x3c0] sm:$0xff]  ;;  %10353 = vst [vmem:[#allocation23_spill] sm:$0xff] %v8741_v34 }
 0x61f   : > { %v3169_v17 = vrot.slane %v8534_v6, 1  ;;  %v3166_v13 = vsel %vm3120_vm13, %v8534_v6, 0.0  ;;  %v3175_v30 = vrot.slane %v8534_v6, 2  ;;  %v3181_v43 = vrot.slane %v8534_v6, 3  ;;  %10352 = vst [vmem:[#allocation22_spill] sm:$0xff] %v8736_v46  ;;  %v8881_v46 = vld [vmem:[%s10280_s4 + $0x360] sm:$0xff] }
 0x620   : > { %v3325_v61 = vrot.slane %v3166_v13, 7  ;;  %v3193_v57 = vrot.slane %v8534_v6, 5  ;;  %v3187_v21 = vrot.slane %v8534_v6, 4  ;;  %v8670_v13 = vld [vmem:[%s10280_s4 + $0x320] sm:$0xff]  ;;  %10374 = vst [vmem:[#allocation44_spill] sm:$0xff] %v8881_v46 }
 0x621   : > { %v3170_v37 = vsel %vm3120_vm13, %v3169_v17, 0.0  ;;  %v3176_v60 = vsel %vm3120_vm13, %v3175_v30, 0.0  ;;  %v3182_v33 = vsel %vm3120_vm13, %v3181_v43, 0.0  ;;  %v8665_v17 = vld [vmem:[%s10280_s4 + $0x228] sm:$0xff]  ;;  %10340 = vst [vmem:[#allocation10_spill] sm:$0xff] %v8670_v13  ;;  %v8680_v43 = vld [vmem:[%s10280_s4 + $0x2b0] sm:$0xff] }
 0x622   : > { %v3328_v51 = vrot.slane %v3170_v37, 7  ;;  %v8551_v7 = vsel %vm3120_vm13, %v3121_v10, %v3325_v61  ;;  %v3331_v36 = vrot.slane %v3176_v60, 7  ;;  %v3334_v25 = vrot.slane %v3182_v33, 7  ;;  %v8660_v10 = vld [vmem:[%s10280_s4 + $0x220] sm:$0xff]  ;;  %v8675_v30 = vld [vmem:[%s10280_s4 + $0x328] sm:$0xff]  ;;  %10342 = vst [vmem:[#allocation12_spill] sm:$0xff] %v8680_v43 }
 0x623   : > { %v3194_v2 = vsel %vm3120_vm13, %v3193_v57, 0.0  ;;  %v3188_v20 = vsel %vm3120_vm13, %v3187_v21, 0.0  ;;  %10339 = vst [vmem:[#allocation9_spill] sm:$0xff] %v8660_v10  ;;  %10341 = vst [vmem:[#allocation11_spill] sm:$0xff] %v8675_v30  ;;  %v8690_v61 = vld [vmem:[%s10280_s4 + $0x3b0] sm:$0xff]  ;;  %v8705_v60 = vld [vmem:[%s10280_s4 + $0x238] sm:$0xff] }
 0x624   : > { %v8554_v15 = vsel %vm3120_vm13, %v3125_v50, %v3328_v51  ;;  %v8557_v62 = vsel %vm3120_vm13, %v3131_v45, %v3331_v36  ;;  %v8560_v31 = vsel %vm3120_vm13, %v3137_v3, %v3334_v25  ;;  %v3340_v8 = vrot.slane %v3194_v2, 7  ;;  %v8685_v50 = vld [vmem:[%s10280_s4 + $0x2b8] sm:$0xff]  ;;  %10344 = vst [vmem:[#allocation14_spill] sm:$0xff] %v8690_v61  ;;  %v8700_v37 = vld [vmem:[%s10280_s4 + $0x230] sm:$0xff]  ;;  %10347 = vst [vmem:[#allocation17_spill] sm:$0xff] %v8705_v60 }
 0x625   : > { %v3337_v24 = vrot.slane %v3188_v20, 7  ;;  %10343 = vst [vmem:[#allocation13_spill] sm:$0xff] %v8685_v50  ;;  %v8695_v45 = vld [vmem:[%s10280_s4 + $0x3b8] sm:$0xff]  ;;  %10346 = vst [vmem:[#allocation16_spill] sm:$0xff] %v8700_v37  ;;  %v3098_v33 = vmax.f32 %v8580_v14, 0.0  ;;  %v8716_v36 = vld [vmem:[%s10280_s4 + $0x330] sm:$0xff]  ;;  %v8777_v14 = vmul.f32 %v3097_v32, %v7299_v38 }
 0x626   : > { %v8645_v63 = vsel %vm3120_vm13, %v3149_v16, %v3340_v8  ;;  %10345 = vst [vmem:[#allocation15_spill] sm:$0xff] %v8695_v45  ;;  %10348 = vst [vmem:[#allocation18_spill] sm:$0xff] %v8716_v36  ;;  %v8721_v25 = vld [vmem:[%s10280_s4 + $0x338] sm:$0xff]  ;;  %v8731_v57 = vld [vmem:[%s10280_s4 + $0x2c8] sm:$0xff] }
 0x627   : > { %v8708_v3 = vsel %vm3120_vm13, %v3143_v47, %v3337_v24  ;;  %10349 = vst [vmem:[#allocation19_spill] sm:$0xff] %v8721_v25  ;;  %10351 = vst [vmem:[#allocation21_spill] sm:$0xff] %v8731_v57  ;;  %v8746_v16 = vld [vmem:[%s10280_s4 + $0x240] sm:$0xff]  ;;  %v8751_v2 = vld [vmem:[%s10280_s4 + $0x248] sm:$0xff]  ;;  %v8822_v51 = vmul.f32 %v3098_v33, %v7303_v26  ;;  %v3132_v32 = vrot.slane %v8777_v14, 2  ;;  %v3122_v21 = vsel %vm3120_vm13, %v8777_v14, 0.0 }
 0x628   : > { %10354 = vst [vmem:[#allocation24_spill] sm:$0xff] %v8746_v16  ;;  %10355 = vst [vmem:[#allocation25_spill] sm:$0xff] %v8751_v2  ;;  %v8764_v20 = vld [vmem:[%s10280_s4 + $0x340] sm:$0xff]  ;;  %v8769_v24 = vld [vmem:[%s10280_s4 + $0x348] sm:$0xff]  ;;  %v3144_v46 = vrot.slane %v8777_v14, 4 }
 0x629   : > { %10356 = vst [vmem:[#allocation26_spill] sm:$0xff] %v8764_v20  ;;  %10357 = vst [vmem:[#allocation27_spill] sm:$0xff] %v8769_v24  ;;  %v8774_v8 = vld [vmem:[%s10280_s4 + $0x2d0] sm:$0xff]  ;;  %v8797_v38 = vld [vmem:[%s10280_s4 + $0x3d8] sm:$0xff]  ;;  %v3140_v1 = vrot.slane %v8822_v51, 3  ;;  %v3134_v42 = vrot.slane %v8822_v51, 2 }
 0x62a   : > { %10358 = vst [vmem:[#allocation28_spill] sm:$0xff] %v8774_v8  ;;  %10359 = vst [vmem:[#allocation29_spill] sm:$0xff] %v8777_v14  ;;  %v8833_v30 = vld [vmem:[%s10280_s4 + $0x358] sm:$0xff]  ;;  %v8838_v10 = vld [vmem:[%s10280_s4 + $0x2e0] sm:$0xff]  ;;  %v3126_v8 = vrot.slane %v8777_v14, 1  ;;  %v8922_v16 = vsel %vm3120_vm13, %v3132_v32, 0.0 }
 0x62b   : > { %v2878_v55 = vpop.f32.mrb[14].mxu0  ;;  %10362 = vst [vmem:[#allocation32_spill] sm:$0xff] %v8797_v38  ;;  %10366 = vst [vmem:[#allocation36_spill] sm:$0xff] %v8822_v51  ;;  %v8843_v26 = vld [vmem:[%s10280_s4 + $0x2e8] sm:$0xff]  ;;  %v8856_v37 = vld [vmem:[%s10280_s4 + $0x3e0] sm:$0xff] }
 0x62c   : > { %v2880_v39 = vpop.f32.mrb[15].mxu0  ;;  %v2879_v47 = vadd.f32 %v2878_v55, %v8524_v56  ;;  %10367 = vst [vmem:[#allocation37_spill] sm:$0xff] %v8833_v30  ;;  %10368 = vst [vmem:[#allocation38_spill] sm:$0xff] %v8838_v10  ;;  %v8861_v60 = vld [vmem:[%s10280_s4 + $0x3e8] sm:$0xff]  ;;  %v8866_v13 = vld [vmem:[%s10280_s4 + $0x260] sm:$0xff]  ;;  %v3138_v30 = vrot.slane %v8777_v14, 3 }
 0x62d   : > { %v2881_v55 = vadd.f32 %v2880_v39, %v8524_v56  ;;  %v8819_v39 = vld [vmem:[%s10280_s4 + $0x350] sm:$0xff]  ;;  %10369 = vst [vmem:[#allocation39_spill] sm:$0xff] %v8843_v26  ;;  %10370 = vst [vmem:[#allocation40_spill] sm:$0xff] %v8856_v37  ;;  %v8876_v2 = vld [vmem:[%s10280_s4 + $0x268] sm:$0xff]  ;;  %v3127_v32 = vsel %vm3120_vm13, %v3126_v8, 0.0  ;;  %v8940_v37 = vsel %vm3120_vm13, %v3140_v1, 0.0 }
 0x62e   : > { %10365 = vst [vmem:[#allocation35_spill] sm:$0xff] %v8819_v39  ;;  %10371 = vst [vmem:[#allocation41_spill] sm:$0xff] %v8861_v60  ;;  %v3100_v33 = vmax.f32 %v2879_v47, 0.0  ;;  %v8886_v47 = vld [vmem:[%s10280_s4 + $0x368] sm:$0xff]  ;;  %v8902_v20 = vld [vmem:[%s10280_s4 + $0x2f8] sm:$0xff]  ;;  %v3199_v8 = vrot.slane %v8534_v6, 6 }
 0x62f   : > { %10372 = vst [vmem:[#allocation42_spill] sm:$0xff] %v8866_v13  ;;  %10373 = vst [vmem:[#allocation43_spill] sm:$0xff] %v8876_v2  ;;  %v3101_v34 = vmax.f32 %v2881_v55, 0.0  ;;  %v3128_v55 = vrot.slane %v8822_v51, 1  ;;  %v3152_v13 = vrot.slane %v8822_v51, 5  ;;  %v8954_v1 = vsel %vm3120_vm13, %v3138_v30, 0.0 }
 0x630   : > { %10375 = vst [vmem:[#allocation45_spill] sm:$0xff] %v8886_v47  ;;  %10377 = vst [vmem:[#allocation47_spill] sm:$0xff] %v8902_v20  ;;  %v8917_v5 = vmul.f32 %v3100_v33, %v7318_v48  ;;  %v3146_v47 = vrot.slane %v8822_v51, 4  ;;  %v3123_v48 = vsel %vm3120_vm13, %v8822_v51, 0.0 }
 0x631   : > { %v8927_v39 = vmul.f32 %v3101_v34, %v7322_v54  ;;  %v8935_v33 = vsel %vm3120_vm13, %v3128_v55, 0.0  ;;  %v8943_v54 = vsel %vm3120_vm13, %v3134_v42, 0.0  ;;  %v3156_v34 = vrot.slane %v8777_v14, 6 }
 0x632   : > { %10378 = vst [vmem:[#allocation48_spill] sm:$0xff] %v8917_v5  ;;  %v3167_v20 = vsel %vm3120_vm13, %v8917_v5, 0.0  ;;  %v3177_v55 = vrot.slane %v8917_v5, 2  ;;  %v3171_v2 = vrot.slane %v8917_v5, 1  ;;  %v8957_v42 = vsel %vm3120_vm13, %v3144_v46, 0.0 }
 0x633   : > { %10379 = vst [vmem:[#allocation49_spill] sm:$0xff] %v8927_v39  ;;  %v3173_v60 = vrot.slane %v8927_v39, 1  ;;  %v8960_v10 = vsel %vm3120_vm13, %v3146_v47, 0.0  ;;  %v3185_v26 = vrot.slane %v8927_v39, 3  ;;  %v3179_v51 = vrot.slane %v8927_v39, 2 }
 0x634   : > { %v8965_v38 = vsel %vm3120_vm13, %v3152_v13, 0.0  ;;  %v3326_v57 = vrot.slane %v3167_v20, 7  ;;  %v3168_v30 = vsel %vm3120_vm13, %v8927_v39, 0.0  ;;  %v8971_v46 = vsel %vm3120_vm13, %v3156_v34, 0.0 }
 0x635   : > { %10380 = vst [vmem:[#allocation50_spill] sm:$0xff] %v8965_v38  ;;  %10381 = vst [vmem:[#allocation51_spill] sm:$0xff] %v8971_v46  ;;  %v3155_v47 = vsel %vm3120_vm13, %v3154_v52, 0.0  ;;  %v3178_v61 = vsel %vm3120_vm13, %v3177_v55, 0.0  ;;  %v3172_v13 = vsel %vm3120_vm13, %v3171_v2, 0.0  ;;  %v3200_v38 = vsel %vm3120_vm13, %v3199_v8, 0.0 }
 0x636   : > { %v3174_v20 = vsel %vm3120_vm13, %v3173_v60, 0.0  ;;  %v3186_v52 = vsel %vm3120_vm13, %v3185_v26, 0.0  ;;  %v3183_v45 = vrot.slane %v8917_v5, 3  ;;  %v3327_v55 = vrot.slane %v3168_v30, 7 }
 0x637   : > { %v3332_v43 = vrot.slane %v3178_v61, 7  ;;  %v3329_v2 = vrot.slane %v3172_v13, 7  ;;  %v3343_v50 = vrot.slane %v3200_v38, 7  ;;  %v8989_v60 = vsel %vm3120_vm13, %v3122_v21, %v3326_v57 }
 0x638   : > { %v3330_v14 = vrot.slane %v3174_v20, 7  ;;  %v3336_v34 = vrot.slane %v3186_v52, 7  ;;  %v3189_v26 = vrot.slane %v8917_v5, 4  ;;  %v9001_v57 = vsel %vm3120_vm13, %v3123_v48, %v3327_v55 }
 0x639   : > { %v9005_v21 = vsel %vm3120_vm13, %v8922_v16, %v3332_v43  ;;  %v3184_v16 = vsel %vm3120_vm13, %v3183_v45, 0.0  ;;  %v3197_v45 = vrot.slane %v8927_v39, 5 }
 0x63a   : > { %v9022_v43 = vsel %vm3120_vm13, %v8935_v33, %v3330_v14  ;;  %v3190_v55 = vsel %vm3120_vm13, %v3189_v26, 0.0  ;;  %v3191_v14 = vrot.slane %v8927_v39, 4 }
 0x63f   : > { %v2949_v28 = vpop.f32.mrb[14].mxu1 }
 0x640   : > { %v2950_v36 = vadd.f32 %v2949_v28, %v8524_v56  ;;  %v2951_v25 = vpop.f32.mrb[15].mxu1  ;;  %v3180_v28 = vsel %vm3120_vm13, %v3179_v51, 0.0  ;;  %v8993_v51 = vsel %vm3120_vm13, %v3155_v47, %v3343_v50  ;;  %v9008_v50 = vsel %vm3120_vm13, %v3127_v32, %v3329_v2 }
 0x641   : > { %v2952_v24 = vadd.f32 %v2951_v25, %v8524_v56 }
 0x642   : > { %v3102_v46 = vmax.f32 %v2950_v36, 0.0  ;;  %v3333_v36 = vrot.slane %v3180_v28, 7 }
 0x643   : > { %v3103_v25 = vmax.f32 %v2952_v24, 0.0 }
 0x644   : > { %v8986_v8 = vmul.f32 %v3102_v46, %v7327_v35  ;;  %v9031_v28 = vsel %vm3120_vm13, %v8943_v54, %v3333_v36 }
 0x645   : > { %v9011_v46 = vmul.f32 %v3103_v25, %v7331_v59  ;;  %v9027_v59 = vsel %vm3120_vm13, %v8940_v37, %v3336_v34 }
 0x646   : > { %v3214_v30 = vrot.slane %v8986_v8, 1  ;;  %v3211_v61 = vsel %vm3120_vm13, %v8986_v8, 0.0  ;;  %v3220_v35 = vrot.slane %v8986_v8, 2  ;;  %v3226_v24 = vrot.slane %v8986_v8, 3 }
 0x647   : > { %v3397_v38 = vrot.slane %v3211_v61, 6  ;;  %v3222_v33 = vrot.slane %v9011_v46, 2  ;;  %v3216_v37 = vrot.slane %v9011_v46, 1  ;;  %v3238_v54 = vrot.slane %v8986_v8, 5 }
 0x648   : > { %v3215_v47 = vsel %vm3120_vm13, %v3214_v30, 0.0  ;;  %v3221_v13 = vsel %vm3120_vm13, %v3220_v35, 0.0  ;;  %v3227_v20 = vsel %vm3120_vm13, %v3226_v24, 0.0  ;;  %v3234_v36 = vrot.slane %v9011_v46, 4 }
 0x649   : > { %v3400_v52 = vrot.slane %v3215_v47, 6  ;;  %v9018_v48 = vsel %vm3541_vm14, %v8551_v7, %v3397_v38  ;;  %v3403_v32 = vrot.slane %v3221_v13, 6  ;;  %v3406_v2 = vrot.slane %v3227_v20, 6 }
 0x64a   : > { %v3232_v26 = vrot.slane %v8986_v8, 4  ;;  %v3335_v30 = vrot.slane %v3184_v16, 7  ;;  %v3338_v61 = vrot.slane %v3190_v55, 7  ;;  %v3239_v35 = vsel %vm3120_vm13, %v3238_v54, 0.0 }
 0x64b   : > { %v9036_v7 = vsel %vm3541_vm14, %v8554_v15, %v3400_v52  ;;  %v9044_v34 = vsel %vm3541_vm14, %v8557_v62, %v3403_v32  ;;  %v9049_v25 = vsel %vm3541_vm14, %v8560_v31, %v3406_v2  ;;  %v3228_v15 = vrot.slane %v9011_v46, 3 }
 0x64c   : > { %v3201_v24 = vrot.slane %v8917_v5, 6  ;;  %v3412_v62 = vrot.slane %v3239_v35, 6  ;;  %v3233_v38 = vsel %vm3120_vm13, %v3232_v26, 0.0  ;;  %v3192_v47 = vsel %vm3120_vm13, %v3191_v14, 0.0 }
 0x64d   : > { %v3195_v31 = vrot.slane %v8917_v5, 5  ;;  %v3212_v13 = vsel %vm3120_vm13, %v9011_v46, 0.0  ;;  %v3223_v20 = vsel %vm3120_vm13, %v3222_v33, 0.0  ;;  %v3217_v52 = vsel %vm3120_vm13, %v3216_v37, 0.0 }
 0x64e   : > { %v3409_v16 = vrot.slane %v3233_v38, 6  ;;  %v3229_v32 = vsel %vm3120_vm13, %v3228_v15, 0.0  ;;  %v3235_v55 = vsel %vm3120_vm13, %v3234_v36, 0.0  ;;  %v9067_v2 = vsel %vm3541_vm14, %v8645_v63, %v3412_v62 }
 0x64f   : > { %v9070_v14 = vsel %vm3120_vm13, %v3197_v45, 0.0  ;;  %v3339_v26 = vrot.slane %v3192_v47, 7  ;;  %v9077_v33 = vsel %vm3120_vm13, %v3201_v24, 0.0  ;;  %v3246_v37 = vrot.slane %v9011_v46, 6 }
 0x650   : > { %v9074_v54 = vsel %vm3541_vm14, %v8708_v3, %v3409_v16  ;;  %v3398_v36 = vrot.slane %v3212_v13, 6  ;;  %v3404_v35 = vrot.slane %v3223_v20, 6  ;;  %v3401_v38 = vrot.slane %v3217_v52, 6 }
 0x651   : > { %v3527_v63 = vsel %vm3120_vm13, %v8954_v1, %v3335_v30  ;;  %v3407_v5 = vrot.slane %v3229_v32, 6  ;;  %v3410_v3 = vrot.slane %v3235_v55, 6  ;;  %v3530_v47 = vsel %vm3120_vm13, %v8957_v42, %v3338_v61 }
 0x652   : > { %v3342_v16 = vrot.slane %v9070_v14, 7  ;;  %v3344_v39 = vrot.slane %v9077_v33, 7  ;;  %v9089_v13 = vsel %vm3120_vm13, %v3195_v31, 0.0  ;;  %v9093_v1 = vsel %vm3120_vm13, %v8960_v10, %v3339_v26  ;;  %v10420_v33 = vld [vmem:[#allocation29_spill] sm:$0xff] }
 0x653   : > { %v3020_v15 = vpop.f32.mrb[16].mxu0  ;;  %v9096_v30 = vsel %vm3120_vm13, %v3246_v37, 0.0  ;;  %v10382_v52 = vrot.slane %v8534_v6, 7  ;;  %v3543_v55 = vsel %vm3541_vm14, %v8989_v60, %v3398_v36  ;;  %v3549_v31 = vsel %vm3541_vm14, %v9005_v21, %v3404_v35 }
 0x654   : > { %v3021_v45 = vadd.f32 %v3020_v15, %v8524_v56  ;;  %v3022_v62 = vpop.f32.mrb[17].mxu0  ;;  %v9109_v10 = vsel %vm3541_vm14, %v9008_v50, %v3401_v38  ;;  %v9116_v15 = vsel %vm3541_vm14, %v3527_v63, %v3407_v5  ;;  %v3416_v50 = vrot.slane %v9096_v30, 6  ;;  %v10423_v30 = vld [vmem:[#allocation24_spill] sm:$0xff] }
 0x655   : > { %v3023_v24 = vadd.f32 %v3022_v62, %v8524_v56  ;;  %v9101_v42 = vsel %vm3120_vm13, %v10382_v52, 0.0  ;;  %v3240_v36 = vrot.slane %v9011_v46, 5 }
 0x656   : > { %v3104_v20 = vmax.f32 %v3021_v45, 0.0  ;;  %v9119_v45 = vsel %vm3541_vm14, %v3530_v47, %v3410_v3 }
 0x657   : > { %v3105_v61 = vmax.f32 %v3023_v24, 0.0  ;;  %v3091_v32 = vpop.f32.mrb[16].mxu1 }
 0x658   : > { %v9112_v26 = vmul.f32 %v3104_v20, %v7343_v40  ;;  %v3092_v6 = vadd.f32 %v3091_v32, %v8524_v56  ;;  %v3093_v37 = vpop.f32.mrb[17].mxu1 }
 0x659   : > { %v9122_v60 = vmul.f32 %v3105_v61, %v7346_v9  ;;  %v3094_v21 = vadd.f32 %v3093_v37, %v8524_v56 }
 0x65a   : > { %v3106_v40 = vmax.f32 %v3092_v6, 0.0  ;;  %v3213_v35 = vsel %vm3120_vm13, %v9112_v26, 0.0  ;;  %v3218_v38 = vrot.slane %v9112_v26, 1  ;;  %v3230_v5 = vrot.slane %v9112_v26, 3 }
 0x65b   : > { %v3107_v63 = vmax.f32 %v3094_v21, 0.0  ;;  %v3259_v62 = vrot.slane %v9122_v60, 1  ;;  %v3256_v9 = vsel %vm3120_vm13, %v9122_v60, 0.0  ;;  %v3399_v3 = vrot.slane %v3213_v35, 6 }
 0x65c   : > { %v9135_v56 = vmul.f32 %v3106_v40, %v7350_v12  ;;  %v3469_v47 = vrot.slane %v3256_v9, 5  ;;  %v3219_v24 = vsel %vm3120_vm13, %v3218_v38, 0.0  ;;  %v3265_v20 = vrot.slane %v9122_v60, 2 }
 0x65d   : > { %v9140_v52 = vmul.f32 %v3107_v63, %v7354_v19  ;;  %v3260_v61 = vsel %vm3120_vm13, %v3259_v62, 0.0  ;;  %v3544_v32 = vsel %vm3541_vm14, %v9001_v57, %v3399_v3  ;;  %v3402_v6 = vrot.slane %v3219_v24, 6 }
 0x65e   : > { %v3472_v37 = vrot.slane %v3260_v61, 5  ;;  %v3257_v21 = vsel %vm3120_vm13, %v9135_v56, 0.0  ;;  %v3567_v12 = vsel %vm3566_vm15, %v9018_v48, %v3469_v47  ;;  %v3267_v40 = vrot.slane %v9135_v56, 2 }
 0x65f   : > { %v3470_v35 = vrot.slane %v3257_v21, 5  ;;  %v3258_v19 = vsel %vm3120_vm13, %v9140_v52, 0.0  ;;  %v3263_v38 = vrot.slane %v9140_v52, 1  ;;  %v3547_v63 = vsel %vm3541_vm14, %v9022_v43, %v3402_v6 }
 0x660   : > { %v3570_v57 = vsel %vm3566_vm15, %v9036_v7, %v3472_v37  ;;  %v3471_v62 = vrot.slane %v3258_v19, 5  ;;  %v3268_v9 = vsel %vm3120_vm13, %v3267_v40, 0.0  ;;  %v3261_v3 = vrot.slane %v9135_v56, 1 }
 0x661   : > { %4116 = vmatprep.mubr.f32.mxu1 %v3570_v57  ;;  %v3568_v48 = vsel %vm3566_vm15, %v3543_v55, %v3470_v35  ;;  %v3476_v47 = vrot.slane %v3268_v9, 5  ;;  %v3264_v24 = vsel %vm3120_vm13, %v3263_v38, 0.0  ;;  %v3266_v61 = vsel %vm3120_vm13, %v3265_v20, 0.0 }
 0x662   : > { %4046 = vmatprep.mubr.f32.mxu0 %v3568_v48  ;;  %v3569_v21 = vsel %vm3566_vm15, %v3544_v32, %v3471_v62  ;;  %v3474_v43 = vrot.slane %v3264_v24, 5  ;;  %v3262_v6 = vsel %vm3120_vm13, %v3261_v3, 0.0  ;;  %v3475_v7 = vrot.slane %v3266_v61, 5 }
 0x663   : > { %4047 = vmatmul.mubr.f32.vlgmr.msra.gmra.mrb[18].mxu0 %v3567_v12  ;;  %4117 = vmatmul.mubr.f32.vlgmr.msra.gmra.mrb[18].mxu1 %v3569_v21  ;;  %v3574_v37 = vsel %vm3566_vm15, %v3549_v31, %v3476_v47  ;;  %v3473_v40 = vrot.slane %v3262_v6, 5  ;;  %v3271_v19 = vrot.slane %v9122_v60, 3  ;;  %v3231_v55 = vsel %vm3120_vm13, %v3230_v5, 0.0  ;;  %v10388_v47 = vld [vmem:[#allocation5_spill] sm:$0xff]  ;;  %v10392_v6 = vld [vmem:[#allocation7_spill] sm:$0xff] }
 0x664   : > { %v10383_v35 = vpack.c.bf16 %v8577_v41, %v8572_v44  ;;  %v10384_v20 = vpack.c.bf16 %v8590_v27, %v8585_v23  ;;  %v3572_v32 = vsel %vm3566_vm15, %v3547_v63, %v3474_v43  ;;  %v9176_v12 = vsel %vm3566_vm15, %v9044_v34, %v3475_v7  ;;  %4256 = vmatprep.mubr.f32.mxu1 %v3574_v37  ;;  %v10391_v43 = vld [vmem:[#allocation8_spill] sm:$0xff] }
 0x665   : > { %v3275_v31 = vrot.slane %v9140_v52, 3  ;;  %v3408_v38 = vrot.slane %v3231_v55, 6  ;;  %4186 = vmatprep.mubr.f32.mxu0 %v3572_v32  ;;  %v9181_v5 = vsel %vm3566_vm15, %v9109_v10, %v3473_v40  ;;  %v3272_v44 = vsel %vm3120_vm13, %v3271_v19, 0.0 }
 0x666   : > { %5724 = vmatpush3.bf16.msra.mxu0 %v10383_v35  ;;  %5756 = vmatpush3.bf16.msra.mxu1 %v10384_v20  ;;  %v3224_v41 = vrot.slane %v9112_v26, 2  ;;  %v3269_v23 = vrot.slane %v9140_v52, 2  ;;  %v10385_v27 = vpack.c.bf16 %v8600_v0, %v8595_v18  ;;  %v10386_v34 = vpack.c.bf16 %v8610_v58, %v8605_v4  ;;  %v10387_v0 = vld [vmem:[#allocation6_spill] sm:$0xff] }
 0x667   : > { %v3478_v63 = vrot.slane %v3272_v44, 5  ;;  %v3276_v57 = vsel %vm3120_vm13, %v3275_v31, 0.0  ;;  %v3553_v10 = vsel %vm3541_vm14, %v9027_v59, %v3408_v38  ;;  %v3273_v62 = vrot.slane %v9135_v56, 3  ;;  %v10395_v38 = vld [vmem:[#allocation9_spill] sm:$0xff] }
 0x668   : > { %5726 = vmatprep.subr.bf16.mxu0 %v10385_v27  ;;  %5758 = vmatprep.subr.bf16.mxu1 %v10386_v34  ;;  %v3480_v9 = vrot.slane %v3276_v57, 5  ;;  %v3225_v3 = vsel %vm3120_vm13, %v3224_v41, 0.0  ;;  %v3270_v48 = vsel %vm3120_vm13, %v3269_v23, 0.0  ;;  %v3279_v18 = vrot.slane %v9135_v56, 4  ;;  %v10398_v41 = vld [vmem:[#allocation10_spill] sm:$0xff]  ;;  %v10400_v57 = vld [vmem:[#allocation13_spill] sm:$0xff] }
 0x669   : > { %v10389_v24 = vpack.c.bf16 %v10387_v0, %v10388_v47  ;;  %v10390_v4 = vpack.c.bf16 %v8632_v53, %v8627_v49  ;;  %v9207_v58 = vsel %vm3566_vm15, %v9049_v25, %v3478_v63  ;;  %v3405_v59 = vrot.slane %v3225_v3, 6 }
 0x66a   : > { %v3477_v61 = vrot.slane %v3270_v48, 5  ;;  %v3274_v21 = vsel %vm3120_vm13, %v3273_v62, 0.0  ;;  %v10393_v7 = vpack.c.bf16 %v10391_v43, %v10392_v6  ;;  %v10394_v37 = vpack.c.bf16 %v8655_v29, %v8650_v22 }
 0x66b   : > { %5728 = vmatpush3.bf16.msra.mxu0 %v10389_v24  ;;  %5760 = vmatpush3.bf16.msra.mxu1 %v10390_v4  ;;  %v9217_v40 = vsel %vm3566_vm15, %v3553_v10, %v3480_v9  ;;  %v3479_v49 = vrot.slane %v3274_v21, 5  ;;  %v3280_v53 = vsel %vm3120_vm13, %v3279_v18, 0.0  ;;  %v3283_v25 = vrot.slane %v9122_v60, 5  ;;  %v10401_v10 = vld [vmem:[#allocation12_spill] sm:$0xff]  ;;  %v10403_v9 = vld [vmem:[#allocation15_spill] sm:$0xff] }
 0x66c   : > { %5730 = vmatprep.subr.bf16.mxu0 %v10393_v7  ;;  %5762 = vmatprep.subr.bf16.mxu1 %v10394_v37  ;;  %v3550_v19 = vsel %vm3541_vm14, %v9031_v28, %v3405_v59  ;;  %v3482_v55 = vrot.slane %v3280_v53, 5  ;;  %v3277_v35 = vrot.slane %v9122_v60, 4  ;;  %v3236_v20 = vrot.slane %v9112_v26, 4  ;;  %v10397_v28 = vld [vmem:[#allocation11_spill] sm:$0xff]  ;;  %v10406_v7 = vld [vmem:[#allocation17_spill] sm:$0xff]  ;;  %v10407_v37 = vld [vmem:[#allocation16_spill] sm:$0xff] }
 0x66d   : > { %v9226_v32 = vsel %vm3566_vm15, %v3550_v19, %v3477_v61  ;;  %v9230_v22 = vsel %vm3566_vm15, %v9116_v15, %v3479_v49  ;;  %v3284_v29 = vsel %vm3120_vm13, %v3283_v25, 0.0  ;;  %v3281_v31 = vrot.slane %v9140_v52, 4  ;;  %v10409_v49 = vld [vmem:[#allocation19_spill] sm:$0xff]  ;;  %v10410_v53 = vld [vmem:[#allocation18_spill] sm:$0xff] }
 0x66e   : > { %v10396_v44 = vpack.c.bf16 %v8665_v17, %v10395_v38  ;;  %v10399_v23 = vpack.c.bf16 %v10397_v28, %v10398_v41  ;;  %v9242_v27 = vsel %vm3566_vm15, %v9119_v45, %v3482_v55  ;;  %v3484_v34 = vrot.slane %v3284_v29, 5  ;;  %v10404_v17 = vld [vmem:[#allocation14_spill] sm:$0xff] }
 0x66f   : > { %v3278_v15 = vsel %vm3120_vm13, %v3277_v35, 0.0  ;;  %v3237_v63 = vsel %vm3120_vm13, %v3236_v20, 0.0  ;;  %v10402_v62 = vpack.c.bf16 %v10400_v57, %v10401_v10  ;;  %v10405_v3 = vpack.c.bf16 %v10403_v9, %v10404_v17  ;;  %v10412_v35 = vld [vmem:[#allocation21_spill] sm:$0xff]  ;;  %v10413_v20 = vld [vmem:[#allocation20_spill] sm:$0xff]  ;;  %v10416_v38 = vld [vmem:[#allocation22_spill] sm:$0xff] }
 0x670   : > { %5732 = vmatpush3.bf16.msra.mxu0 %v10396_v44  ;;  %5764 = vmatpush3.bf16.msra.mxu1 %v10399_v23  ;;  %v3481_v48 = vrot.slane %v3278_v15, 5  ;;  %v3282_v18 = vsel %vm3120_vm13, %v3281_v31, 0.0  ;;  %v3411_v0 = vrot.slane %v3237_v63, 6  ;;  %v3242_v45 = vrot.slane %v9112_v26, 5  ;;  %v10415_v31 = vld [vmem:[#allocation23_spill] sm:$0xff]  ;;  %v10418_v41 = vld [vmem:[#allocation50_spill] sm:$0xff] }
 0x671   : > { %5734 = vmatprep.subr.bf16.mxu0 %v10402_v62  ;;  %5766 = vmatprep.subr.bf16.mxu1 %v10405_v3  ;;  %v9256_v47 = vsel %vm3566_vm15, %v9067_v2, %v3484_v34  ;;  %v3483_v24 = vrot.slane %v3282_v18, 5  ;;  %v3287_v4 = vrot.slane %v9140_v52, 5  ;;  %v3291_v59 = vrot.slane %v9135_v56, 6  ;;  %v10419_v15 = vld [vmem:[#allocation51_spill] sm:$0xff]  ;;  %v9296_v57 = vld [vmem:[%s10280_s4 + $0x3f0] sm:$0xff] }
 0x672   : > { %v9262_v61 = vsel %vm3566_vm15, %v9074_v54, %v3481_v48  ;;  %v3556_v21 = vsel %vm3541_vm14, %v9093_v1, %v3411_v0  ;;  %v3243_v43 = vsel %vm3120_vm13, %v3242_v45, 0.0  ;;  %v3244_v6 = vrot.slane %v8986_v8, 6  ;;  %v9301_v10 = vld [vmem:[%s10280_s4 + $0x3f8] sm:$0xff]  ;;  %v10422_v0 = vld [vmem:[#allocation25_spill] sm:$0xff] }
 0x673   : > { %v10408_v2 = vpack.c.bf16 %v10406_v7, %v10407_v37  ;;  %v10411_v25 = vpack.c.bf16 %v10409_v49, %v10410_v53  ;;  %v9275_v19 = vsel %vm3566_vm15, %v3556_v21, %v3483_v24  ;;  %v3288_v54 = vsel %vm3120_vm13, %v3287_v4, 0.0  ;;  %v10426_v24 = vld [vmem:[#allocation26_spill] sm:$0xff]  ;;  %v10431_v37 = vld [vmem:[#allocation32_spill] sm:$0xff] }
 0x674   : > { %v3414_v55 = vrot.slane %v3243_v43, 6  ;;  %v3292_v1 = vsel %vm3120_vm13, %v3291_v59, 0.0  ;;  %v10414_v29 = vpack.c.bf16 %v10412_v35, %v10413_v20  ;;  %v10417_v44 = vpack.c.bf16 %v10415_v31, %v10416_v38  ;;  %v10428_v43 = vld [vmem:[#allocation30_spill] sm:$0xff]  ;;  %v10435_v20 = vld [vmem:[#allocation36_spill] sm:$0xff]  ;;  %v3670_v38 = vld [vmem:[%s10280_s4 + $0x278] sm:$0xff] }
 0x675   : > { %5736 = vmatpush3.bf16.msra.mxu0 %v10408_v2  ;;  %5768 = vmatpush3.bf16.msra.mxu1 %v10411_v25  ;;  %v3486_v28 = vrot.slane %v3288_v54, 5  ;;  %v3534_v23 = vsel %vm3120_vm13, %v10418_v41, %v3342_v16  ;;  %v3488_v34 = vrot.slane %v3292_v1, 5  ;;  %v3536_v63 = vsel %vm3120_vm13, %v10419_v15, %v3344_v39  ;;  %v10432_v2 = vld [vmem:[#allocation31_spill] sm:$0xff]  ;;  %v3669_v31 = vld [vmem:[%s10280_s4 + $0x270] sm:$0xff] }
 0x676   : > { %5738 = vmatprep.subr.bf16.mxu0 %v10414_v29  ;;  %5770 = vmatprep.subr.bf16.mxu1 %v10417_v44  ;;  %v3559_v14 = vsel %vm3541_vm14, %v3534_v23, %v3414_v55  ;;  %v3561_v16 = vsel %vm3541_vm14, %v3536_v63, %v3416_v50  ;;  %v10421_v62 = vrot.slane %v10420_v33, 5  ;;  %v3250_v9 = vrot.slane %v8986_v8, 7  ;;  %v10425_v50 = vld [vmem:[#allocation27_spill] sm:$0xff]  ;;  %v10436_v23 = vld [vmem:[#allocation34_spill] sm:$0xff]  ;;  %v10439_v63 = vld [vmem:[#allocation37_spill] sm:$0xff] }
 0x677   : > { %v9312_v17 = vsel %vm3566_vm15, %v3559_v14, %v3486_v28  ;;  %v9315_v3 = vsel %vm3566_vm15, %v3561_v16, %v3488_v34  ;;  %v3341_v48 = vrot.slane %v9089_v13, 7  ;;  %v3346_v18 = vrot.slane %v9101_v42, 7  ;;  %v10429_v42 = vld [vmem:[#allocation28_spill] sm:$0xff]  ;;  %v10437_v34 = vld [vmem:[#allocation33_spill] sm:$0xff] }
 0x678   : > { %v3151_v39 = vsel %vm3120_vm13, %v10421_v62, 0.0  ;;  %v10424_v45 = vpack.c.bf16 %v10422_v0, %v10423_v30  ;;  %v10427_v4 = vpack.c.bf16 %v10425_v50, %v10426_v24  ;;  %v3241_v8 = vsel %vm3120_vm13, %v3240_v36, 0.0  ;;  %v10446_v30 = vld [vmem:[#allocation40_spill] sm:$0xff]  ;;  %v3701_v50 = vld [vmem:[%s10280_s4 + $0x370] sm:$0xff]  ;;  %v3702_v24 = vld [vmem:[%s10280_s4 + $0x378] sm:$0xff] }
 0x679   : > { %v3285_v59 = vrot.slane %v9135_v56, 5  ;;  %v3245_v21 = vsel %vm3120_vm13, %v3244_v6, 0.0  ;;  %v3289_v13 = vrot.slane %v9122_v60, 6  ;;  %v10430_v7 = vpack.c.bf16 %v10428_v43, %v10429_v42  ;;  %v3736_v43 = vld [vmem:[%s10280_s4 + $0x488] sm:$0xff]  ;;  %v3767_v42 = vld [vmem:[%s10280_s4 + $0x580] sm:$0xff] }
 0x67a   : > { %5740 = vmatpush3.bf16.msra.mxu0 %v10424_v45  ;;  %5772 = vmatpush3.bf16.msra.mxu1 %v10427_v4  ;;  %v10433_v49 = vpack.c.bf16 %v10431_v37, %v10432_v2  ;;  %v5781_v53 = vpack.c.bf16 %v9301_v10, %v9296_v57  ;;  %v3413_v25 = vrot.slane %v3241_v8, 6  ;;  %v3415_v54 = vrot.slane %v3245_v21, 6  ;;  %v10440_v57 = vld [vmem:[#allocation35_spill] sm:$0xff]  ;;  %v10448_v8 = vld [vmem:[#allocation49_spill] sm:$0xff] }
 0x67b   : > { %5742 = vmatprep.subr.bf16.mxu0 %v10430_v7  ;;  %v10434_v36 = vrot.slane %v8528_v11, 7  ;;  %v3286_v6 = vsel %vm3120_vm13, %v3285_v59, 0.0  ;;  %v3290_v1 = vsel %vm3120_vm13, %v3289_v13, 0.0  ;;  %v3251_v35 = vsel %vm3120_vm13, %v3250_v9, 0.0  ;;  %v3768_v7 = vld [vmem:[%s10280_s4 + $0x588] sm:$0xff] }
 0x67c   : > { %5774 = vmatprep.subr.bf16.mxu1 %v10433_v49  ;;  %v3164_v29 = vrot.slane %v10435_v20, 7  ;;  %v3485_v44 = vrot.slane %v3286_v6, 5  ;;  %v3533_v11 = vsel %vm3120_vm13, %v3151_v39, %v3341_v48  ;;  %v3487_v28 = vrot.slane %v3290_v1, 5  ;;  %v10442_v39 = vld [vmem:[#allocation39_spill] sm:$0xff]  ;;  %v10443_v48 = vld [vmem:[#allocation38_spill] sm:$0xff] }
 0x67d   : > { %v3161_v55 = vsel %vm3120_vm13, %v10434_v36, 0.0  ;;  %v3560_v41 = vsel %vm3541_vm14, %v8993_v51, %v3415_v54  ;;  %v10438_v15 = vpack.c.bf16 %v10436_v23, %v10437_v34  ;;  %v10441_v10 = vpack.c.bf16 %v10439_v63, %v10440_v57  ;;  %v10445_v51 = vld [vmem:[#allocation41_spill] sm:$0xff]  ;;  %v10449_v6 = vld [vmem:[#allocation43_spill] sm:$0xff]  ;;  %v10450_v1 = vld [vmem:[#allocation42_spill] sm:$0xff] }
 0x67e   : > { %v3558_v14 = vsel %vm3541_vm14, %v3533_v11, %v3413_v25  ;;  %v3295_v16 = vrot.slane %v9122_v60, 7  ;;  %v3418_v62 = vrot.slane %v3251_v35, 6  ;;  %v3538_v9 = vsel %vm3120_vm13, %v3161_v55, %v3346_v18  ;;  %v3735_v60 = vld [vmem:[%s10280_s4 + $0x480] sm:$0xff]  ;;  %v10455_v63 = vld [vmem:[#allocation47_spill] sm:$0xff]  ;;  %v10456_v57 = vld [vmem:[#allocation46_spill] sm:$0xff] }
 0x67f   : > { %5744 = vmatpush3.bf16.msra.mxu0 %v10438_v15  ;;  %5776 = vmatpush3.bf16.msra.mxu1 %v10441_v10  ;;  %v10444_v0 = vpack.c.bf16 %v10442_v39, %v10443_v48  ;;  %v10447_v45 = vpack.c.bf16 %v10445_v51, %v10446_v30  ;;  %v9380_v18 = vsel %vm3566_vm15, %v3558_v14, %v3485_v44  ;;  %v3209_v59 = vrot.slane %v10448_v8, 7  ;;  %v3738_v39 = vld [vmem:[%s10280_s4 + $0x498] sm:$0xff]  ;;  %v3721_v30 = vld [vmem:[%s10280_s4 + $0x410] sm:$0xff] }
 0x680   : > { %v9383_v4 = vsel %vm3566_vm15, %v3560_v41, %v3487_v28  ;;  %v3254_v21 = vrot.slane %v9112_v26, 7  ;;  %v5751_v13 = vpack.c.bf16 %v3670_v38, %v3669_v31  ;;  %v3296_v37 = vsel %vm3120_vm13, %v3295_v16, 0.0  ;;  %v10452_v31 = vld [vmem:[#allocation45_spill] sm:$0xff]  ;;  %v10453_v38 = vld [vmem:[#allocation44_spill] sm:$0xff]  ;;  %v3770_v51 = vld [vmem:[%s10280_s4 + $0x598] sm:$0xff] }
 0x681   : > { %5746 = vmatprep.subr.bf16.mxu0 %v10444_v0  ;;  %5778 = vmatprep.subr.bf16.mxu1 %v10447_v45  ;;  %v3563_v2 = vsel %vm3541_vm14, %v3538_v9, %v3418_v62  ;;  %v3299_v49 = vrot.slane %v9140_v52, 7  ;;  %v3490_v25 = vrot.slane %v3296_v37, 5  ;;  %v3165_v54 = vsel %vm3120_vm13, %v3164_v29, 0.0  ;;  %v3719_v28 = vld [vmem:[%s10280_s4 + $0x400] sm:$0xff]  ;;  %v3720_v29 = vld [vmem:[%s10280_s4 + $0x408] sm:$0xff]  ;;  %v3737_v9 = vld [vmem:[%s10280_s4 + $0x490] sm:$0xff] }
 0x682   : > { %v3210_v36 = vsel %vm3120_vm13, %v3209_v59, 0.0  ;;  %v3255_v55 = vsel %vm3120_vm13, %v3254_v21, 0.0  ;;  %v10451_v35 = vpack.c.bf16 %v10449_v6, %v10450_v1  ;;  %v10454_v44 = vpack.c.bf16 %v10452_v31, %v10453_v38  ;;  %v3751_v41 = vld [vmem:[%s10280_s4 + $0x500] sm:$0xff]  ;;  %v3752_v62 = vld [vmem:[%s10280_s4 + $0x508] sm:$0xff] }
 0x683   : > { %v5783_v11 = vpack.c.bf16 %v3702_v24, %v3701_v50  ;;  %v3300_v23 = vsel %vm3120_vm13, %v3299_v49, 0.0  ;;  %v3348_v34 = vrot.slane %v3210_v36, 7  ;;  %v3420_v15 = vrot.slane %v3255_v55, 6  ;;  %v3722_v50 = vld [vmem:[%s10280_s4 + $0x418] sm:$0xff]  ;;  %v3753_v24 = vld [vmem:[%s10280_s4 + $0x510] sm:$0xff]  ;;  %v9471_v49 = vld [vmem:[%s10280_s4 + $0x420] sm:$0xff] }
 0x684   : > { %5748 = vmatpush3.bf16.msra.mxu0 %v10451_v35  ;;  %5780 = vmatpush3.bf16.msra.mxu1 %v10454_v44  ;;  %v10457_v10 = vpack.c.bf16 %v10455_v63, %v10456_v57  ;;  %v5785_v14 = vpack.c.bf16 %v3736_v43, %v3735_v60  ;;  %v5817_v16 = vpack.c.bf16 %v3768_v7, %v3767_v42  ;;  %v3492_v0 = vrot.slane %v3300_v23, 5  ;;  %v3754_v60 = vld [vmem:[%s10280_s4 + $0x518] sm:$0xff]  ;;  %v3739_v43 = vld [vmem:[%s10280_s4 + $0x4a0] sm:$0xff]  ;;  %v3740_v42 = vld [vmem:[%s10280_s4 + $0x4a8] sm:$0xff] }
 0x685   : > { %5782 = vmatprep.subr.bf16.mxu1 %v5781_v53  ;;  %v9431_v48 = vsel %vm3566_vm15, %v3563_v2, %v3490_v25  ;;  %v3769_v53 = vld [vmem:[%s10280_s4 + $0x590] sm:$0xff]  ;;  %v3540_v45 = vsel %vm3120_vm13, %v3165_v54, %v3348_v34  ;;  %v5787_v21 = vpack.c.bf16 %v3720_v29, %v3719_v28  ;;  %v3771_v7 = vld [vmem:[%s10280_s4 + $0x5a0] sm:$0xff]  ;;  %v3772_v2 = vld [vmem:[%s10280_s4 + $0x5a8] sm:$0xff]  ;;  %v3158_v54 = vrot.slane %v10435_v20, 6 }
 0x686   : > { %5750 = vmatprep.subr.bf16.mxu0 %v10457_v10  ;;  %v3565_v59 = vsel %vm3541_vm14, %v3540_v45, %v3420_v15  ;;  %v9476_v25 = vld [vmem:[%s10280_s4 + $0x428] sm:$0xff]  ;;  %v3203_v36 = vrot.slane %v10448_v8, 6  ;;  %v5789_v55 = vpack.c.bf16 %v3738_v39, %v3737_v9  ;;  %v5821_v6 = vpack.c.bf16 %v3770_v51, %v3769_v53  ;;  %v3755_v1 = vld [vmem:[%s10280_s4 + $0x520] sm:$0xff]  ;;  %v3774_v29 = vld [vmem:[%s10280_s4 + $0x5b8] sm:$0xff] }
 0x687   : > { %v9463_v37 = vsel %vm3566_vm15, %v3565_v59, %v3492_v0  ;;  %v3756_v35 = vld [vmem:[%s10280_s4 + $0x528] sm:$0xff]  ;;  %v5791_v31 = vpack.c.bf16 %v3722_v50, %v3721_v30  ;;  %v5823_v38 = vpack.c.bf16 %v3754_v60, %v3753_v24  ;;  %v5793_v20 = vpack.c.bf16 %v3740_v42, %v3739_v43  ;;  %v10458_v63 = vld [vmem:[#allocation48_spill] sm:$0xff]  ;;  %v3758_v50 = vld [vmem:[%s10280_s4 + $0x538] sm:$0xff] }
 0x688   : > { %5752 = vmatpush3.bf16.msra.mxu0 %v5751_v13  ;;  %5784 = vmatpush3.bf16.msra.mxu1 %v5783_v11  ;;  %v5819_v13 = vpack.c.bf16 %v3752_v62, %v3751_v41  ;;  %v5825_v8 = vpack.c.bf16 %v3772_v2, %v3771_v7  ;;  %v5795_v44 = vpack.c.bf16 %v9476_v25, %v9471_v49  ;;  %v3741_v11 = vld [vmem:[%s10280_s4 + $0x4b0] sm:$0xff]  ;;  %v3159_v41 = vsel %vm3120_vm13, %v3158_v54, 0.0  ;;  %v3743_v24 = vld [vmem:[%s10280_s4 + $0x4c0] sm:$0xff]  ;;  %v3744_v60 = vld [vmem:[%s10280_s4 + $0x4c8] sm:$0xff] }
 0x689   : > { %5786 = vmatprep.subr.bf16.mxu0 %v5785_v14  ;;  %5818 = vmatprep.subr.bf16.mxu1 %v5817_v16  ;;  %v5827_v28 = vpack.c.bf16 %v3756_v35, %v3755_v1  ;;  %v3248_v23 = vrot.slane %v9112_v26, 6  ;;  %v3293_v34 = vrot.slane %v9140_v52, 6  ;;  %v3207_v57 = vrot.slane %v10458_v63, 7  ;;  %v3725_v52 = vld [vmem:[%s10280_s4 + $0x430] sm:$0xff]  ;;  %v3775_v7 = vld [vmem:[%s10280_s4 + $0x5c0] sm:$0xff]  ;;  %v3748_v63 = vld [vmem:[%s10280_s4 + $0x4e8] sm:$0xff] }
 0x68a   : > { %v3252_v10 = vrot.slane %v9011_v46, 7  ;;  %v3297_v9 = vrot.slane %v9135_v56, 7  ;;  %v3726_v46 = vld [vmem:[%s10280_s4 + $0x438] sm:$0xff]  ;;  %v3757_v56 = vld [vmem:[%s10280_s4 + $0x530] sm:$0xff]  ;;  %v3759_v1 = vld [vmem:[%s10280_s4 + $0x540] sm:$0xff] }
 0x68b   : > { %4187 = vmatmul.mubr.f32.vlgmr.msra.gmra.mrb[20].mxu0 %v9181_v5  ;;  %4257 = vmatmul.mubr.f32.vlgmr.msra.gmra.mrb[20].mxu1 %v9176_v12  ;;  %v3742_v5 = vld [vmem:[%s10280_s4 + $0x4b8] sm:$0xff]  ;;  %v3204_v12 = vsel %vm3120_vm13, %v3203_v36, 0.0  ;;  %v3249_v16 = vsel %vm3120_vm13, %v3248_v23, 0.0  ;;  %v3294_v62 = vsel %vm3120_vm13, %v3293_v34, 0.0  ;;  %v3208_v51 = vsel %vm3120_vm13, %v3207_v57, 0.0  ;;  %v3761_v23 = vld [vmem:[%s10280_s4 + $0x550] sm:$0xff] }
 0x68c   : > { %5788 = vmatpush3.bf16.msra.mxu0 %v5787_v21  ;;  %4326 = vmatprep.mubr.f32.mxu0 %v9207_v58  ;;  %v3773_v58 = vld [vmem:[%s10280_s4 + $0x5b0] sm:$0xff]  ;;  %v3345_v15 = vrot.slane %v3204_v12, 7  ;;  %v5797_v14 = vpack.c.bf16 %v3742_v5, %v3741_v11  ;;  %v3417_v39 = vrot.slane %v3249_v16, 6  ;;  %v3489_v0 = vrot.slane %v3294_v62, 5  ;;  %v3778_v5 = vld [vmem:[%s10280_s4 + $0x5d8] sm:$0xff]  ;;  %v3779_v57 = vld [vmem:[%s10280_s4 + $0x5e0] sm:$0xff] }
 0x68d   : > { %5820 = vmatpush3.bf16.msra.mxu1 %v5819_v13  ;;  %4396 = vmatprep.mubr.f32.mxu1 %v9217_v40  ;;  %v3162_v40 = vrot.slane %v10420_v33, 7  ;;  %v5829_v26 = vpack.c.bf16 %v3774_v29, %v3773_v58  ;;  %v3253_v30 = vsel %vm3120_vm13, %v3252_v10, 0.0  ;;  %v3298_v45 = vsel %vm3120_vm13, %v3297_v9, 0.0  ;;  %v3776_v13 = vld [vmem:[%s10280_s4 + $0x5c8] sm:$0xff]  ;;  %v3777_v11 = vld [vmem:[%s10280_s4 + $0x5d0] sm:$0xff]  ;;  %v3731_v9 = vld [vmem:[%s10280_s4 + $0x460] sm:$0xff] }
 0x68e   : > { %5790 = vmatprep.subr.bf16.mxu0 %v5789_v55  ;;  %5822 = vmatprep.subr.bf16.mxu1 %v5821_v6  ;;  %v3537_v33 = vsel %vm3120_vm13, %v3159_v41, %v3345_v15  ;;  %v3347_v21 = vrot.slane %v3208_v51, 7  ;;  %v3419_v43 = vrot.slane %v3253_v30, 6  ;;  %v3491_v42 = vrot.slane %v3298_v45, 5  ;;  %v3727_v55 = vld [vmem:[%s10280_s4 + $0x440] sm:$0xff]  ;;  %v3728_v6 = vld [vmem:[%s10280_s4 + $0x448] sm:$0xff]  ;;  %v3729_v29 = vld [vmem:[%s10280_s4 + $0x450] sm:$0xff] }
 0x68f   : > { %v3163_v53 = vsel %vm3120_vm13, %v3162_v40, 0.0  ;;  %v3562_v59 = vsel %vm3541_vm14, %v3537_v33, %v3417_v39  ;;  %v5799_v49 = vpack.c.bf16 %v3726_v46, %v3725_v52  ;;  %v5831_v54 = vpack.c.bf16 %v3758_v50, %v3757_v56  ;;  %v3730_v41 = vld [vmem:[%s10280_s4 + $0x458] sm:$0xff]  ;;  %v3747_v40 = vld [vmem:[%s10280_s4 + $0x4e0] sm:$0xff]  ;;  %v3780_v10 = vld [vmem:[%s10280_s4 + $0x5e8] sm:$0xff] }
 0x690   : > { %5792 = vmatpush3.bf16.msra.mxu0 %v5791_v31  ;;  %v9545_v2 = vsel %vm3566_vm15, %v3562_v59, %v3489_v0  ;;  %v3539_v25 = vsel %vm3120_vm13, %v3163_v53, %v3347_v21  ;;  %v5801_v36 = vpack.c.bf16 %v3744_v60, %v3743_v24  ;;  %v5833_v31 = vpack.c.bf16 %v3776_v13, %v3775_v7  ;;  %v3762_v15 = vld [vmem:[%s10280_s4 + $0x558] sm:$0xff]  ;;  %v3763_v52 = vld [vmem:[%s10280_s4 + $0x560] sm:$0xff]  ;;  %v3764_v0 = vld [vmem:[%s10280_s4 + $0x568] sm:$0xff] }
 0x691   : > { %5824 = vmatpush3.bf16.msra.mxu1 %v5823_v38  ;;  %5794 = vmatprep.subr.bf16.mxu0 %v5793_v20  ;;  %v3564_v35 = vsel %vm3541_vm14, %v3539_v25, %v3419_v43  ;;  %v3760_v38 = vld [vmem:[%s10280_s4 + $0x548] sm:$0xff]  ;;  %v3745_v20 = vld [vmem:[%s10280_s4 + $0x4d0] sm:$0xff]  ;;  %v5803_v12 = vpack.c.bf16 %v3728_v6, %v3727_v55  ;;  %v5837_v34 = vpack.c.bf16 %v3778_v5, %v3777_v11  ;;  %v3750_v46 = vld [vmem:[%s10280_s4 + $0x4f8] sm:$0xff] }
 0x692   : > { %5826 = vmatprep.subr.bf16.mxu1 %v5825_v8  ;;  %v3746_v8 = vld [vmem:[%s10280_s4 + $0x4d8] sm:$0xff]  ;;  %v5839_v16 = vpack.c.bf16 %v3762_v15, %v3761_v23  ;;  %v5809_v62 = vpack.c.bf16 %v3748_v63, %v3747_v40  ;;  %v5841_v39 = vpack.c.bf16 %v3780_v10, %v3779_v57  ;;  %v3749_v33 = vld [vmem:[%s10280_s4 + $0x4f0] sm:$0xff]  ;;  %v5843_v30 = vpack.c.bf16 %v3764_v0, %v3763_v52  ;;  %v3799_v43 = vld [vmem:[%s10280_s4 + $0x680] sm:$0xff] }
 0x693   : > { %v5805_v58 = vpack.c.bf16 %v3746_v8, %v3745_v20  ;;  %v3781_v56 = vld [vmem:[%s10280_s4 + $0x5f0] sm:$0xff]  ;;  %v3782_v53 = vld [vmem:[%s10280_s4 + $0x5f8] sm:$0xff]  ;;  %v5813_v45 = vpack.c.bf16 %v3750_v46, %v3749_v33  ;;  %v3831_v7 = vld [vmem:[%s10280_s4 + $0x780] sm:$0xff] }
 0x694   : > { %5796 = vmatpush3.bf16.msra.mxu0 %v5795_v44  ;;  %v9568_v44 = vsel %vm3566_vm15, %v3564_v35, %v3491_v42  ;;  %v3733_v50 = vld [vmem:[%s10280_s4 + $0x470] sm:$0xff]  ;;  %v3734_v24 = vld [vmem:[%s10280_s4 + $0x478] sm:$0xff]  ;;  %v5845_v59 = vpack.c.bf16 %v3782_v53, %v3781_v56  ;;  %v3800_v42 = vld [vmem:[%s10280_s4 + $0x688] sm:$0xff] }
 0x695   : > { %5828 = vmatpush3.bf16.msra.mxu1 %v5827_v28  ;;  %5798 = vmatprep.subr.bf16.mxu0 %v5797_v14  ;;  %v5835_v28 = vpack.c.bf16 %v3760_v38, %v3759_v1  ;;  %v5807_v14 = vpack.c.bf16 %v3730_v41, %v3729_v29  ;;  %v3765_v60 = vld [vmem:[%s10280_s4 + $0x570] sm:$0xff]  ;;  %v3766_v21 = vld [vmem:[%s10280_s4 + $0x578] sm:$0xff]  ;;  %v3832_v13 = vld [vmem:[%s10280_s4 + $0x788] sm:$0xff] }
 0x696   : > { %5830 = vmatprep.subr.bf16.mxu1 %v5829_v26  ;;  %v3732_v26 = vld [vmem:[%s10280_s4 + $0x468] sm:$0xff]  ;;  %v5847_v25 = vpack.c.bf16 %v3766_v21, %v3765_v60  ;;  %v5881_v6 = vpack.c.bf16 %v3832_v13, %v3831_v7  ;;  %v3815_v1 = vld [vmem:[%s10280_s4 + $0x700] sm:$0xff]  ;;  %v3802_v38 = vld [vmem:[%s10280_s4 + $0x698] sm:$0xff] }
 0x697   : > { %v5811_v51 = vpack.c.bf16 %v3732_v26, %v3731_v9  ;;  %v3784_v55 = vld [vmem:[%s10280_s4 + $0x608] sm:$0xff]  ;;  %v3833_v8 = vld [vmem:[%s10280_s4 + $0x790] sm:$0xff]  ;;  %v3834_v11 = vld [vmem:[%s10280_s4 + $0x798] sm:$0xff] }
 0x698   : > { %5800 = vmatpush3.bf16.msra.mxu0 %v5799_v49  ;;  %v5815_v49 = vpack.c.bf16 %v3734_v24, %v3733_v50  ;;  %v3816_v35 = vld [vmem:[%s10280_s4 + $0x708] sm:$0xff]  ;;  %v3818_v41 = vld [vmem:[%s10280_s4 + $0x718] sm:$0xff]  ;;  %v3803_v23 = vld [vmem:[%s10280_s4 + $0x6a0] sm:$0xff]  ;;  %v5885_v15 = vpack.c.bf16 %v3834_v11, %v3833_v8 }
 0x699   : > { %5832 = vmatpush3.bf16.msra.mxu1 %v5831_v54  ;;  %5802 = vmatprep.subr.bf16.mxu0 %v5801_v36  ;;  %v5849_v54 = vpack.c.bf16 %v3800_v42, %v3799_v43  ;;  %v3783_v36 = vld [vmem:[%s10280_s4 + $0x600] sm:$0xff]  ;;  %v5883_v5 = vpack.c.bf16 %v3816_v35, %v3815_v1  ;;  %v3836_v63 = vld [vmem:[%s10280_s4 + $0x7a8] sm:$0xff]  ;;  %v3805_v9 = vld [vmem:[%s10280_s4 + $0x6b0] sm:$0xff] }
 0x69a   : > { %5834 = vmatprep.subr.bf16.mxu1 %v5833_v31  ;;  %v3801_v31 = vld [vmem:[%s10280_s4 + $0x690] sm:$0xff]  ;;  %v5851_v20 = vpack.c.bf16 %v3784_v55, %v3783_v36  ;;  %v3835_v40 = vld [vmem:[%s10280_s4 + $0x7a0] sm:$0xff]  ;;  %v3806_v26 = vld [vmem:[%s10280_s4 + $0x6b8] sm:$0xff] }
 0x69b   : > { %v5853_v29 = vpack.c.bf16 %v3802_v38, %v3801_v31  ;;  %v3837_v52 = vld [vmem:[%s10280_s4 + $0x7b0] sm:$0xff]  ;;  %v5861_v33 = vpack.c.bf16 %v3806_v26, %v3805_v9  ;;  %v3790_v56 = vld [vmem:[%s10280_s4 + $0x638] sm:$0xff]  ;;  %v3808_v50 = vld [vmem:[%s10280_s4 + $0x6c8] sm:$0xff] }
 0x69c   : > { %5804 = vmatpush3.bf16.msra.mxu0 %v5803_v12  ;;  %v3785_v12 = vld [vmem:[%s10280_s4 + $0x610] sm:$0xff]  ;;  %v3839_v24 = vld [vmem:[%s10280_s4 + $0x7c0] sm:$0xff]  ;;  %v3840_v60 = vld [vmem:[%s10280_s4 + $0x7c8] sm:$0xff] }
 0x69d   : > { %5836 = vmatpush3.bf16.msra.mxu1 %v5835_v28  ;;  %5806 = vmatprep.subr.bf16.mxu0 %v5805_v58  ;;  %v3786_v28 = vld [vmem:[%s10280_s4 + $0x618] sm:$0xff]  ;;  %v3817_v58 = vld [vmem:[%s10280_s4 + $0x710] sm:$0xff]  ;;  %v3791_v42 = vld [vmem:[%s10280_s4 + $0x640] sm:$0xff] }
 0x69e   : > { %5838 = vmatprep.subr.bf16.mxu1 %v5837_v34  ;;  %v3804_v34 = vld [vmem:[%s10280_s4 + $0x6a8] sm:$0xff]  ;;  %v5855_v57 = vpack.c.bf16 %v3786_v28, %v3785_v12  ;;  %v5887_v10 = vpack.c.bf16 %v3818_v41, %v3817_v58  ;;  %v3789_v46 = vld [vmem:[%s10280_s4 + $0x630] sm:$0xff]  ;;  %v3823_v13 = vld [vmem:[%s10280_s4 + $0x740] sm:$0xff] }
 0x69f   : > { %v3821_v53 = vld [vmem:[%s10280_s4 + $0x730] sm:$0xff]  ;;  %v3792_v7 = vld [vmem:[%s10280_s4 + $0x648] sm:$0xff]  ;;  %v3810_v36 = vld [vmem:[%s10280_s4 + $0x6d8] sm:$0xff] }
 0x6a0   : > { %5808 = vmatpush3.bf16.msra.mxu0 %v5807_v14  ;;  %v5857_v14 = vpack.c.bf16 %v3804_v34, %v3803_v23  ;;  %v3841_v55 = vld [vmem:[%s10280_s4 + $0x7d0] sm:$0xff]  ;;  %v5867_v1 = vpack.c.bf16 %v3792_v7, %v3791_v42  ;;  %v3811_v12 = vld [vmem:[%s10280_s4 + $0x6e0] sm:$0xff]  ;;  %v3812_v28 = vld [vmem:[%s10280_s4 + $0x6e8] sm:$0xff] }
 0x6a1   : > { %5840 = vmatpush3.bf16.msra.mxu1 %v5839_v16  ;;  %5810 = vmatprep.subr.bf16.mxu0 %v5809_v62  ;;  %v3788_v16 = vld [vmem:[%s10280_s4 + $0x628] sm:$0xff]  ;;  %v3819_v62 = vld [vmem:[%s10280_s4 + $0x720] sm:$0xff]  ;;  %v3793_v38 = vld [vmem:[%s10280_s4 + $0x650] sm:$0xff]  ;;  %v5873_v34 = vpack.c.bf16 %v3812_v28, %v3811_v12 }
 0x6a2   : > { %5842 = vmatprep.subr.bf16.mxu1 %v5841_v39  ;;  %v3825_v8 = vld [vmem:[%s10280_s4 + $0x750] sm:$0xff]  ;;  %v3843_v58 = vld [vmem:[%s10280_s4 + $0x7e0] sm:$0xff]  ;;  %v3866_v42 = vld [vmem:[%s10280_s4 + $0x898] sm:$0xff] }
 0x6a3   : > { %v3797_v26 = vld [vmem:[%s10280_s4 + $0x670] sm:$0xff]  ;;  %v3852_v28 = vld [vmem:[%s10280_s4 + $0x828] sm:$0xff] }
 0x6a4   : > { %5812 = vmatpush3.bf16.msra.mxu0 %v5811_v51 }
 0x6a5   : > { %5844 = vmatpush3.bf16.msra.mxu1 %v5843_v30  ;;  %5814 = vmatprep.subr.bf16.mxu0 %v5813_v45  ;;  %v3822_v30 = vld [vmem:[%s10280_s4 + $0x738] sm:$0xff]  ;;  %v3807_v45 = vld [vmem:[%s10280_s4 + $0x6c0] sm:$0xff] }
 0x6a6   : > { %5846 = vmatprep.subr.bf16.mxu1 %v5845_v59  ;;  %v5863_v59 = vpack.c.bf16 %v3790_v56, %v3789_v46  ;;  %v5895_v21 = vpack.c.bf16 %v3822_v30, %v3821_v53  ;;  %v5865_v43 = vpack.c.bf16 %v3808_v50, %v3807_v45  ;;  %v3864_v46 = vld [vmem:[%s10280_s4 + $0x888] sm:$0xff]  ;;  %v3895_v56 = vld [vmem:[%s10280_s4 + $0x980] sm:$0xff] }
 0x6a7   : > { %v3896_v53 = vld [vmem:[%s10280_s4 + $0x988] sm:$0xff]  ;;  %v3847_v50 = vld [vmem:[%s10280_s4 + $0x800] sm:$0xff] }
 0x6a8   : > { %5816 = vmatpush3.bf16.msra.mxu0 %v5815_v49  ;;  %v5897_v49 = vpack.c.bf16 %v3840_v60, %v3839_v24  ;;  %v3848_v24 = vld [vmem:[%s10280_s4 + $0x808] sm:$0xff]  ;;  %v5945_v60 = vpack.c.bf16 %v3896_v53, %v3895_v56  ;;  %v3873_v56 = vld [vmem:[%s10280_s4 + $0x8d0] sm:$0xff]  ;;  %v3874_v53 = vld [vmem:[%s10280_s4 + $0x8d8] sm:$0xff] }
 0x6a9   : > { %5848 = vmatpush3.bf16.msra.mxu1 %v5847_v25  ;;  %5850 = vmatprep.subr.bf16.mxu0 %v5849_v54  ;;  %v3824_v25 = vld [vmem:[%s10280_s4 + $0x748] sm:$0xff]  ;;  %v3809_v54 = vld [vmem:[%s10280_s4 + $0x6d0] sm:$0xff]  ;;  %v5915_v7 = vpack.c.bf16 %v3848_v24, %v3847_v50  ;;  %v5933_v24 = vpack.c.bf16 %v3874_v53, %v3873_v56  ;;  %v3946_v56 = vld [vmem:[%s10280_s4 + $0xb18] sm:$0xff] }
 0x6aa   : > { %5882 = vmatprep.subr.bf16.mxu1 %v5881_v6  ;;  %v3842_v6 = vld [vmem:[%s10280_s4 + $0x7d8] sm:$0xff]  ;;  %v5899_v35 = vpack.c.bf16 %v3824_v25, %v3823_v13  ;;  %v5869_v31 = vpack.c.bf16 %v3810_v36, %v3809_v54  ;;  %v3897_v13 = vld [vmem:[%s10280_s4 + $0x990] sm:$0xff]  ;;  %v3931_v53 = vld [vmem:[%s10280_s4 + $0xaa0] sm:$0xff] }
 0x6ab   : > { %4327 = vmatmul.mubr.f32.vlgmr.msra.gmra.mrb[22].mxu0 %v9226_v32  ;;  %v3787_v32 = vld [vmem:[%s10280_s4 + $0x620] sm:$0xff]  ;;  %v5901_v11 = vpack.c.bf16 %v3842_v6, %v3841_v55  ;;  %v3849_v54 = vld [vmem:[%s10280_s4 + $0x810] sm:$0xff]  ;;  %v3850_v36 = vld [vmem:[%s10280_s4 + $0x818] sm:$0xff] }
 0x6ac   : > { %4397 = vmatmul.mubr.f32.vlgmr.msra.gmra.mrb[22].mxu1 %v9230_v22  ;;  %5852 = vmatpush3.bf16.msra.mxu0 %v5851_v20  ;;  %v5889_v22 = vpack.c.bf16 %v3836_v63, %v3835_v40  ;;  %v5859_v39 = vpack.c.bf16 %v3788_v16, %v3787_v32  ;;  %v3794_v20 = vld [vmem:[%s10280_s4 + $0x658] sm:$0xff]  ;;  %v3796_v40 = vld [vmem:[%s10280_s4 + $0x668] sm:$0xff]  ;;  %v3827_v63 = vld [vmem:[%s10280_s4 + $0x760] sm:$0xff] }
 0x6ad   : > { %4466 = vmatprep.mubr.f32.mxu0 %v9242_v27  ;;  %5884 = vmatpush3.bf16.msra.mxu1 %v5883_v5  ;;  %v3820_v27 = vld [vmem:[%s10280_s4 + $0x728] sm:$0xff]  ;;  %v3826_v5 = vld [vmem:[%s10280_s4 + $0x758] sm:$0xff]  ;;  %v5871_v41 = vpack.c.bf16 %v3794_v20, %v3793_v38  ;;  %v3845_v16 = vld [vmem:[%s10280_s4 + $0x7f0] sm:$0xff] }
 0x6ae   : > { %4536 = vmatprep.mubr.f32.mxu1 %v9256_v47  ;;  %5854 = vmatprep.subr.bf16.mxu0 %v5853_v29  ;;  %v3838_v47 = vld [vmem:[%s10280_s4 + $0x7b8] sm:$0xff]  ;;  %v5891_v0 = vpack.c.bf16 %v3820_v27, %v3819_v62  ;;  %v3844_v29 = vld [vmem:[%s10280_s4 + $0x7e8] sm:$0xff]  ;;  %v5903_v23 = vpack.c.bf16 %v3826_v5, %v3825_v8  ;;  %v3881_v55 = vld [vmem:[%s10280_s4 + $0x910] sm:$0xff] }
 0x6af   : > { %5886 = vmatprep.subr.bf16.mxu1 %v5885_v15  ;;  %v5893_v51 = vpack.c.bf16 %v3838_v47, %v3837_v52  ;;  %v3795_v15 = vld [vmem:[%s10280_s4 + $0x660] sm:$0xff]  ;;  %v3814_v32 = vld [vmem:[%s10280_s4 + $0x6f8] sm:$0xff]  ;;  %v3829_v47 = vld [vmem:[%s10280_s4 + $0x770] sm:$0xff] }
 0x6b0   : > { %5856 = vmatpush3.bf16.msra.mxu0 %v5855_v57  ;;  %v5905_v57 = vpack.c.bf16 %v3844_v29, %v3843_v58  ;;  %v3846_v62 = vld [vmem:[%s10280_s4 + $0x7f8] sm:$0xff]  ;;  %v3899_v20 = vld [vmem:[%s10280_s4 + $0x9a0] sm:$0xff]  ;;  %v3900_v8 = vld [vmem:[%s10280_s4 + $0x9a8] sm:$0xff] }
 0x6b1   : > { %5888 = vmatpush3.bf16.msra.mxu1 %v5887_v10  ;;  %5858 = vmatprep.subr.bf16.mxu0 %v5857_v14  ;;  %v3828_v10 = vld [vmem:[%s10280_s4 + $0x768] sm:$0xff]  ;;  %v3813_v14 = vld [vmem:[%s10280_s4 + $0x6f0] sm:$0xff]  ;;  %v3798_v52 = vld [vmem:[%s10280_s4 + $0x678] sm:$0xff] }
 0x6b2   : > { %5890 = vmatprep.subr.bf16.mxu1 %v5889_v22  ;;  %v5875_v22 = vpack.c.bf16 %v3796_v40, %v3795_v15  ;;  %v5907_v27 = vpack.c.bf16 %v3828_v10, %v3827_v63  ;;  %v5877_v9 = vpack.c.bf16 %v3814_v32, %v3813_v14  ;;  %v3883_v58 = vld [vmem:[%s10280_s4 + $0x920] sm:$0xff]  ;;  %v3869_v29 = vld [vmem:[%s10280_s4 + $0x8b0] sm:$0xff]  ;;  %v3886_v32 = vld [vmem:[%s10280_s4 + $0x938] sm:$0xff] }
 0x6b3   : > { %v3853_v63 = vld [vmem:[%s10280_s4 + $0x830] sm:$0xff] }
 0x6b4   : > { %5860 = vmatpush3.bf16.msra.mxu0 %v5859_v39  ;;  %v5909_v39 = vpack.c.bf16 %v3846_v62, %v3845_v16  ;;  %v3885_v10 = vld [vmem:[%s10280_s4 + $0x930] sm:$0xff]  ;;  %v3871_v16 = vld [vmem:[%s10280_s4 + $0x8c0] sm:$0xff]  ;;  %v3872_v62 = vld [vmem:[%s10280_s4 + $0x8c8] sm:$0xff] }
 0x6b5   : > { %5892 = vmatpush3.bf16.msra.mxu1 %v5891_v0  ;;  %5862 = vmatprep.subr.bf16.mxu0 %v5861_v33  ;;  %v3830_v0 = vld [vmem:[%s10280_s4 + $0x778] sm:$0xff]  ;;  %v3863_v33 = vld [vmem:[%s10280_s4 + $0x880] sm:$0xff] }
 0x6b6   : > { %5894 = vmatprep.subr.bf16.mxu1 %v5893_v51  ;;  %v5879_v51 = vpack.c.bf16 %v3798_v52, %v3797_v26  ;;  %v5911_v30 = vpack.c.bf16 %v3830_v0, %v3829_v47  ;;  %v5913_v45 = vpack.c.bf16 %v3864_v46, %v3863_v33  ;;  %v5959_v26 = vpack.c.bf16 %v3886_v32, %v3885_v10  ;;  %v3855_v47 = vld [vmem:[%s10280_s4 + $0x840] sm:$0xff]  ;;  %v3888_v46 = vld [vmem:[%s10280_s4 + $0x948] sm:$0xff] }
 0x6b7   : > { %v5929_v52 = vpack.c.bf16 %v3872_v62, %v3871_v16  ;;  %v3887_v0 = vld [vmem:[%s10280_s4 + $0x940] sm:$0xff]  ;;  %v3944_v62 = vld [vmem:[%s10280_s4 + $0xb08] sm:$0xff] }
 0x6b8   : > { %5864 = vmatpush3.bf16.msra.mxu0 %v5863_v59  ;;  %v3879_v59 = vld [vmem:[%s10280_s4 + $0x900] sm:$0xff]  ;;  %v5963_v50 = vpack.c.bf16 %v3888_v46, %v3887_v0  ;;  %v3914_v0 = vld [vmem:[%s10280_s4 + $0xa18] sm:$0xff] }
 0x6b9   : > { %5896 = vmatpush3.bf16.msra.mxu1 %v5895_v21  ;;  %5866 = vmatprep.subr.bf16.mxu0 %v5865_v43  ;;  %v3880_v21 = vld [vmem:[%s10280_s4 + $0x908] sm:$0xff]  ;;  %v3865_v43 = vld [vmem:[%s10280_s4 + $0x890] sm:$0xff]  ;;  %v3911_v10 = vld [vmem:[%s10280_s4 + $0xa00] sm:$0xff] }
 0x6ba   : > { %5898 = vmatprep.subr.bf16.mxu1 %v5897_v49  ;;  %v3898_v49 = vld [vmem:[%s10280_s4 + $0x998] sm:$0xff]  ;;  %v5947_v25 = vpack.c.bf16 %v3880_v21, %v3879_v59  ;;  %v5917_v6 = vpack.c.bf16 %v3866_v42, %v3865_v43  ;;  %v3889_v21 = vld [vmem:[%s10280_s4 + $0x950] sm:$0xff]  ;;  %v3943_v16 = vld [vmem:[%s10280_s4 + $0xb00] sm:$0xff] }
 0x6bb   : > { %v5949_v38 = vpack.c.bf16 %v3898_v49, %v3897_v13  ;;  %v3858_v59 = vld [vmem:[%s10280_s4 + $0x858] sm:$0xff]  ;;  %v3876_v13 = vld [vmem:[%s10280_s4 + $0x8e8] sm:$0xff]  ;;  %v3907_v49 = vld [vmem:[%s10280_s4 + $0x9e0] sm:$0xff] }
 0x6bc   : > { %5868 = vmatpush3.bf16.msra.mxu0 %v5867_v1  ;;  %v3882_v1 = vld [vmem:[%s10280_s4 + $0x918] sm:$0xff] }
 0x6bd   : > { %5900 = vmatpush3.bf16.msra.mxu1 %v5899_v35  ;;  %5870 = vmatprep.subr.bf16.mxu0 %v5869_v31  ;;  %v3867_v35 = vld [vmem:[%s10280_s4 + $0x8a0] sm:$0xff]  ;;  %v3868_v31 = vld [vmem:[%s10280_s4 + $0x8a8] sm:$0xff]  ;;  %v5951_v5 = vpack.c.bf16 %v3882_v1, %v3881_v55  ;;  %v3890_v42 = vld [vmem:[%s10280_s4 + $0x958] sm:$0xff] }
 0x6be   : > { %5902 = vmatprep.subr.bf16.mxu1 %v5901_v11  ;;  %v5919_v11 = vpack.c.bf16 %v3850_v36, %v3849_v54  ;;  %v5921_v12 = vpack.c.bf16 %v3868_v31, %v3867_v35  ;;  %v5967_v36 = vpack.c.bf16 %v3890_v42, %v3889_v21  ;;  %v3860_v1 = vld [vmem:[%s10280_s4 + $0x868] sm:$0xff]  ;;  %v3891_v35 = vld [vmem:[%s10280_s4 + $0x960] sm:$0xff]  ;;  %v3933_v42 = vld [vmem:[%s10280_s4 + $0xab0] sm:$0xff] }
 0x6bf   : > { %v3916_v21 = vld [vmem:[%s10280_s4 + $0xa28] sm:$0xff] }
 0x6c0   : > { %5872 = vmatpush3.bf16.msra.mxu0 %v5871_v41  ;;  %v3870_v41 = vld [vmem:[%s10280_s4 + $0x8b8] sm:$0xff] }
 0x6c1   : > { %5904 = vmatpush3.bf16.msra.mxu1 %v5903_v23  ;;  %5874 = vmatprep.subr.bf16.mxu0 %v5873_v34  ;;  %v3901_v23 = vld [vmem:[%s10280_s4 + $0x9b0] sm:$0xff]  ;;  %v5925_v40 = vpack.c.bf16 %v3870_v41, %v3869_v29  ;;  %v3894_v41 = vld [vmem:[%s10280_s4 + $0x978] sm:$0xff] }
 0x6c2   : > { %5906 = vmatprep.subr.bf16.mxu1 %v5905_v57  ;;  %v3854_v57 = vld [vmem:[%s10280_s4 + $0x838] sm:$0xff] }
 0x6c4   : > { %5876 = vmatpush3.bf16.msra.mxu0 %v5875_v22  ;;  %v3903_v22 = vld [vmem:[%s10280_s4 + $0x9c0] sm:$0xff] }
 0x6c5   : > { %5908 = vmatpush3.bf16.msra.mxu1 %v5907_v27  ;;  %5878 = vmatprep.subr.bf16.mxu0 %v5877_v9  ;;  %v3904_v27 = vld [vmem:[%s10280_s4 + $0x9c8] sm:$0xff]  ;;  %v5927_v9 = vpack.c.bf16 %v3854_v57, %v3853_v63 }
 0x6c6   : > { %5910 = vmatprep.subr.bf16.mxu1 %v5909_v39  ;;  %v3856_v39 = vld [vmem:[%s10280_s4 + $0x848] sm:$0xff]  ;;  %v5961_v33 = vpack.c.bf16 %v3904_v27, %v3903_v22  ;;  %v3929_v22 = vld [vmem:[%s10280_s4 + $0xa90] sm:$0xff]  ;;  %v3930_v27 = vld [vmem:[%s10280_s4 + $0xa98] sm:$0xff] }
 0x6c7   : > { %v5981_v46 = vpack.c.bf16 %v3930_v27, %v3929_v22  ;;  %v3971_v22 = vld [vmem:[%s10280_s4 + $0xbe0] sm:$0xff]  ;;  %v3972_v27 = vld [vmem:[%s10280_s4 + $0xbe8] sm:$0xff] }
 0x6c8   : > { %5880 = vmatpush3.bf16.msra.mxu0 %v5879_v51  ;;  %v3905_v51 = vld [vmem:[%s10280_s4 + $0x9d0] sm:$0xff] }
 0x6c9   : > { %5912 = vmatpush3.bf16.msra.mxu1 %v5911_v30  ;;  %5914 = vmatprep.subr.bf16.mxu0 %v5913_v45  ;;  %v3906_v30 = vld [vmem:[%s10280_s4 + $0x9d8] sm:$0xff]  ;;  %v5931_v45 = vpack.c.bf16 %v3856_v39, %v3855_v47  ;;  %v6011_v47 = vpack.c.bf16 %v3944_v62, %v3943_v16  ;;  %v3913_v39 = vld [vmem:[%s10280_s4 + $0xa10] sm:$0xff]  ;;  %v3939_v16 = vld [vmem:[%s10280_s4 + $0xae0] sm:$0xff] }
 0x6ca   : > { %5946 = vmatprep.subr.bf16.mxu1 %v5945_v60  ;;  %v3857_v60 = vld [vmem:[%s10280_s4 + $0x850] sm:$0xff]  ;;  %v5965_v43 = vpack.c.bf16 %v3906_v30, %v3905_v51  ;;  %v3932_v51 = vld [vmem:[%s10280_s4 + $0xaa8] sm:$0xff] }
 0x6cb   : > { %4467 = vmatmul.mubr.f32.vlgmr.msra.gmra.mrb[24].mxu0 %v9262_v61  ;;  %v3851_v61 = vld [vmem:[%s10280_s4 + $0x820] sm:$0xff]  ;;  %v5935_v54 = vpack.c.bf16 %v3858_v59, %v3857_v60  ;;  %v5985_v59 = vpack.c.bf16 %v3932_v51, %v3931_v53  ;;  %v3940_v62 = vld [vmem:[%s10280_s4 + $0xae8] sm:$0xff]  ;;  %v3942_v53 = vld [vmem:[%s10280_s4 + $0xaf8] sm:$0xff] }
 0x6cc   : > { %4537 = vmatmul.mubr.f32.vlgmr.msra.gmra.mrb[24].mxu1 %v9275_v19  ;;  %5916 = vmatpush3.bf16.msra.mxu0 %v5915_v7  ;;  %v5953_v19 = vpack.c.bf16 %v3900_v8, %v3899_v20  ;;  %v5923_v34 = vpack.c.bf16 %v3852_v28, %v3851_v61  ;;  %v3875_v7 = vld [vmem:[%s10280_s4 + $0x8e0] sm:$0xff]  ;;  %v3877_v20 = vld [vmem:[%s10280_s4 + $0x8f0] sm:$0xff]  ;;  %v3878_v8 = vld [vmem:[%s10280_s4 + $0x8f8] sm:$0xff] }
 0x6cd   : > { %4606 = vmatprep.mubr.f32.mxu0 %v9312_v17  ;;  %5948 = vmatpush3.bf16.msra.mxu1 %v5947_v25  ;;  %v3884_v17 = vld [vmem:[%s10280_s4 + $0x928] sm:$0xff]  ;;  %v5937_v55 = vpack.c.bf16 %v3876_v13, %v3875_v7  ;;  %v5941_v28 = vpack.c.bf16 %v3878_v8, %v3877_v20  ;;  %v3934_v7 = vld [vmem:[%s10280_s4 + $0xab8] sm:$0xff]  ;;  %v3965_v13 = vld [vmem:[%s10280_s4 + $0xbb0] sm:$0xff] }
 0x6ce   : > { %4676 = vmatprep.mubr.f32.mxu1 %v9315_v3  ;;  %5918 = vmatprep.subr.bf16.mxu0 %v5917_v6  ;;  %v3902_v3 = vld [vmem:[%s10280_s4 + $0x9b8] sm:$0xff]  ;;  %v5955_v15 = vpack.c.bf16 %v3884_v17, %v3883_v58  ;;  %v3908_v25 = vld [vmem:[%s10280_s4 + $0x9e8] sm:$0xff]  ;;  %v3859_v6 = vld [vmem:[%s10280_s4 + $0x860] sm:$0xff] }
 0x6cf   : > { %5950 = vmatprep.subr.bf16.mxu1 %v5949_v38  ;;  %v5957_v14 = vpack.c.bf16 %v3902_v3, %v3901_v23  ;;  %v5969_v31 = vpack.c.bf16 %v3908_v25, %v3907_v49  ;;  %v3892_v38 = vld [vmem:[%s10280_s4 + $0x968] sm:$0xff]  ;;  %v3861_v58 = vld [vmem:[%s10280_s4 + $0x870] sm:$0xff]  ;;  %v3927_v23 = vld [vmem:[%s10280_s4 + $0xa80] sm:$0xff] }
 0x6d0   : > { %5920 = vmatpush3.bf16.msra.mxu0 %v5919_v11  ;;  %v3909_v11 = vld [vmem:[%s10280_s4 + $0x9f0] sm:$0xff]  ;;  %v5971_v61 = vpack.c.bf16 %v3892_v38, %v3891_v35  ;;  %v3928_v3 = vld [vmem:[%s10280_s4 + $0xa88] sm:$0xff]  ;;  %v3950_v35 = vld [vmem:[%s10280_s4 + $0xb38] sm:$0xff] }
 0x6d1   : > { %5952 = vmatpush3.bf16.msra.mxu1 %v5951_v5  ;;  %5922 = vmatprep.subr.bf16.mxu0 %v5921_v12  ;;  %v3910_v5 = vld [vmem:[%s10280_s4 + $0x9f8] sm:$0xff]  ;;  %v5939_v12 = vpack.c.bf16 %v3860_v1, %v3859_v6  ;;  %v3893_v17 = vld [vmem:[%s10280_s4 + $0x970] sm:$0xff]  ;;  %v5977_v57 = vpack.c.bf16 %v3928_v3, %v3927_v23  ;;  %v3936_v38 = vld [vmem:[%s10280_s4 + $0xac8] sm:$0xff] }
 0x6d2   : > { %5954 = vmatprep.subr.bf16.mxu1 %v5953_v19  ;;  %v3862_v19 = vld [vmem:[%s10280_s4 + $0x878] sm:$0xff]  ;;  %v5973_v29 = vpack.c.bf16 %v3910_v5, %v3909_v11  ;;  %v5975_v63 = vpack.c.bf16 %v3894_v41, %v3893_v17  ;;  %v3949_v6 = vld [vmem:[%s10280_s4 + $0xb30] sm:$0xff]  ;;  %v3967_v20 = vld [vmem:[%s10280_s4 + $0xbc0] sm:$0xff] }
 0x6d3   : > { %v3968_v8 = vld [vmem:[%s10280_s4 + $0xbc8] sm:$0xff]  ;;  %v6023_v5 = vpack.c.bf16 %v3950_v35, %v3949_v6  ;;  %v3938_v41 = vld [vmem:[%s10280_s4 + $0xad8] sm:$0xff]  ;;  %v3969_v23 = vld [vmem:[%s10280_s4 + $0xbd0] sm:$0xff] }
 0x6d4   : > { %5924 = vmatpush3.bf16.msra.mxu0 %v5923_v34  ;;  %v3959_v34 = vld [vmem:[%s10280_s4 + $0xb80] sm:$0xff]  ;;  %v3952_v17 = vld [vmem:[%s10280_s4 + $0xb48] sm:$0xff]  ;;  %v3970_v3 = vld [vmem:[%s10280_s4 + $0xbd8] sm:$0xff] }
 0x6d5   : > { %5956 = vmatpush3.bf16.msra.mxu1 %v5955_v15  ;;  %5926 = vmatprep.subr.bf16.mxu0 %v5925_v40  ;;  %v3960_v15 = vld [vmem:[%s10280_s4 + $0xb88] sm:$0xff]  ;;  %v5943_v40 = vpack.c.bf16 %v3862_v19, %v3861_v58  ;;  %v3951_v58 = vld [vmem:[%s10280_s4 + $0xb40] sm:$0xff]  ;;  %v6025_v19 = vpack.c.bf16 %v3968_v8, %v3967_v20  ;;  %v3973_v51 = vld [vmem:[%s10280_s4 + $0xbf0] sm:$0xff] }
 0x6d6   : > { %5958 = vmatprep.subr.bf16.mxu1 %v5957_v14  ;;  %v3912_v14 = vld [vmem:[%s10280_s4 + $0xa08] sm:$0xff]  ;;  %v6009_v32 = vpack.c.bf16 %v3960_v15, %v3959_v34  ;;  %v6027_v15 = vpack.c.bf16 %v3952_v17, %v3951_v58 }
 0x6d8   : > { %5928 = vmatpush3.bf16.msra.mxu0 %v5927_v9  ;;  %v5979_v9 = vpack.c.bf16 %v3912_v14, %v3911_v10  ;;  %v3953_v10 = vld [vmem:[%s10280_s4 + $0xb50] sm:$0xff]  ;;  %v6029_v14 = vpack.c.bf16 %v3970_v3, %v3969_v23 }
 0x6d9   : > { %5960 = vmatpush3.bf16.msra.mxu1 %v5959_v26  ;;  %5930 = vmatprep.subr.bf16.mxu0 %v5929_v52  ;;  %v3961_v26 = vld [vmem:[%s10280_s4 + $0xb90] sm:$0xff]  ;;  %v3962_v52 = vld [vmem:[%s10280_s4 + $0xb98] sm:$0xff] }
 0x6da   : > { %5962 = vmatprep.subr.bf16.mxu1 %v5961_v33  ;;  %v3945_v33 = vld [vmem:[%s10280_s4 + $0xb10] sm:$0xff]  ;;  %v6013_v30 = vpack.c.bf16 %v3962_v52, %v3961_v26  ;;  %v6001_v52 = vpack.c.bf16 %v3940_v62, %v3939_v16 }
 0x6db   : > { %v6015_v60 = vpack.c.bf16 %v3946_v56, %v3945_v33  ;;  %v6033_v33 = vpack.c.bf16 %v3972_v27, %v3971_v22  ;;  %v3941_v56 = vld [vmem:[%s10280_s4 + $0xaf0] sm:$0xff] }
 0x6dc   : > { %5932 = vmatpush3.bf16.msra.mxu0 %v5931_v45  ;;  %v3963_v45 = vld [vmem:[%s10280_s4 + $0xba0] sm:$0xff] }
 0x6dd   : > { %5964 = vmatpush3.bf16.msra.mxu1 %v5963_v50  ;;  %5934 = vmatprep.subr.bf16.mxu0 %v5933_v24  ;;  %v3964_v50 = vld [vmem:[%s10280_s4 + $0xba8] sm:$0xff]  ;;  %v5983_v24 = vpack.c.bf16 %v3914_v0, %v3913_v39  ;;  %v3955_v0 = vld [vmem:[%s10280_s4 + $0xb60] sm:$0xff] }
 0x6de   : > { %5966 = vmatprep.subr.bf16.mxu1 %v5965_v43  ;;  %v3947_v43 = vld [vmem:[%s10280_s4 + $0xb20] sm:$0xff]  ;;  %v3924_v39 = vld [vmem:[%s10280_s4 + $0xa68] sm:$0xff] }
 0x6e0   : > { %5936 = vmatpush3.bf16.msra.mxu0 %v5935_v54  ;;  %v5989_v54 = vpack.c.bf16 %v3934_v7, %v3933_v42 }
 0x6e1   : > { %5968 = vmatpush3.bf16.msra.mxu1 %v5967_v36  ;;  %5938 = vmatprep.subr.bf16.mxu0 %v5937_v55  ;;  %v3917_v36 = vld [vmem:[%s10280_s4 + $0xa30] sm:$0xff]  ;;  %v3918_v55 = vld [vmem:[%s10280_s4 + $0xa38] sm:$0xff] }
 0x6e2   : > { %5970 = vmatprep.subr.bf16.mxu1 %v5969_v31  ;;  %v3935_v31 = vld [vmem:[%s10280_s4 + $0xac0] sm:$0xff]  ;;  %v5991_v11 = vpack.c.bf16 %v3918_v55, %v3917_v36 }
 0x6e4   : > { %5940 = vmatpush3.bf16.msra.mxu0 %v5939_v12  ;;  %v5993_v12 = vpack.c.bf16 %v3936_v38, %v3935_v31 }
 0x6e5   : > { %5972 = vmatpush3.bf16.msra.mxu1 %v5971_v61  ;;  %5942 = vmatprep.subr.bf16.mxu0 %v5941_v28  ;;  %v3919_v61 = vld [vmem:[%s10280_s4 + $0xa40] sm:$0xff]  ;;  %v3920_v28 = vld [vmem:[%s10280_s4 + $0xa48] sm:$0xff] }
 0x6e6   : > { %5974 = vmatprep.subr.bf16.mxu1 %v5973_v29  ;;  %v3937_v29 = vld [vmem:[%s10280_s4 + $0xad0] sm:$0xff]  ;;  %v5995_v34 = vpack.c.bf16 %v3920_v28, %v3919_v61 }
 0x6e8   : > { %5944 = vmatpush3.bf16.msra.mxu0 %v5943_v40  ;;  %v5997_v40 = vpack.c.bf16 %v3938_v41, %v3937_v29 }
 0x6e9   : > { %5976 = vmatpush3.bf16.msra.mxu1 %v5975_v63  ;;  %5978 = vmatprep.subr.bf16.mxu0 %v5977_v57  ;;  %v3921_v63 = vld [vmem:[%s10280_s4 + $0xa50] sm:$0xff]  ;;  %v3922_v57 = vld [vmem:[%s10280_s4 + $0xa58] sm:$0xff] }
 0x6ea   : > { %6010 = vmatprep.subr.bf16.mxu1 %v6009_v32  ;;  %v3954_v32 = vld [vmem:[%s10280_s4 + $0xb58] sm:$0xff] }
 0x6eb   : > { %4607 = vmatmul.mubr.f32.vlgmr.msra.gmra.mrb[26].mxu0 %v9380_v18  ;;  %v3915_v18 = vld [vmem:[%s10280_s4 + $0xa20] sm:$0xff]  ;;  %v6031_v26 = vpack.c.bf16 %v3954_v32, %v3953_v10 }
 0x6ec   : > { %4677 = vmatmul.mubr.f32.vlgmr.msra.gmra.mrb[26].mxu1 %v9383_v4  ;;  %5980 = vmatpush3.bf16.msra.mxu0 %v5979_v9  ;;  %v6017_v4 = vpack.c.bf16 %v3964_v50, %v3963_v45  ;;  %v5987_v49 = vpack.c.bf16 %v3916_v21, %v3915_v18  ;;  %v5999_v9 = vpack.c.bf16 %v3922_v57, %v3921_v63  ;;  %v3957_v21 = vld [vmem:[%s10280_s4 + $0xb70] sm:$0xff] }
 0x6ed   : > { %4746 = vmatprep.mubr.f32.mxu0 %v9431_v48  ;;  %6012 = vmatpush3.bf16.msra.mxu1 %v6011_v47  ;;  %v3948_v48 = vld [vmem:[%s10280_s4 + $0xb28] sm:$0xff]  ;;  %v3923_v47 = vld [vmem:[%s10280_s4 + $0xa60] sm:$0xff] }
 0x6ee   : > { %4816 = vmatprep.mubr.f32.mxu1 %v9463_v37  ;;  %5982 = vmatprep.subr.bf16.mxu0 %v5981_v46  ;;  %v3966_v37 = vld [vmem:[%s10280_s4 + $0xbb8] sm:$0xff]  ;;  %v6019_v25 = vpack.c.bf16 %v3948_v48, %v3947_v43  ;;  %v3956_v46 = vld [vmem:[%s10280_s4 + $0xb68] sm:$0xff]  ;;  %v6003_v45 = vpack.c.bf16 %v3924_v39, %v3923_v47 }
 0x6ef   : > { %6014 = vmatprep.subr.bf16.mxu1 %v6013_v30  ;;  %v6021_v1 = vpack.c.bf16 %v3966_v37, %v3965_v13  ;;  %v3974_v30 = vld [vmem:[%s10280_s4 + $0xbf8] sm:$0xff]  ;;  %v6035_v50 = vpack.c.bf16 %v3956_v46, %v3955_v0  ;;  %v4941_v13 = vld [vmem:[%s10281_s5] ss:$0 sm:$0xff] }
 0x6f0   : > { %5984 = vmatpush3.bf16.msra.mxu0 %v5983_v24  ;;  %v6005_v24 = vpack.c.bf16 %v3942_v53, %v3941_v56  ;;  %v6037_v18 = vpack.c.bf16 %v3974_v30, %v3973_v51  ;;  %v3958_v43 = vld [vmem:[%s10280_s4 + $0xb78] sm:$0xff] }
 0x6f1   : > { %6016 = vmatpush3.bf16.msra.mxu1 %v6015_v60  ;;  %5986 = vmatprep.subr.bf16.mxu0 %v5985_v59  ;;  %v3925_v60 = vld [vmem:[%s10280_s4 + $0xa70] sm:$0xff]  ;;  %v3926_v59 = vld [vmem:[%s10280_s4 + $0xa78] sm:$0xff]  ;;  %v6039_v48 = vpack.c.bf16 %v3958_v43, %v3957_v21 }
 0x6f2   : > { %6018 = vmatprep.subr.bf16.mxu1 %v6017_v4  ;;  %v6007_v4 = vpack.c.bf16 %v3926_v59, %v3925_v60 }
 0x6f4   : > { %5988 = vmatpush3.bf16.msra.mxu0 %v5987_v49 }
 0x6f5   : > { %6020 = vmatpush3.bf16.msra.mxu1 %v6019_v25  ;;  %5990 = vmatprep.subr.bf16.mxu0 %v5989_v54 }
 0x6f6   : > { %6022 = vmatprep.subr.bf16.mxu1 %v6021_v1 }
 0x6f8   : > { %5992 = vmatpush3.bf16.msra.mxu0 %v5991_v11 }
 0x6f9   : > { %6024 = vmatpush3.bf16.msra.mxu1 %v6023_v5  ;;  %5994 = vmatprep.subr.bf16.mxu0 %v5993_v12 }
 0x6fa   : > { %6026 = vmatprep.subr.bf16.mxu1 %v6025_v19 }
 0x6fc   : > { %5996 = vmatpush3.bf16.msra.mxu0 %v5995_v34 }
 0x6fd   : > { %6028 = vmatpush3.bf16.msra.mxu1 %v6027_v15  ;;  %5998 = vmatprep.subr.bf16.mxu0 %v5997_v40 }
 0x6fe   : > { %6030 = vmatprep.subr.bf16.mxu1 %v6029_v14 }
 0x700   : > { %6000 = vmatpush3.bf16.msra.mxu0 %v5999_v9 }
 0x701   : > { %6032 = vmatpush3.bf16.msra.mxu1 %v6031_v26  ;;  %6002 = vmatprep.subr.bf16.mxu0 %v6001_v52 }
 0x702   : > { %6034 = vmatprep.subr.bf16.mxu1 %v6033_v33 }
 0x704   : > { %6004 = vmatpush3.bf16.msra.mxu0 %v6003_v45 }
 0x705   : > { %6036 = vmatpush3.bf16.msra.mxu1 %v6035_v50  ;;  %6006 = vmatprep.subr.bf16.mxu0 %v6005_v24 }
 0x706   : > { %6038 = vmatprep.subr.bf16.mxu1 %v6037_v18 }
 0x708   : > { %6008 = vmatpush3.bf16.msra.mxu0 %v6007_v4 }
 0x709   : > { %6040 = vmatpush3.bf16.msra.mxu1 %v6039_v48 }
 0x70b   : > { %4747 = vmatmul.mubr.f32.vlgmr.msra.gmra.mrb[28].mxu0 %v9545_v2 }
 0x70c   : > { %4817 = vmatmul.mubr.f32.vlgmr.msra.gmra.mrb[28].mxu1 %v9568_v44 }
 0x736   : > { %v4978_v42 = vpop.f32.mrb[18].mxu0  ;;  %v5013_v7 = vpop.f32.mrb[18].mxu1 }
 0x737   : > { %v4979_v37 = vpop.f32.mrb[19].mxu0  ;;  %v5014_v49 = vpop.f32.mrb[19].mxu1 }
 0x738   : > { %v4980_v25 = vadd.f32 %v4979_v37, %v4978_v42  ;;  %v5015_v54 = vadd.f32 %v5014_v49, %v5013_v7 }
 0x73a   : > { %v4049_v36 = vadd.f32 %v4980_v25, %v4941_v13 }
 0x73c   : > { %v4119_v55 = vadd.f32 %v5015_v54, %v4049_v36 }
 0x75e   : > { %v5048_v6 = vpop.f32.mrb[20].mxu0  ;;  %v5083_v1 = vpop.f32.mrb[20].mxu1 }
 0x75f   : > { %v5049_v35 = vpop.f32.mrb[21].mxu0  ;;  %v5084_v31 = vpop.f32.mrb[21].mxu1 }
 0x760   : > { %v5050_v38 = vadd.f32 %v5049_v35, %v5048_v6  ;;  %v5085_v2 = vadd.f32 %v5084_v31, %v5083_v1 }
 0x762   : > { %v4189_v20 = vadd.f32 %v5050_v38, %v4119_v55 }
 0x764   : > { %v4259_v44 = vadd.f32 %v5085_v2, %v4189_v20 }
 0x77e   : > { %v5118_v8 = vpop.f32.mrb[22].mxu0 }
 0x77f   : > { %v5153_v11 = vpop.f32.mrb[22].mxu1  ;;  %v5119_v5 = vpop.f32.mrb[23].mxu0 }
 0x780   : > { %v5120_v12 = vadd.f32 %v5119_v5, %v5118_v8  ;;  %v5154_v61 = vpop.f32.mrb[23].mxu1 }
 0x781   : > { %v5155_v28 = vadd.f32 %v5154_v61, %v5153_v11 }
 0x782   : > { %v4329_v58 = vadd.f32 %v5120_v12, %v4259_v44 }
 0x784   : > { %v4399_v19 = vadd.f32 %v5155_v28, %v4329_v58 }
 0x79e   : > { %v5188_v17 = vpop.f32.mrb[24].mxu0 }
 0x79f   : > { %v5223_v29 = vpop.f32.mrb[24].mxu1  ;;  %v5189_v41 = vpop.f32.mrb[25].mxu0 }
 0x7a0   : > { %v5190_v23 = vadd.f32 %v5189_v41, %v5188_v17  ;;  %v5224_v3 = vpop.f32.mrb[25].mxu1 }
 0x7a1   : > { %v5225_v34 = vadd.f32 %v5224_v3, %v5223_v29 }
 0x7a2   : > { %v4469_v15 = vadd.f32 %v5190_v23, %v4399_v19 }
 0x7a4   : > { %v4539_v40 = vadd.f32 %v5225_v34, %v4469_v15 }
 0x7be   : > { %v5258_v63 = vpop.f32.mrb[26].mxu0 }
 0x7bf   : > { %v5293_v57 = vpop.f32.mrb[26].mxu1  ;;  %v5259_v10 = vpop.f32.mrb[27].mxu0 }
 0x7c0   : > { %v5260_v14 = vadd.f32 %v5259_v10, %v5258_v63  ;;  %v5294_v32 = vpop.f32.mrb[27].mxu1 }
 0x7c1   : > { %v5295_v16 = vadd.f32 %v5294_v32, %v5293_v57 }
 0x7c2   : > { %v4609_v62 = vadd.f32 %v5260_v14, %v4539_v40 }
 0x7c4   : > { %v4679_v22 = vadd.f32 %v5295_v16, %v4609_v62 }
 0x7de   : > { %v5328_v27 = vpop.f32.mrb[28].mxu0 }
 0x7df   : > { %v5363_v9 = vpop.f32.mrb[28].mxu1  ;;  %v5329_v26 = vpop.f32.mrb[29].mxu0 }
 0x7e0   : > { %v5330_v52 = vadd.f32 %v5329_v26, %v5328_v27  ;;  %v5364_v47 = vpop.f32.mrb[29].mxu1 }
 0x7e1   : > { %v5365_v39 = vadd.f32 %v5364_v47, %v5363_v9 }
 0x7e2   : > { %v4749_v0 = vadd.f32 %v5330_v52, %v4679_v22 }
 0x7e4   : > { %v4819_v33 = vadd.f32 %v5365_v39, %v4749_v0 }
 0x7e6   : > { %4823 = vst.msk [vmem:[%s247_s11] sm:$0xf] %vm4822_vm0, %v4819_v33 }
 0x7e7   : > { %6738 = shalt.err (!%p6735_p3)
}
 0x7e8   : > { %s6739_s20 = scalar_lea.hbm %s10234_s15, 64  ;;  %s6743_s29 = scalar_lea.hbm %s10282_s6, 128 }
 0x7e9   : > { %p6740_p4 = scmp.ne.s32.totalorder %s10234_s15, %s6739_s20  ;;  %p6744_p9 = scmp.lt.u32.totalorder %s10234_s15, %s10282_s6 }
 0x7ea   : > { %p6745_p10 = scmp.lt.u32.totalorder %s6743_s29, %s6739_s20  ;;  %p6747_p12 = scmp.lt.u32.totalorder %s6739_s20, %s10234_s15 }
 0x7eb   : > { %p6741_p7 = pnand %p6740_p4, %p6875_p5 }
 0x7ec   : > { %p6746_p11 = por %p6745_p10, %p6744_p9 }
 0x7ed   : > { %p6742_p8 = pneg %p6741_p7 }
 0x7ee   : > { %p6748_p13 = por %p6747_p12, %p6746_p11 }
 0x7f0   : > { %p6749_p0 = pnand %p6748_p13, %p6742_p8 }
 0x7f2   : > { %6752 = shalt.err (!%p6749_p0)
}
 0x7f3   : > { %6042 = dma.vmem_to_hbm [thread:$0]  (%p6875_p5), %s10236_s12, 64, %s10234_s15, %s4825_s16  }
 0x7f4 PF: > { %p6048_p1 = scmp.ge.s32.totalorder %s6787_s24, 2  ;;  %s4850_s11 = sand.u32 1, %s6775_s21  }
 0x7f5   : > { %s4851_s13 = scalar_lea.sflag [#allocation3], %s4850_s11 }
 0x7f6   : > { %p6045_p2 = pnand %p6048_p1, %p6879_p6 }
 0x7f8   : > { %6770 = dma.done.wait (!%p6045_p2), %s4851_s13, 64  }
 0x7f9   : > { %6772 = vsyncadd (!%p6045_p2), %s4851_s13, 4294967232  ;;  %p16_p3 = scmp.ge.s32.totalorder %s6862_s27, 4   ;;  %s10459_s21 = smov %s6779_s22 }
 0x7fa   : > { %s10460_s22 = smov %s6783_s23  ;;  %s10461_s23 = smov %s6873_s30 }
 0x7fb   : > { %s10462_s24 = smov %s6862_s27  ;;  %18 = sbr.rel (!%p16_p3) target bundleno = 3 (0x3), region = 86 }
 0x802   :  { %4856 = vsyncpa [#allocation3], 1 }
 0x803   :  { %4858 = vsyncpa [#allocation3 + $0x1], 1 }

</bundles_post_ra>
